<compile_context>
chip_gen: v7x
topology: tpu7x:2x2x1
jax: 0.10.0
libtpu: 0.0.40
codegen_flags: <defaults>
</compile_context>

<pallas_src>
import math

import jax
import jax.numpy as jnp
from jax.experimental import pallas as pl
from jax.experimental.pallas import tpu as pltpu

# --------------------- synthetic dataset / model constants -------------------
# TARGET_TOKENS / MAX_TARGET_LEN / RING ids come from the stgg repo and are not
# in the snippet; deterministic small stand-ins are used.
NUM_TOKENS = 32            # len(TARGET_TOKENS)
RING_ID_START = 20
RING_ID_END = 28
NUM_RING = RING_ID_END - RING_ID_START          # 8
NUM_NON_RING = NUM_TOKENS - NUM_RING            # 24
MAX_TARGET_LEN = 64
PAD_ID = 0                 # get_target_id(TARGET_PAD_TOKEN)

NUM_LAYERS = 2
EMB_SIZE = 32
NHEAD = 4
HEAD_DIM = EMB_SIZE // NHEAD
DIM_FF = 64
DROPOUT = 0.0              # eval mode -> identity

B = 2
S = 8                      # target sequence length
MEM_LEN = 8                # encoder memory length

# Plain python float: lowers to a literal inside the kernel.  (The previous
# version used jnp.float32(-inf), a jax.Array, which Pallas rejects as a
# captured constant.)
NEG_INF = float("-inf")


# ------------------------- in-kernel helper functions ------------------------
def _layernorm(x, g, b):
    mean = jnp.mean(x, axis=-1, keepdims=True)
    xc = x - mean
    var = jnp.mean(xc * xc, axis=-1, keepdims=True)
    return xc * jax.lax.rsqrt(var + 1e-5) * g + b      # PyTorch LayerNorm eps


def _gelu(x):
    # TODO(synk): PyTorch 'gelu' is the exact erf GELU; tanh approximation used
    # here (erf lowering inside Mosaic kernels is not guaranteed).
    c = 0.7978845608028654  # sqrt(2/pi)
    return 0.5 * x * (1.0 + jnp.tanh(c * (x + 0.044715 * x * x * x)))


def _masked_softmax(s):
    """Row softmax of an additive (-inf) masked score matrix, NaN-safe."""
    m = jnp.max(s, axis=-1, keepdims=True)
    m = jnp.where(m == NEG_INF, 0.0, m)                # all-masked-row guard
    p = jnp.exp(s - m)
    denom = jnp.sum(p, axis=-1, keepdims=True)
    inv = jnp.where(denom > 0.0, pl.reciprocal(denom, approx=True), 0.0)
    return p * inv


# ------------------------------ fused Pallas kernel --------------------------
def _decoder_kernel(
    # activations / per-call data
    x0_ref, mem_ref, self_bias_ref, cross_bias_ref, sel_ref, mask_ref,
    p0_ref, p1_ref,
    # stacked per-layer weights
    attn_w_ref, attn_b_ref, ln_g_ref, ln_b_ref,
    ffn_w1_ref, ffn_b1_ref, ffn_w2_ref, ffn_b2_ref,
    # head weights
    fin_g_ref, fin_b_ref, gen_w_ref, gen_b_ref,
    rw0_ref, rb0_ref, rw1_ref, rb1_ref,
    # output
    out_ref,
):
    f32 = jnp.float32
    scale = 1.0 / math.sqrt(HEAD_DIM)

    # Per-head lane masks over the 32-wide feature axis.  Head h of q/k/v lives
    # in columns [h*HEAD_DIM, (h+1)*HEAD_DIM); masking one matmul operand gives
    # per-head scores / contexts without ever materializing 8-wide tensors.
    col = jax.lax.broadcasted_iota(jnp.int32, (1, EMB_SIZE), 1)
    head_masks = [
        ((col >= h * HEAD_DIM) & (col < (h + 1) * HEAD_DIM)).astype(f32)
        for h in range(NHEAD)
    ]

    def attend(x_q, x_kv, wq, bq, wk, bk, wv, bv, wo, bo, bias_ref):
        q = jnp.dot(x_q, wq, preferred_element_type=f32) + bq
        k = jnp.dot(x_kv, wk, preferred_element_type=f32) + bk
        v = jnp.dot(x_kv, wv, preferred_element_type=f32) + bv
        ctx = jnp.zeros_like(x_q)
        for h in range(NHEAD):
            hm = head_masks[h]
            s = jax.lax.dot_general(q * hm, k, (((1,), (1,)), ((), ())),
                                    preferred_element_type=f32)
            s = s * scale + bias_ref[h]        # (B*Sq, B*Sk), block-diag bias
            p = _masked_softmax(s)
            ctx = ctx + jnp.dot(p, v * hm, preferred_element_type=f32)
        return jnp.dot(ctx, wo, preferred_element_type=f32) + bo

    x = x0_ref[...]        # (B*S, E)
    mem = mem_ref[...]     # (B*MEM_LEN, E)

    # attn_w / attn_b slot order per layer:
    #   0..3 = self-attn q, k, v, out ;  4..7 = cross-attn q, k, v, out
    for l in range(NUM_LAYERS):
        sa = attend(x, x,
                    attn_w_ref[l, 0], attn_b_ref[l, 0],
                    attn_w_ref[l, 1], attn_b_ref[l, 1],
                    attn_w_ref[l, 2], attn_b_ref[l, 2],
                    attn_w_ref[l, 3], attn_b_ref[l, 3],
                    self_bias_ref)
        x = _layernorm(x + sa, ln_g_ref[l, 0], ln_b_ref[l, 0])

        ca = attend(x, mem,
                    attn_w_ref[l, 4], attn_b_ref[l, 4],
                    attn_w_ref[l, 5], attn_b_ref[l, 5],
                    attn_w_ref[l, 6], attn_b_ref[l, 6],
                    attn_w_ref[l, 7], attn_b_ref[l, 7],
                    cross_bias_ref)
        x = _layernorm(x + ca, ln_g_ref[l, 1], ln_b_ref[l, 1])

        h1 = _gelu(jnp.dot(x, ffn_w1_ref[l], preferred_element_type=f32)
                   + ffn_b1_ref[l])
        ff = jnp.dot(h1, ffn_w2_ref[l], preferred_element_type=f32) + ffn_b2_ref[l]
        x = _layernorm(x + ff, ln_g_ref[l, 2], ln_b_ref[l, 2])

    x = _layernorm(x, fin_g_ref[...], fin_b_ref[...])

    # generator head: (B*S, NUM_NON_RING)
    logits0 = jnp.dot(x, gen_w_ref[...], preferred_element_type=f32) + gen_b_ref[...]

    # ring (EdgeLogitLayer-style) head
    l0 = jnp.dot(x, rw0_ref[...], preferred_element_type=f32) + rb0_ref[...]
    l1 = jnp.dot(x, rw1_ref[...], preferred_element_type=f32) + rb1_ref[...]
    ring_scale = 1.0 / math.sqrt(EMB_SIZE)
    ring_rows = []
    for b in range(B):
        l0_b = l0[b * S:(b + 1) * S, :]
        l1_b = l1[b * S:(b + 1) * S, :]
        table_b = jnp.dot(sel_ref[b], l1_b, preferred_element_type=f32)   # (R, E)
        ring_rows.append(
            ring_scale * jax.lax.dot_general(l0_b, table_b,
                                             (((1,), (1,)), ((), ())),
                                             preferred_element_type=f32))  # (S, R)
    logits1 = jnp.concatenate(ring_rows, axis=0)                           # (B*S, R)

    # Place [logits0 | logits1] into the 32-wide token axis with selector
    # matmuls (single lane-dense store), then mask-fill.
    logits = (jnp.dot(logits0, p0_ref[...], preferred_element_type=f32)
              + jnp.dot(logits1, p1_ref[...], preferred_element_type=f32))
    out_ref[...] = jnp.where(mask_ref[...] > 0.0, NEG_INF, logits)


# ------------------------------- model wrapper --------------------------------
def _to_blockdiag(bias):
    """(B, H, Sq, Sk) additive bias -> (H, B*Sq, B*Sk) block-diagonal bias with
    -inf off the per-batch diagonal blocks, so all batches and heads run as one
    lane-dense attention inside the fused kernel."""
    bsz, nh, sq, sk = bias.shape
    out = jnp.full((nh, bsz * sq, bsz * sk), NEG_INF, jnp.float32)
    for b in range(bsz):
        out = out.at[:, b * sq:(b + 1) * sq, b * sk:(b + 1) * sk].set(bias[b])
    return out


def base_decoder_forward(params, tgt, memory, memory_key_padding_mask):
    (sequences, count_sequences, graph_mask_sequences, valence_mask_sequences,
     linear_loc_squares, up_loc_squares, down_loc_squares) = tgt
    bsz, seq = sequences.shape
    e = EMB_SIZE
    mem_len = memory.shape[1]
    sqrt_e = math.sqrt(e)

    # ---- embeddings (cheap gathers, left to XLA) ----------------------------
    # TODO(synk): TokenEmbedding definition not in snippet; standard stgg scaled
    # embedding assumed.
    x0 = (jnp.take(params["token_emb"], sequences, axis=0)
          + jnp.take(params["count_emb"], count_sequences, axis=0)) * sqrt_e
    x0 = x0.reshape(bsz * seq, e).astype(jnp.float32)
    # input_dropout: eval-mode identity

    # ---- self-attention additive bias: location emb + causal + key padding --
    loc = (jnp.take(params["linear_loc_emb"], linear_loc_squares, axis=0)
           + jnp.take(params["up_loc_emb"], up_loc_squares, axis=0)
           + jnp.take(params["down_loc_emb"], down_loc_squares, axis=0))
    loc = jnp.transpose(loc, (0, 3, 1, 2))                        # (B, H, S, S)
    causal = jnp.tril(jnp.ones((seq, seq), jnp.float32)) > 0      # triu(ones).T == 1
    self_bias = jnp.where(causal[None, None], loc, NEG_INF)
    key_pad = sequences == PAD_ID
    self_bias = jnp.where(key_pad[:, None, None, :], NEG_INF, self_bias)

    cross_bias = jnp.where(memory_key_padding_mask[:, None, None, :], NEG_INF, 0.0)
    cross_bias = jnp.broadcast_to(cross_bias, (bsz, NHEAD, seq, mem_len))
    cross_bias = cross_bias.astype(jnp.float32)

    self_bias_bd = _to_blockdiag(self_bias)        # (H, B*S, B*S)
    cross_bias_bd = _to_blockdiag(cross_bias)      # (H, B*S, B*MEM)

    # ---- ring-slot selection matrix (EdgeLogitLayer scatter as a matmul) ----
    # TODO(synk): EdgeLogitLayer source not in snippet; reconstructed stgg-style
    # scatter-by-ring-id (last occurrence wins) + scaled bilinear scoring.
    is_ring = (sequences >= RING_ID_START) & (sequences < RING_ID_END)
    ridx = jnp.where(is_ring, sequences - RING_ID_START, NUM_RING)    # (B, S)
    onehot = ridx[:, None, :] == jnp.arange(NUM_RING)[None, :, None]  # (B, R, S)
    pos = jnp.arange(seq)[None, None, :]
    last = jnp.max(jnp.where(onehot, pos, -1), axis=-1, keepdims=True)
    sel = (onehot & (pos == last)).astype(jnp.float32)                # (B, R, S)

    # ---- combined logits mask + column placement matrices -------------------
    combined = (graph_mask_sequences | valence_mask_sequences)
    combined = combined.reshape(bsz * seq, NUM_TOKENS).astype(jnp.float32)
    eye = jnp.eye(NUM_TOKENS, dtype=jnp.float32)
    p0 = eye[:NUM_NON_RING]        # (24, 32): columns 0..23
    p1 = eye[NUM_NON_RING:]        # (8, 32) : columns 24..31

    mem2d = memory.reshape(bsz * mem_len, e).astype(jnp.float32)

    kernel_inputs = (
        x0, mem2d, self_bias_bd, cross_bias_bd, sel, combined, p0, p1,
        params["attn_w"], params["attn_b"], params["ln_g"], params["ln_b"],
        params["ffn_w1"], params["ffn_b1"], params["ffn_w2"], params["ffn_b2"],
        params["final_ln_g"], params["final_ln_b"],
        params["gen_w"], params["gen_b"],
        params["ring_w0"], params["ring_b0"], params["ring_w1"], params["ring_b1"],
    )
    vmem = pl.BlockSpec(memory_space=pltpu.MemorySpace.VMEM)  # whole array in VMEM
    logits = pl.pallas_call(
        _decoder_kernel,
        out_shape=jax.ShapeDtypeStruct((bsz * seq, NUM_TOKENS), jnp.float32),
        in_specs=[vmem] * len(kernel_inputs),
        out_specs=vmem,
    )(*kernel_inputs)
    return logits.reshape(bsz, seq, NUM_TOKENS)


# ------------------------------ parameter init --------------------------------
def init_params(key):
    kiter = iter(jax.random.split(key, 64))

    def nrm(shape, scale=0.02):
        return (scale * jax.random.normal(next(kiter), shape)).astype(jnp.float32)

    L, E = NUM_LAYERS, EMB_SIZE
    return dict(
        token_emb=nrm((NUM_TOKENS, E), 1.0),
        count_emb=nrm((MAX_TARGET_LEN, E), 1.0),
        linear_loc_emb=nrm((MAX_TARGET_LEN + 1, NHEAD), 1.0),
        up_loc_emb=nrm((MAX_TARGET_LEN + 1, NHEAD), 1.0),
        down_loc_emb=nrm((MAX_TARGET_LEN + 1, NHEAD), 1.0),
        # per-layer attention weights, slot order:
        #   0..3 = self q,k,v,out ; 4..7 = cross q,k,v,out
        attn_w=nrm((L, 8, E, E)),
        attn_b=nrm((L, 8, 1, E)),
        ln_g=jnp.ones((L, 3, 1, E), jnp.float32),
        ln_b=jnp.zeros((L, 3, 1, E), jnp.float32),
        ffn_w1=nrm((L, E, DIM_FF)),
        ffn_b1=nrm((L, 1, DIM_FF)),
        ffn_w2=nrm((L, DIM_FF, E)),
        ffn_b2=nrm((L, 1, E)),
        final_ln_g=jnp.ones((1, E), jnp.float32),
        final_ln_b=jnp.zeros((1, E), jnp.float32),
        gen_w=nrm((E, NUM_NON_RING)),
        gen_b=nrm((1, NUM_NON_RING)),
        ring_w0=nrm((E, E)), ring_b0=nrm((1, E)),
        ring_w1=nrm((E, E)), ring_b1=nrm((1, E)),
    )


# ----------------------------------- main --------------------------------------
if __name__ == "__main__":
    key = jax.random.PRNGKey(0)
    pkey, dkey = jax.random.split(key)
    params = init_params(pkey)
    ks = jax.random.split(dkey, 10)

    sequences = jax.random.randint(ks[0], (B, S), 1, NUM_TOKENS, dtype=jnp.int32)
    count_sequences = jax.random.randint(ks[1], (B, S), 0, MAX_TARGET_LEN, dtype=jnp.int32)
    graph_mask_sequences = jax.random.bernoulli(ks[2], 0.05, (B, S, NUM_TOKENS))
    valence_mask_sequences = jax.random.bernoulli(ks[3], 0.05, (B, S, NUM_TOKENS))
    linear_loc_squares = jax.random.randint(ks[4], (B, S, S), 0, MAX_TARGET_LEN + 1, dtype=jnp.int32)
    up_loc_squares = jax.random.randint(ks[5], (B, S, S), 0, MAX_TARGET_LEN + 1, dtype=jnp.int32)
    down_loc_squares = jax.random.randint(ks[6], (B, S, S), 0, MAX_TARGET_LEN + 1, dtype=jnp.int32)
    memory = jax.random.normal(ks[7], (B, MEM_LEN, EMB_SIZE), dtype=jnp.float32)
    memory_key_padding_mask = jnp.zeros((B, MEM_LEN), dtype=bool).at[0, -1].set(True)

    tgt = (sequences, count_sequences, graph_mask_sequences, valence_mask_sequences,
           linear_loc_squares, up_loc_squares, down_loc_squares)

    fwd = jax.jit(base_decoder_forward)
    logits = fwd(params, tgt, memory, memory_key_padding_mask)
    logits = jax.block_until_ready(logits)

    assert logits.shape == (B, S, NUM_TOKENS), logits.shape
    assert logits.dtype == jnp.float32
    assert not bool(jnp.any(jnp.isnan(logits)))
    print("KERNEL_OK")
</pallas_src>

<mosaic_0001>
module attributes {stable_mosaic.version = 11 : i64} {
  func.func @_decoder_kernel(%arg0: memref<16x32xf32, #tpu.memory_space<vmem>>, %arg1: memref<16x32xf32, #tpu.memory_space<vmem>>, %arg2: memref<4x16x16xf32, #tpu.memory_space<vmem>>, %arg3: memref<4x16x16xf32, #tpu.memory_space<vmem>>, %arg4: memref<2x8x8xf32, #tpu.memory_space<vmem>>, %arg5: memref<16x32xf32, #tpu.memory_space<vmem>>, %arg6: memref<24x32xf32, #tpu.memory_space<vmem>>, %arg7: memref<8x32xf32, #tpu.memory_space<vmem>>, %arg8: memref<2x8x32x32xf32, #tpu.memory_space<vmem>>, %arg9: memref<2x8x1x32xf32, #tpu.memory_space<vmem>>, %arg10: memref<2x3x1x32xf32, #tpu.memory_space<vmem>>, %arg11: memref<2x3x1x32xf32, #tpu.memory_space<vmem>>, %arg12: memref<2x32x64xf32, #tpu.memory_space<vmem>>, %arg13: memref<2x1x64xf32, #tpu.memory_space<vmem>>, %arg14: memref<2x64x32xf32, #tpu.memory_space<vmem>>, %arg15: memref<2x1x32xf32, #tpu.memory_space<vmem>>, %arg16: memref<1x32xf32, #tpu.memory_space<vmem>>, %arg17: memref<1x32xf32, #tpu.memory_space<vmem>>, %arg18: memref<32x24xf32, #tpu.memory_space<vmem>>, %arg19: memref<1x24xf32, #tpu.memory_space<vmem>>, %arg20: memref<32x32xf32, #tpu.memory_space<vmem>>, %arg21: memref<1x32xf32, #tpu.memory_space<vmem>>, %arg22: memref<32x32xf32, #tpu.memory_space<vmem>>, %arg23: memref<1x32xf32, #tpu.memory_space<vmem>>, %arg24: memref<16x32xf32, #tpu.memory_space<vmem>>) attributes {dimension_semantics = [], scalar_prefetch = 0 : i64, scratch_operands = 0 : i64, tpu.core_type = #tpu.core_type<tc>} {
    %0 = tpu.iota {dimensions = array<i32: 1>} : vector<1x32xi32>
    %c0_i32 = arith.constant 0 : i32
    %1 = vector.broadcast %c0_i32 : i32 to vector<1x32xi32>
    %2 = arith.cmpi sge, %0, %1 : vector<1x32xi32>
    %c8_i32 = arith.constant 8 : i32
    %3 = vector.broadcast %c8_i32 : i32 to vector<1x32xi32>
    %4 = arith.cmpi slt, %0, %3 : vector<1x32xi32>
    %5 = arith.andi %2, %4 : vector<1x32xi1>
    %6 = arith.extui %5 : vector<1x32xi1> to vector<1x32xi32>
    %7 = arith.sitofp %6 : vector<1x32xi32> to vector<1x32xf32>
    %c8_i32_0 = arith.constant 8 : i32
    %8 = vector.broadcast %c8_i32_0 : i32 to vector<1x32xi32>
    %9 = arith.cmpi sge, %0, %8 : vector<1x32xi32>
    %c16_i32 = arith.constant 16 : i32
    %10 = vector.broadcast %c16_i32 : i32 to vector<1x32xi32>
    %11 = arith.cmpi slt, %0, %10 : vector<1x32xi32>
    %12 = arith.andi %9, %11 : vector<1x32xi1>
    %13 = arith.extui %12 : vector<1x32xi1> to vector<1x32xi32>
    %14 = arith.sitofp %13 : vector<1x32xi32> to vector<1x32xf32>
    %c16_i32_1 = arith.constant 16 : i32
    %15 = vector.broadcast %c16_i32_1 : i32 to vector<1x32xi32>
    %16 = arith.cmpi sge, %0, %15 : vector<1x32xi32>
    %c24_i32 = arith.constant 24 : i32
    %17 = vector.broadcast %c24_i32 : i32 to vector<1x32xi32>
    %18 = arith.cmpi slt, %0, %17 : vector<1x32xi32>
    %19 = arith.andi %16, %18 : vector<1x32xi1>
    %20 = arith.extui %19 : vector<1x32xi1> to vector<1x32xi32>
    %21 = arith.sitofp %20 : vector<1x32xi32> to vector<1x32xf32>
    %c24_i32_2 = arith.constant 24 : i32
    %22 = vector.broadcast %c24_i32_2 : i32 to vector<1x32xi32>
    %23 = arith.cmpi sge, %0, %22 : vector<1x32xi32>
    %c32_i32 = arith.constant 32 : i32
    %24 = vector.broadcast %c32_i32 : i32 to vector<1x32xi32>
    %25 = arith.cmpi slt, %0, %24 : vector<1x32xi32>
    %26 = arith.andi %23, %25 : vector<1x32xi1>
    %27 = arith.extui %26 : vector<1x32xi1> to vector<1x32xi32>
    %28 = arith.sitofp %27 : vector<1x32xi32> to vector<1x32xf32>
    %c0 = arith.constant 0 : index
    %c0_3 = arith.constant 0 : index
    %29 = vector.load %arg0[%c0, %c0_3] : memref<16x32xf32, #tpu.memory_space<vmem>>, vector<16x32xf32>
    %c0_4 = arith.constant 0 : index
    %c0_5 = arith.constant 0 : index
    %30 = vector.load %arg1[%c0_4, %c0_5] : memref<16x32xf32, #tpu.memory_space<vmem>>, vector<16x32xf32>
    %c0_6 = arith.constant 0 : index
    %c0_7 = arith.constant 0 : index
    %c0_8 = arith.constant 0 : index
    %c0_9 = arith.constant 0 : index
    %31 = vector.load %arg8[%c0_6, %c0_7, %c0_8, %c0_9] : memref<2x8x32x32xf32, #tpu.memory_space<vmem>>, vector<1x1x32x32xf32>
    %32 = vector.shape_cast %31 : vector<1x1x32x32xf32> to vector<32x32xf32>
    %c0_10 = arith.constant 0 : index
    %c0_11 = arith.constant 0 : index
    %c0_12 = arith.constant 0 : index
    %c0_13 = arith.constant 0 : index
    %33 = vector.load %arg9[%c0_10, %c0_11, %c0_12, %c0_13] : memref<2x8x1x32xf32, #tpu.memory_space<vmem>>, vector<1x1x1x32xf32>
    %34 = vector.shape_cast %33 : vector<1x1x1x32xf32> to vector<1x32xf32>
    %c0_14 = arith.constant 0 : index
    %c1 = arith.constant 1 : index
    %c0_15 = arith.constant 0 : index
    %c0_16 = arith.constant 0 : index
    %35 = vector.load %arg8[%c0_14, %c1, %c0_15, %c0_16] : memref<2x8x32x32xf32, #tpu.memory_space<vmem>>, vector<1x1x32x32xf32>
    %36 = vector.shape_cast %35 : vector<1x1x32x32xf32> to vector<32x32xf32>
    %c0_17 = arith.constant 0 : index
    %c1_18 = arith.constant 1 : index
    %c0_19 = arith.constant 0 : index
    %c0_20 = arith.constant 0 : index
    %37 = vector.load %arg9[%c0_17, %c1_18, %c0_19, %c0_20] : memref<2x8x1x32xf32, #tpu.memory_space<vmem>>, vector<1x1x1x32xf32>
    %38 = vector.shape_cast %37 : vector<1x1x1x32xf32> to vector<1x32xf32>
    %c0_21 = arith.constant 0 : index
    %c2 = arith.constant 2 : index
    %c0_22 = arith.constant 0 : index
    %c0_23 = arith.constant 0 : index
    %39 = vector.load %arg8[%c0_21, %c2, %c0_22, %c0_23] : memref<2x8x32x32xf32, #tpu.memory_space<vmem>>, vector<1x1x32x32xf32>
    %40 = vector.shape_cast %39 : vector<1x1x32x32xf32> to vector<32x32xf32>
    %c0_24 = arith.constant 0 : index
    %c2_25 = arith.constant 2 : index
    %c0_26 = arith.constant 0 : index
    %c0_27 = arith.constant 0 : index
    %41 = vector.load %arg9[%c0_24, %c2_25, %c0_26, %c0_27] : memref<2x8x1x32xf32, #tpu.memory_space<vmem>>, vector<1x1x1x32xf32>
    %42 = vector.shape_cast %41 : vector<1x1x1x32xf32> to vector<1x32xf32>
    %c0_28 = arith.constant 0 : index
    %c3 = arith.constant 3 : index
    %c0_29 = arith.constant 0 : index
    %c0_30 = arith.constant 0 : index
    %43 = vector.load %arg8[%c0_28, %c3, %c0_29, %c0_30] : memref<2x8x32x32xf32, #tpu.memory_space<vmem>>, vector<1x1x32x32xf32>
    %44 = vector.shape_cast %43 : vector<1x1x32x32xf32> to vector<32x32xf32>
    %c0_31 = arith.constant 0 : index
    %c3_32 = arith.constant 3 : index
    %c0_33 = arith.constant 0 : index
    %c0_34 = arith.constant 0 : index
    %45 = vector.load %arg9[%c0_31, %c3_32, %c0_33, %c0_34] : memref<2x8x1x32xf32, #tpu.memory_space<vmem>>, vector<1x1x1x32xf32>
    %46 = vector.shape_cast %45 : vector<1x1x1x32xf32> to vector<1x32xf32>
    %cst = arith.constant dense<0.000000e+00> : vector<16x32xf32>
    %47 = tpu.matmul %29, %32, %cst {dimension_numbers = #tpu.dot_dimension_numbers<[1], [0], [0], [1], [0, 0, 1, 1], [], []>} : vector<16x32xf32>, vector<32x32xf32>, vector<16x32xf32> -> vector<16x32xf32>
    %48 = vector.broadcast %34 : vector<1x32xf32> to vector<16x32xf32>
    %49 = arith.addf %47, %48 : vector<16x32xf32>
    %cst_35 = arith.constant dense<0.000000e+00> : vector<16x32xf32>
    %50 = tpu.matmul %29, %36, %cst_35 {dimension_numbers = #tpu.dot_dimension_numbers<[1], [0], [0], [1], [0, 0, 1, 1], [], []>} : vector<16x32xf32>, vector<32x32xf32>, vector<16x32xf32> -> vector<16x32xf32>
    %51 = vector.broadcast %38 : vector<1x32xf32> to vector<16x32xf32>
    %52 = arith.addf %50, %51 : vector<16x32xf32>
    %cst_36 = arith.constant dense<0.000000e+00> : vector<16x32xf32>
    %53 = tpu.matmul %29, %40, %cst_36 {dimension_numbers = #tpu.dot_dimension_numbers<[1], [0], [0], [1], [0, 0, 1, 1], [], []>} : vector<16x32xf32>, vector<32x32xf32>, vector<16x32xf32> -> vector<16x32xf32>
    %54 = vector.broadcast %42 : vector<1x32xf32> to vector<16x32xf32>
    %55 = arith.addf %53, %54 : vector<16x32xf32>
    %cst_37 = arith.constant 0.000000e+00 : f32
    %56 = vector.broadcast %cst_37 : f32 to vector<16x32xf32>
    %57 = vector.broadcast %7 : vector<1x32xf32> to vector<16x32xf32>
    %58 = arith.mulf %49, %57 : vector<16x32xf32>
    %cst_38 = arith.constant dense<0.000000e+00> : vector<16x16xf32>
    %59 = tpu.matmul %58, %52, %cst_38 {dimension_numbers = #tpu.dot_dimension_numbers<[1], [1], [0], [0], [0, 0, 1, 0], [], []>} : vector<16x32xf32>, vector<16x32xf32>, vector<16x16xf32> -> vector<16x16xf32>
    %cst_39 = arith.constant 0.353553385 : f32
    %60 = vector.broadcast %cst_39 : f32 to vector<16x16xf32>
    %61 = arith.mulf %59, %60 : vector<16x16xf32>
    %c0_40 = arith.constant 0 : index
    %c0_41 = arith.constant 0 : index
    %c0_42 = arith.constant 0 : index
    %62 = vector.load %arg2[%c0_40, %c0_41, %c0_42] : memref<4x16x16xf32, #tpu.memory_space<vmem>>, vector<1x16x16xf32>
    %63 = vector.shape_cast %62 : vector<1x16x16xf32> to vector<16x16xf32>
    %64 = arith.addf %61, %63 : vector<16x16xf32>
    %cst_43 = arith.constant dense<0xFF800000> : vector<16xf32>
    %65 = vector.multi_reduction <maximumf>, %64, %cst_43 [1] : vector<16x16xf32> to vector<16xf32>
    %66 = vector.shape_cast %65 : vector<16xf32> to vector<16x1xf32>
    %cst_44 = arith.constant 0xFF800000 : f32
    %67 = vector.broadcast %cst_44 : f32 to vector<16x1xf32>
    %68 = arith.cmpf oeq, %66, %67 : vector<16x1xf32>
    %cst_45 = arith.constant 0.000000e+00 : f32
    %69 = vector.broadcast %cst_45 : f32 to vector<16x1xf32>
    %70 = arith.select %68, %69, %66 : vector<16x1xi1>, vector<16x1xf32>
    %71 = vector.broadcast %70 : vector<16x1xf32> to vector<16x16xf32>
    %72 = arith.subf %64, %71 : vector<16x16xf32>
    %73 = math.exp %72 : vector<16x16xf32>
    %cst_46 = arith.constant dense<0.000000e+00> : vector<16xf32>
    %74 = vector.multi_reduction <add>, %73, %cst_46 [1] : vector<16x16xf32> to vector<16xf32>
    %75 = vector.shape_cast %74 : vector<16xf32> to vector<16x1xf32>
    %cst_47 = arith.constant 0.000000e+00 : f32
    %76 = vector.broadcast %cst_47 : f32 to vector<16x1xf32>
    %77 = arith.cmpf ogt, %75, %76 : vector<16x1xf32>
    %78 = tpu.reciprocal %75 {approx = true} : vector<16x1xf32> -> vector<16x1xf32>
    %cst_48 = arith.constant 0.000000e+00 : f32
    %79 = vector.broadcast %cst_48 : f32 to vector<16x1xf32>
    %80 = arith.select %77, %78, %79 : vector<16x1xi1>, vector<16x1xf32>
    %81 = vector.broadcast %80 : vector<16x1xf32> to vector<16x16xf32>
    %82 = arith.mulf %73, %81 : vector<16x16xf32>
    %83 = vector.broadcast %7 : vector<1x32xf32> to vector<16x32xf32>
    %84 = arith.mulf %55, %83 : vector<16x32xf32>
    %cst_49 = arith.constant dense<0.000000e+00> : vector<16x32xf32>
    %85 = tpu.matmul %82, %84, %cst_49 {dimension_numbers = #tpu.dot_dimension_numbers<[1], [0], [0], [1], [0, 0, 1, 1], [], []>} : vector<16x16xf32>, vector<16x32xf32>, vector<16x32xf32> -> vector<16x32xf32>
    %86 = arith.addf %56, %85 : vector<16x32xf32>
    %87 = vector.broadcast %14 : vector<1x32xf32> to vector<16x32xf32>
    %88 = arith.mulf %49, %87 : vector<16x32xf32>
    %cst_50 = arith.constant dense<0.000000e+00> : vector<16x16xf32>
    %89 = tpu.matmul %88, %52, %cst_50 {dimension_numbers = #tpu.dot_dimension_numbers<[1], [1], [0], [0], [0, 0, 1, 0], [], []>} : vector<16x32xf32>, vector<16x32xf32>, vector<16x16xf32> -> vector<16x16xf32>
    %cst_51 = arith.constant 0.353553385 : f32
    %90 = vector.broadcast %cst_51 : f32 to vector<16x16xf32>
    %91 = arith.mulf %89, %90 : vector<16x16xf32>
    %c1_52 = arith.constant 1 : index
    %c0_53 = arith.constant 0 : index
    %c0_54 = arith.constant 0 : index
    %92 = vector.load %arg2[%c1_52, %c0_53, %c0_54] : memref<4x16x16xf32, #tpu.memory_space<vmem>>, vector<1x16x16xf32>
    %93 = vector.shape_cast %92 : vector<1x16x16xf32> to vector<16x16xf32>
    %94 = arith.addf %91, %93 : vector<16x16xf32>
    %cst_55 = arith.constant dense<0xFF800000> : vector<16xf32>
    %95 = vector.multi_reduction <maximumf>, %94, %cst_55 [1] : vector<16x16xf32> to vector<16xf32>
    %96 = vector.shape_cast %95 : vector<16xf32> to vector<16x1xf32>
    %cst_56 = arith.constant 0xFF800000 : f32
    %97 = vector.broadcast %cst_56 : f32 to vector<16x1xf32>
    %98 = arith.cmpf oeq, %96, %97 : vector<16x1xf32>
    %cst_57 = arith.constant 0.000000e+00 : f32
    %99 = vector.broadcast %cst_57 : f32 to vector<16x1xf32>
    %100 = arith.select %98, %99, %96 : vector<16x1xi1>, vector<16x1xf32>
    %101 = vector.broadcast %100 : vector<16x1xf32> to vector<16x16xf32>
    %102 = arith.subf %94, %101 : vector<16x16xf32>
    %103 = math.exp %102 : vector<16x16xf32>
    %cst_58 = arith.constant dense<0.000000e+00> : vector<16xf32>
    %104 = vector.multi_reduction <add>, %103, %cst_58 [1] : vector<16x16xf32> to vector<16xf32>
    %105 = vector.shape_cast %104 : vector<16xf32> to vector<16x1xf32>
    %cst_59 = arith.constant 0.000000e+00 : f32
    %106 = vector.broadcast %cst_59 : f32 to vector<16x1xf32>
    %107 = arith.cmpf ogt, %105, %106 : vector<16x1xf32>
    %108 = tpu.reciprocal %105 {approx = true} : vector<16x1xf32> -> vector<16x1xf32>
    %cst_60 = arith.constant 0.000000e+00 : f32
    %109 = vector.broadcast %cst_60 : f32 to vector<16x1xf32>
    %110 = arith.select %107, %108, %109 : vector<16x1xi1>, vector<16x1xf32>
    %111 = vector.broadcast %110 : vector<16x1xf32> to vector<16x16xf32>
    %112 = arith.mulf %103, %111 : vector<16x16xf32>
    %113 = vector.broadcast %14 : vector<1x32xf32> to vector<16x32xf32>
    %114 = arith.mulf %55, %113 : vector<16x32xf32>
    %cst_61 = arith.constant dense<0.000000e+00> : vector<16x32xf32>
    %115 = tpu.matmul %112, %114, %cst_61 {dimension_numbers = #tpu.dot_dimension_numbers<[1], [0], [0], [1], [0, 0, 1, 1], [], []>} : vector<16x16xf32>, vector<16x32xf32>, vector<16x32xf32> -> vector<16x32xf32>
    %116 = arith.addf %86, %115 : vector<16x32xf32>
    %117 = vector.broadcast %21 : vector<1x32xf32> to vector<16x32xf32>
    %118 = arith.mulf %49, %117 : vector<16x32xf32>
    %cst_62 = arith.constant dense<0.000000e+00> : vector<16x16xf32>
    %119 = tpu.matmul %118, %52, %cst_62 {dimension_numbers = #tpu.dot_dimension_numbers<[1], [1], [0], [0], [0, 0, 1, 0], [], []>} : vector<16x32xf32>, vector<16x32xf32>, vector<16x16xf32> -> vector<16x16xf32>
    %cst_63 = arith.constant 0.353553385 : f32
    %120 = vector.broadcast %cst_63 : f32 to vector<16x16xf32>
    %121 = arith.mulf %119, %120 : vector<16x16xf32>
    %c2_64 = arith.constant 2 : index
    %c0_65 = arith.constant 0 : index
    %c0_66 = arith.constant 0 : index
    %122 = vector.load %arg2[%c2_64, %c0_65, %c0_66] : memref<4x16x16xf32, #tpu.memory_space<vmem>>, vector<1x16x16xf32>
    %123 = vector.shape_cast %122 : vector<1x16x16xf32> to vector<16x16xf32>
    %124 = arith.addf %121, %123 : vector<16x16xf32>
    %cst_67 = arith.constant dense<0xFF800000> : vector<16xf32>
    %125 = vector.multi_reduction <maximumf>, %124, %cst_67 [1] : vector<16x16xf32> to vector<16xf32>
    %126 = vector.shape_cast %125 : vector<16xf32> to vector<16x1xf32>
    %cst_68 = arith.constant 0xFF800000 : f32
    %127 = vector.broadcast %cst_68 : f32 to vector<16x1xf32>
    %128 = arith.cmpf oeq, %126, %127 : vector<16x1xf32>
    %cst_69 = arith.constant 0.000000e+00 : f32
    %129 = vector.broadcast %cst_69 : f32 to vector<16x1xf32>
    %130 = arith.select %128, %129, %126 : vector<16x1xi1>, vector<16x1xf32>
    %131 = vector.broadcast %130 : vector<16x1xf32> to vector<16x16xf32>
    %132 = arith.subf %124, %131 : vector<16x16xf32>
    %133 = math.exp %132 : vector<16x16xf32>
    %cst_70 = arith.constant dense<0.000000e+00> : vector<16xf32>
    %134 = vector.multi_reduction <add>, %133, %cst_70 [1] : vector<16x16xf32> to vector<16xf32>
    %135 = vector.shape_cast %134 : vector<16xf32> to vector<16x1xf32>
    %cst_71 = arith.constant 0.000000e+00 : f32
    %136 = vector.broadcast %cst_71 : f32 to vector<16x1xf32>
    %137 = arith.cmpf ogt, %135, %136 : vector<16x1xf32>
    %138 = tpu.reciprocal %135 {approx = true} : vector<16x1xf32> -> vector<16x1xf32>
    %cst_72 = arith.constant 0.000000e+00 : f32
    %139 = vector.broadcast %cst_72 : f32 to vector<16x1xf32>
    %140 = arith.select %137, %138, %139 : vector<16x1xi1>, vector<16x1xf32>
    %141 = vector.broadcast %140 : vector<16x1xf32> to vector<16x16xf32>
    %142 = arith.mulf %133, %141 : vector<16x16xf32>
    %143 = vector.broadcast %21 : vector<1x32xf32> to vector<16x32xf32>
    %144 = arith.mulf %55, %143 : vector<16x32xf32>
    %cst_73 = arith.constant dense<0.000000e+00> : vector<16x32xf32>
    %145 = tpu.matmul %142, %144, %cst_73 {dimension_numbers = #tpu.dot_dimension_numbers<[1], [0], [0], [1], [0, 0, 1, 1], [], []>} : vector<16x16xf32>, vector<16x32xf32>, vector<16x32xf32> -> vector<16x32xf32>
    %146 = arith.addf %116, %145 : vector<16x32xf32>
    %147 = vector.broadcast %28 : vector<1x32xf32> to vector<16x32xf32>
    %148 = arith.mulf %49, %147 : vector<16x32xf32>
    %cst_74 = arith.constant dense<0.000000e+00> : vector<16x16xf32>
    %149 = tpu.matmul %148, %52, %cst_74 {dimension_numbers = #tpu.dot_dimension_numbers<[1], [1], [0], [0], [0, 0, 1, 0], [], []>} : vector<16x32xf32>, vector<16x32xf32>, vector<16x16xf32> -> vector<16x16xf32>
    %cst_75 = arith.constant 0.353553385 : f32
    %150 = vector.broadcast %cst_75 : f32 to vector<16x16xf32>
    %151 = arith.mulf %149, %150 : vector<16x16xf32>
    %c3_76 = arith.constant 3 : index
    %c0_77 = arith.constant 0 : index
    %c0_78 = arith.constant 0 : index
    %152 = vector.load %arg2[%c3_76, %c0_77, %c0_78] : memref<4x16x16xf32, #tpu.memory_space<vmem>>, vector<1x16x16xf32>
    %153 = vector.shape_cast %152 : vector<1x16x16xf32> to vector<16x16xf32>
    %154 = arith.addf %151, %153 : vector<16x16xf32>
    %cst_79 = arith.constant dense<0xFF800000> : vector<16xf32>
    %155 = vector.multi_reduction <maximumf>, %154, %cst_79 [1] : vector<16x16xf32> to vector<16xf32>
    %156 = vector.shape_cast %155 : vector<16xf32> to vector<16x1xf32>
    %cst_80 = arith.constant 0xFF800000 : f32
    %157 = vector.broadcast %cst_80 : f32 to vector<16x1xf32>
    %158 = arith.cmpf oeq, %156, %157 : vector<16x1xf32>
    %cst_81 = arith.constant 0.000000e+00 : f32
    %159 = vector.broadcast %cst_81 : f32 to vector<16x1xf32>
    %160 = arith.select %158, %159, %156 : vector<16x1xi1>, vector<16x1xf32>
    %161 = vector.broadcast %160 : vector<16x1xf32> to vector<16x16xf32>
    %162 = arith.subf %154, %161 : vector<16x16xf32>
    %163 = math.exp %162 : vector<16x16xf32>
    %cst_82 = arith.constant dense<0.000000e+00> : vector<16xf32>
    %164 = vector.multi_reduction <add>, %163, %cst_82 [1] : vector<16x16xf32> to vector<16xf32>
    %165 = vector.shape_cast %164 : vector<16xf32> to vector<16x1xf32>
    %cst_83 = arith.constant 0.000000e+00 : f32
    %166 = vector.broadcast %cst_83 : f32 to vector<16x1xf32>
    %167 = arith.cmpf ogt, %165, %166 : vector<16x1xf32>
    %168 = tpu.reciprocal %165 {approx = true} : vector<16x1xf32> -> vector<16x1xf32>
    %cst_84 = arith.constant 0.000000e+00 : f32
    %169 = vector.broadcast %cst_84 : f32 to vector<16x1xf32>
    %170 = arith.select %167, %168, %169 : vector<16x1xi1>, vector<16x1xf32>
    %171 = vector.broadcast %170 : vector<16x1xf32> to vector<16x16xf32>
    %172 = arith.mulf %163, %171 : vector<16x16xf32>
    %173 = vector.broadcast %28 : vector<1x32xf32> to vector<16x32xf32>
    %174 = arith.mulf %55, %173 : vector<16x32xf32>
    %cst_85 = arith.constant dense<0.000000e+00> : vector<16x32xf32>
    %175 = tpu.matmul %172, %174, %cst_85 {dimension_numbers = #tpu.dot_dimension_numbers<[1], [0], [0], [1], [0, 0, 1, 1], [], []>} : vector<16x16xf32>, vector<16x32xf32>, vector<16x32xf32> -> vector<16x32xf32>
    %176 = arith.addf %146, %175 : vector<16x32xf32>
    %cst_86 = arith.constant dense<0.000000e+00> : vector<16x32xf32>
    %177 = tpu.matmul %176, %44, %cst_86 {dimension_numbers = #tpu.dot_dimension_numbers<[1], [0], [0], [1], [0, 0, 1, 1], [], []>} : vector<16x32xf32>, vector<32x32xf32>, vector<16x32xf32> -> vector<16x32xf32>
    %178 = vector.broadcast %46 : vector<1x32xf32> to vector<16x32xf32>
    %179 = arith.addf %177, %178 : vector<16x32xf32>
    %180 = arith.addf %29, %179 : vector<16x32xf32>
    %c0_87 = arith.constant 0 : index
    %c0_88 = arith.constant 0 : index
    %c0_89 = arith.constant 0 : index
    %c0_90 = arith.constant 0 : index
    %181 = vector.load %arg10[%c0_87, %c0_88, %c0_89, %c0_90] : memref<2x3x1x32xf32, #tpu.memory_space<vmem>>, vector<1x1x1x32xf32>
    %182 = vector.shape_cast %181 : vector<1x1x1x32xf32> to vector<1x32xf32>
    %c0_91 = arith.constant 0 : index
    %c0_92 = arith.constant 0 : index
    %c0_93 = arith.constant 0 : index
    %c0_94 = arith.constant 0 : index
    %183 = vector.load %arg11[%c0_91, %c0_92, %c0_93, %c0_94] : memref<2x3x1x32xf32, #tpu.memory_space<vmem>>, vector<1x1x1x32xf32>
    %184 = vector.shape_cast %183 : vector<1x1x1x32xf32> to vector<1x32xf32>
    %cst_95 = arith.constant dense<0.000000e+00> : vector<16xf32>
    %185 = vector.multi_reduction <add>, %180, %cst_95 [1] : vector<16x32xf32> to vector<16xf32>
    %186 = vector.shape_cast %185 : vector<16xf32> to vector<16x1xf32>
    %cst_96 = arith.constant 3.200000e+01 : f32
    %187 = vector.broadcast %cst_96 : f32 to vector<16x1xf32>
    %188 = arith.divf %186, %187 : vector<16x1xf32>
    %189 = vector.broadcast %188 : vector<16x1xf32> to vector<16x32xf32>
    %190 = arith.subf %180, %189 : vector<16x32xf32>
    %191 = arith.mulf %190, %190 : vector<16x32xf32>
    %cst_97 = arith.constant dense<0.000000e+00> : vector<16xf32>
    %192 = vector.multi_reduction <add>, %191, %cst_97 [1] : vector<16x32xf32> to vector<16xf32>
    %193 = vector.shape_cast %192 : vector<16xf32> to vector<16x1xf32>
    %cst_98 = arith.constant 3.200000e+01 : f32
    %194 = vector.broadcast %cst_98 : f32 to vector<16x1xf32>
    %195 = arith.divf %193, %194 : vector<16x1xf32>
    %cst_99 = arith.constant 9.99999974E-6 : f32
    %196 = vector.broadcast %cst_99 : f32 to vector<16x1xf32>
    %197 = arith.addf %195, %196 : vector<16x1xf32>
    %198 = math.rsqrt %197 : vector<16x1xf32>
    %199 = vector.broadcast %198 : vector<16x1xf32> to vector<16x32xf32>
    %200 = arith.mulf %190, %199 : vector<16x32xf32>
    %201 = vector.broadcast %182 : vector<1x32xf32> to vector<16x32xf32>
    %202 = arith.mulf %200, %201 : vector<16x32xf32>
    %203 = vector.broadcast %184 : vector<1x32xf32> to vector<16x32xf32>
    %204 = arith.addf %202, %203 : vector<16x32xf32>
    %c0_100 = arith.constant 0 : index
    %c4 = arith.constant 4 : index
    %c0_101 = arith.constant 0 : index
    %c0_102 = arith.constant 0 : index
    %205 = vector.load %arg8[%c0_100, %c4, %c0_101, %c0_102] : memref<2x8x32x32xf32, #tpu.memory_space<vmem>>, vector<1x1x32x32xf32>
    %206 = vector.shape_cast %205 : vector<1x1x32x32xf32> to vector<32x32xf32>
    %c0_103 = arith.constant 0 : index
    %c4_104 = arith.constant 4 : index
    %c0_105 = arith.constant 0 : index
    %c0_106 = arith.constant 0 : index
    %207 = vector.load %arg9[%c0_103, %c4_104, %c0_105, %c0_106] : memref<2x8x1x32xf32, #tpu.memory_space<vmem>>, vector<1x1x1x32xf32>
    %208 = vector.shape_cast %207 : vector<1x1x1x32xf32> to vector<1x32xf32>
    %c0_107 = arith.constant 0 : index
    %c5 = arith.constant 5 : index
    %c0_108 = arith.constant 0 : index
    %c0_109 = arith.constant 0 : index
    %209 = vector.load %arg8[%c0_107, %c5, %c0_108, %c0_109] : memref<2x8x32x32xf32, #tpu.memory_space<vmem>>, vector<1x1x32x32xf32>
    %210 = vector.shape_cast %209 : vector<1x1x32x32xf32> to vector<32x32xf32>
    %c0_110 = arith.constant 0 : index
    %c5_111 = arith.constant 5 : index
    %c0_112 = arith.constant 0 : index
    %c0_113 = arith.constant 0 : index
    %211 = vector.load %arg9[%c0_110, %c5_111, %c0_112, %c0_113] : memref<2x8x1x32xf32, #tpu.memory_space<vmem>>, vector<1x1x1x32xf32>
    %212 = vector.shape_cast %211 : vector<1x1x1x32xf32> to vector<1x32xf32>
    %c0_114 = arith.constant 0 : index
    %c6 = arith.constant 6 : index
    %c0_115 = arith.constant 0 : index
    %c0_116 = arith.constant 0 : index
    %213 = vector.load %arg8[%c0_114, %c6, %c0_115, %c0_116] : memref<2x8x32x32xf32, #tpu.memory_space<vmem>>, vector<1x1x32x32xf32>
    %214 = vector.shape_cast %213 : vector<1x1x32x32xf32> to vector<32x32xf32>
    %c0_117 = arith.constant 0 : index
    %c6_118 = arith.constant 6 : index
    %c0_119 = arith.constant 0 : index
    %c0_120 = arith.constant 0 : index
    %215 = vector.load %arg9[%c0_117, %c6_118, %c0_119, %c0_120] : memref<2x8x1x32xf32, #tpu.memory_space<vmem>>, vector<1x1x1x32xf32>
    %216 = vector.shape_cast %215 : vector<1x1x1x32xf32> to vector<1x32xf32>
    %c0_121 = arith.constant 0 : index
    %c7 = arith.constant 7 : index
    %c0_122 = arith.constant 0 : index
    %c0_123 = arith.constant 0 : index
    %217 = vector.load %arg8[%c0_121, %c7, %c0_122, %c0_123] : memref<2x8x32x32xf32, #tpu.memory_space<vmem>>, vector<1x1x32x32xf32>
    %218 = vector.shape_cast %217 : vector<1x1x32x32xf32> to vector<32x32xf32>
    %c0_124 = arith.constant 0 : index
    %c7_125 = arith.constant 7 : index
    %c0_126 = arith.constant 0 : index
    %c0_127 = arith.constant 0 : index
    %219 = vector.load %arg9[%c0_124, %c7_125, %c0_126, %c0_127] : memref<2x8x1x32xf32, #tpu.memory_space<vmem>>, vector<1x1x1x32xf32>
    %220 = vector.shape_cast %219 : vector<1x1x1x32xf32> to vector<1x32xf32>
    %cst_128 = arith.constant dense<0.000000e+00> : vector<16x32xf32>
    %221 = tpu.matmul %204, %206, %cst_128 {dimension_numbers = #tpu.dot_dimension_numbers<[1], [0], [0], [1], [0, 0, 1, 1], [], []>} : vector<16x32xf32>, vector<32x32xf32>, vector<16x32xf32> -> vector<16x32xf32>
    %222 = vector.broadcast %208 : vector<1x32xf32> to vector<16x32xf32>
    %223 = arith.addf %221, %222 : vector<16x32xf32>
    %cst_129 = arith.constant dense<0.000000e+00> : vector<16x32xf32>
    %224 = tpu.matmul %30, %210, %cst_129 {dimension_numbers = #tpu.dot_dimension_numbers<[1], [0], [0], [1], [0, 0, 1, 1], [], []>} : vector<16x32xf32>, vector<32x32xf32>, vector<16x32xf32> -> vector<16x32xf32>
    %225 = vector.broadcast %212 : vector<1x32xf32> to vector<16x32xf32>
    %226 = arith.addf %224, %225 : vector<16x32xf32>
    %cst_130 = arith.constant dense<0.000000e+00> : vector<16x32xf32>
    %227 = tpu.matmul %30, %214, %cst_130 {dimension_numbers = #tpu.dot_dimension_numbers<[1], [0], [0], [1], [0, 0, 1, 1], [], []>} : vector<16x32xf32>, vector<32x32xf32>, vector<16x32xf32> -> vector<16x32xf32>
    %228 = vector.broadcast %216 : vector<1x32xf32> to vector<16x32xf32>
    %229 = arith.addf %227, %228 : vector<16x32xf32>
    %cst_131 = arith.constant 0.000000e+00 : f32
    %230 = vector.broadcast %cst_131 : f32 to vector<16x32xf32>
    %231 = vector.broadcast %7 : vector<1x32xf32> to vector<16x32xf32>
    %232 = arith.mulf %223, %231 : vector<16x32xf32>
    %cst_132 = arith.constant dense<0.000000e+00> : vector<16x16xf32>
    %233 = tpu.matmul %232, %226, %cst_132 {dimension_numbers = #tpu.dot_dimension_numbers<[1], [1], [0], [0], [0, 0, 1, 0], [], []>} : vector<16x32xf32>, vector<16x32xf32>, vector<16x16xf32> -> vector<16x16xf32>
    %cst_133 = arith.constant 0.353553385 : f32
    %234 = vector.broadcast %cst_133 : f32 to vector<16x16xf32>
    %235 = arith.mulf %233, %234 : vector<16x16xf32>
    %c0_134 = arith.constant 0 : index
    %c0_135 = arith.constant 0 : index
    %c0_136 = arith.constant 0 : index
    %236 = vector.load %arg3[%c0_134, %c0_135, %c0_136] : memref<4x16x16xf32, #tpu.memory_space<vmem>>, vector<1x16x16xf32>
    %237 = vector.shape_cast %236 : vector<1x16x16xf32> to vector<16x16xf32>
    %238 = arith.addf %235, %237 : vector<16x16xf32>
    %cst_137 = arith.constant dense<0xFF800000> : vector<16xf32>
    %239 = vector.multi_reduction <maximumf>, %238, %cst_137 [1] : vector<16x16xf32> to vector<16xf32>
    %240 = vector.shape_cast %239 : vector<16xf32> to vector<16x1xf32>
    %cst_138 = arith.constant 0xFF800000 : f32
    %241 = vector.broadcast %cst_138 : f32 to vector<16x1xf32>
    %242 = arith.cmpf oeq, %240, %241 : vector<16x1xf32>
    %cst_139 = arith.constant 0.000000e+00 : f32
    %243 = vector.broadcast %cst_139 : f32 to vector<16x1xf32>
    %244 = arith.select %242, %243, %240 : vector<16x1xi1>, vector<16x1xf32>
    %245 = vector.broadcast %244 : vector<16x1xf32> to vector<16x16xf32>
    %246 = arith.subf %238, %245 : vector<16x16xf32>
    %247 = math.exp %246 : vector<16x16xf32>
    %cst_140 = arith.constant dense<0.000000e+00> : vector<16xf32>
    %248 = vector.multi_reduction <add>, %247, %cst_140 [1] : vector<16x16xf32> to vector<16xf32>
    %249 = vector.shape_cast %248 : vector<16xf32> to vector<16x1xf32>
    %cst_141 = arith.constant 0.000000e+00 : f32
    %250 = vector.broadcast %cst_141 : f32 to vector<16x1xf32>
    %251 = arith.cmpf ogt, %249, %250 : vector<16x1xf32>
    %252 = tpu.reciprocal %249 {approx = true} : vector<16x1xf32> -> vector<16x1xf32>
    %cst_142 = arith.constant 0.000000e+00 : f32
    %253 = vector.broadcast %cst_142 : f32 to vector<16x1xf32>
    %254 = arith.select %251, %252, %253 : vector<16x1xi1>, vector<16x1xf32>
    %255 = vector.broadcast %254 : vector<16x1xf32> to vector<16x16xf32>
    %256 = arith.mulf %247, %255 : vector<16x16xf32>
    %257 = vector.broadcast %7 : vector<1x32xf32> to vector<16x32xf32>
    %258 = arith.mulf %229, %257 : vector<16x32xf32>
    %cst_143 = arith.constant dense<0.000000e+00> : vector<16x32xf32>
    %259 = tpu.matmul %256, %258, %cst_143 {dimension_numbers = #tpu.dot_dimension_numbers<[1], [0], [0], [1], [0, 0, 1, 1], [], []>} : vector<16x16xf32>, vector<16x32xf32>, vector<16x32xf32> -> vector<16x32xf32>
    %260 = arith.addf %230, %259 : vector<16x32xf32>
    %261 = vector.broadcast %14 : vector<1x32xf32> to vector<16x32xf32>
    %262 = arith.mulf %223, %261 : vector<16x32xf32>
    %cst_144 = arith.constant dense<0.000000e+00> : vector<16x16xf32>
    %263 = tpu.matmul %262, %226, %cst_144 {dimension_numbers = #tpu.dot_dimension_numbers<[1], [1], [0], [0], [0, 0, 1, 0], [], []>} : vector<16x32xf32>, vector<16x32xf32>, vector<16x16xf32> -> vector<16x16xf32>
    %cst_145 = arith.constant 0.353553385 : f32
    %264 = vector.broadcast %cst_145 : f32 to vector<16x16xf32>
    %265 = arith.mulf %263, %264 : vector<16x16xf32>
    %c1_146 = arith.constant 1 : index
    %c0_147 = arith.constant 0 : index
    %c0_148 = arith.constant 0 : index
    %266 = vector.load %arg3[%c1_146, %c0_147, %c0_148] : memref<4x16x16xf32, #tpu.memory_space<vmem>>, vector<1x16x16xf32>
    %267 = vector.shape_cast %266 : vector<1x16x16xf32> to vector<16x16xf32>
    %268 = arith.addf %265, %267 : vector<16x16xf32>
    %cst_149 = arith.constant dense<0xFF800000> : vector<16xf32>
    %269 = vector.multi_reduction <maximumf>, %268, %cst_149 [1] : vector<16x16xf32> to vector<16xf32>
    %270 = vector.shape_cast %269 : vector<16xf32> to vector<16x1xf32>
    %cst_150 = arith.constant 0xFF800000 : f32
    %271 = vector.broadcast %cst_150 : f32 to vector<16x1xf32>
    %272 = arith.cmpf oeq, %270, %271 : vector<16x1xf32>
    %cst_151 = arith.constant 0.000000e+00 : f32
    %273 = vector.broadcast %cst_151 : f32 to vector<16x1xf32>
    %274 = arith.select %272, %273, %270 : vector<16x1xi1>, vector<16x1xf32>
    %275 = vector.broadcast %274 : vector<16x1xf32> to vector<16x16xf32>
    %276 = arith.subf %268, %275 : vector<16x16xf32>
    %277 = math.exp %276 : vector<16x16xf32>
    %cst_152 = arith.constant dense<0.000000e+00> : vector<16xf32>
    %278 = vector.multi_reduction <add>, %277, %cst_152 [1] : vector<16x16xf32> to vector<16xf32>
    %279 = vector.shape_cast %278 : vector<16xf32> to vector<16x1xf32>
    %cst_153 = arith.constant 0.000000e+00 : f32
    %280 = vector.broadcast %cst_153 : f32 to vector<16x1xf32>
    %281 = arith.cmpf ogt, %279, %280 : vector<16x1xf32>
    %282 = tpu.reciprocal %279 {approx = true} : vector<16x1xf32> -> vector<16x1xf32>
    %cst_154 = arith.constant 0.000000e+00 : f32
    %283 = vector.broadcast %cst_154 : f32 to vector<16x1xf32>
    %284 = arith.select %281, %282, %283 : vector<16x1xi1>, vector<16x1xf32>
    %285 = vector.broadcast %284 : vector<16x1xf32> to vector<16x16xf32>
    %286 = arith.mulf %277, %285 : vector<16x16xf32>
    %287 = vector.broadcast %14 : vector<1x32xf32> to vector<16x32xf32>
    %288 = arith.mulf %229, %287 : vector<16x32xf32>
    %cst_155 = arith.constant dense<0.000000e+00> : vector<16x32xf32>
    %289 = tpu.matmul %286, %288, %cst_155 {dimension_numbers = #tpu.dot_dimension_numbers<[1], [0], [0], [1], [0, 0, 1, 1], [], []>} : vector<16x16xf32>, vector<16x32xf32>, vector<16x32xf32> -> vector<16x32xf32>
    %290 = arith.addf %260, %289 : vector<16x32xf32>
    %291 = vector.broadcast %21 : vector<1x32xf32> to vector<16x32xf32>
    %292 = arith.mulf %223, %291 : vector<16x32xf32>
    %cst_156 = arith.constant dense<0.000000e+00> : vector<16x16xf32>
    %293 = tpu.matmul %292, %226, %cst_156 {dimension_numbers = #tpu.dot_dimension_numbers<[1], [1], [0], [0], [0, 0, 1, 0], [], []>} : vector<16x32xf32>, vector<16x32xf32>, vector<16x16xf32> -> vector<16x16xf32>
    %cst_157 = arith.constant 0.353553385 : f32
    %294 = vector.broadcast %cst_157 : f32 to vector<16x16xf32>
    %295 = arith.mulf %293, %294 : vector<16x16xf32>
    %c2_158 = arith.constant 2 : index
    %c0_159 = arith.constant 0 : index
    %c0_160 = arith.constant 0 : index
    %296 = vector.load %arg3[%c2_158, %c0_159, %c0_160] : memref<4x16x16xf32, #tpu.memory_space<vmem>>, vector<1x16x16xf32>
    %297 = vector.shape_cast %296 : vector<1x16x16xf32> to vector<16x16xf32>
    %298 = arith.addf %295, %297 : vector<16x16xf32>
    %cst_161 = arith.constant dense<0xFF800000> : vector<16xf32>
    %299 = vector.multi_reduction <maximumf>, %298, %cst_161 [1] : vector<16x16xf32> to vector<16xf32>
    %300 = vector.shape_cast %299 : vector<16xf32> to vector<16x1xf32>
    %cst_162 = arith.constant 0xFF800000 : f32
    %301 = vector.broadcast %cst_162 : f32 to vector<16x1xf32>
    %302 = arith.cmpf oeq, %300, %301 : vector<16x1xf32>
    %cst_163 = arith.constant 0.000000e+00 : f32
    %303 = vector.broadcast %cst_163 : f32 to vector<16x1xf32>
    %304 = arith.select %302, %303, %300 : vector<16x1xi1>, vector<16x1xf32>
    %305 = vector.broadcast %304 : vector<16x1xf32> to vector<16x16xf32>
    %306 = arith.subf %298, %305 : vector<16x16xf32>
    %307 = math.exp %306 : vector<16x16xf32>
    %cst_164 = arith.constant dense<0.000000e+00> : vector<16xf32>
    %308 = vector.multi_reduction <add>, %307, %cst_164 [1] : vector<16x16xf32> to vector<16xf32>
    %309 = vector.shape_cast %308 : vector<16xf32> to vector<16x1xf32>
    %cst_165 = arith.constant 0.000000e+00 : f32
    %310 = vector.broadcast %cst_165 : f32 to vector<16x1xf32>
    %311 = arith.cmpf ogt, %309, %310 : vector<16x1xf32>
    %312 = tpu.reciprocal %309 {approx = true} : vector<16x1xf32> -> vector<16x1xf32>
    %cst_166 = arith.constant 0.000000e+00 : f32
    %313 = vector.broadcast %cst_166 : f32 to vector<16x1xf32>
    %314 = arith.select %311, %312, %313 : vector<16x1xi1>, vector<16x1xf32>
    %315 = vector.broadcast %314 : vector<16x1xf32> to vector<16x16xf32>
    %316 = arith.mulf %307, %315 : vector<16x16xf32>
    %317 = vector.broadcast %21 : vector<1x32xf32> to vector<16x32xf32>
    %318 = arith.mulf %229, %317 : vector<16x32xf32>
    %cst_167 = arith.constant dense<0.000000e+00> : vector<16x32xf32>
    %319 = tpu.matmul %316, %318, %cst_167 {dimension_numbers = #tpu.dot_dimension_numbers<[1], [0], [0], [1], [0, 0, 1, 1], [], []>} : vector<16x16xf32>, vector<16x32xf32>, vector<16x32xf32> -> vector<16x32xf32>
    %320 = arith.addf %290, %319 : vector<16x32xf32>
    %321 = vector.broadcast %28 : vector<1x32xf32> to vector<16x32xf32>
    %322 = arith.mulf %223, %321 : vector<16x32xf32>
    %cst_168 = arith.constant dense<0.000000e+00> : vector<16x16xf32>
    %323 = tpu.matmul %322, %226, %cst_168 {dimension_numbers = #tpu.dot_dimension_numbers<[1], [1], [0], [0], [0, 0, 1, 0], [], []>} : vector<16x32xf32>, vector<16x32xf32>, vector<16x16xf32> -> vector<16x16xf32>
    %cst_169 = arith.constant 0.353553385 : f32
    %324 = vector.broadcast %cst_169 : f32 to vector<16x16xf32>
    %325 = arith.mulf %323, %324 : vector<16x16xf32>
    %c3_170 = arith.constant 3 : index
    %c0_171 = arith.constant 0 : index
    %c0_172 = arith.constant 0 : index
    %326 = vector.load %arg3[%c3_170, %c0_171, %c0_172] : memref<4x16x16xf32, #tpu.memory_space<vmem>>, vector<1x16x16xf32>
    %327 = vector.shape_cast %326 : vector<1x16x16xf32> to vector<16x16xf32>
    %328 = arith.addf %325, %327 : vector<16x16xf32>
    %cst_173 = arith.constant dense<0xFF800000> : vector<16xf32>
    %329 = vector.multi_reduction <maximumf>, %328, %cst_173 [1] : vector<16x16xf32> to vector<16xf32>
    %330 = vector.shape_cast %329 : vector<16xf32> to vector<16x1xf32>
    %cst_174 = arith.constant 0xFF800000 : f32
    %331 = vector.broadcast %cst_174 : f32 to vector<16x1xf32>
    %332 = arith.cmpf oeq, %330, %331 : vector<16x1xf32>
    %cst_175 = arith.constant 0.000000e+00 : f32
    %333 = vector.broadcast %cst_175 : f32 to vector<16x1xf32>
    %334 = arith.select %332, %333, %330 : vector<16x1xi1>, vector<16x1xf32>
    %335 = vector.broadcast %334 : vector<16x1xf32> to vector<16x16xf32>
    %336 = arith.subf %328, %335 : vector<16x16xf32>
    %337 = math.exp %336 : vector<16x16xf32>
    %cst_176 = arith.constant dense<0.000000e+00> : vector<16xf32>
    %338 = vector.multi_reduction <add>, %337, %cst_176 [1] : vector<16x16xf32> to vector<16xf32>
    %339 = vector.shape_cast %338 : vector<16xf32> to vector<16x1xf32>
    %cst_177 = arith.constant 0.000000e+00 : f32
    %340 = vector.broadcast %cst_177 : f32 to vector<16x1xf32>
    %341 = arith.cmpf ogt, %339, %340 : vector<16x1xf32>
    %342 = tpu.reciprocal %339 {approx = true} : vector<16x1xf32> -> vector<16x1xf32>
    %cst_178 = arith.constant 0.000000e+00 : f32
    %343 = vector.broadcast %cst_178 : f32 to vector<16x1xf32>
    %344 = arith.select %341, %342, %343 : vector<16x1xi1>, vector<16x1xf32>
    %345 = vector.broadcast %344 : vector<16x1xf32> to vector<16x16xf32>
    %346 = arith.mulf %337, %345 : vector<16x16xf32>
    %347 = vector.broadcast %28 : vector<1x32xf32> to vector<16x32xf32>
    %348 = arith.mulf %229, %347 : vector<16x32xf32>
    %cst_179 = arith.constant dense<0.000000e+00> : vector<16x32xf32>
    %349 = tpu.matmul %346, %348, %cst_179 {dimension_numbers = #tpu.dot_dimension_numbers<[1], [0], [0], [1], [0, 0, 1, 1], [], []>} : vector<16x16xf32>, vector<16x32xf32>, vector<16x32xf32> -> vector<16x32xf32>
    %350 = arith.addf %320, %349 : vector<16x32xf32>
    %cst_180 = arith.constant dense<0.000000e+00> : vector<16x32xf32>
    %351 = tpu.matmul %350, %218, %cst_180 {dimension_numbers = #tpu.dot_dimension_numbers<[1], [0], [0], [1], [0, 0, 1, 1], [], []>} : vector<16x32xf32>, vector<32x32xf32>, vector<16x32xf32> -> vector<16x32xf32>
    %352 = vector.broadcast %220 : vector<1x32xf32> to vector<16x32xf32>
    %353 = arith.addf %351, %352 : vector<16x32xf32>
    %354 = arith.addf %204, %353 : vector<16x32xf32>
    %c0_181 = arith.constant 0 : index
    %c1_182 = arith.constant 1 : index
    %c0_183 = arith.constant 0 : index
    %c0_184 = arith.constant 0 : index
    %355 = vector.load %arg10[%c0_181, %c1_182, %c0_183, %c0_184] : memref<2x3x1x32xf32, #tpu.memory_space<vmem>>, vector<1x1x1x32xf32>
    %356 = vector.shape_cast %355 : vector<1x1x1x32xf32> to vector<1x32xf32>
    %c0_185 = arith.constant 0 : index
    %c1_186 = arith.constant 1 : index
    %c0_187 = arith.constant 0 : index
    %c0_188 = arith.constant 0 : index
    %357 = vector.load %arg11[%c0_185, %c1_186, %c0_187, %c0_188] : memref<2x3x1x32xf32, #tpu.memory_space<vmem>>, vector<1x1x1x32xf32>
    %358 = vector.shape_cast %357 : vector<1x1x1x32xf32> to vector<1x32xf32>
    %cst_189 = arith.constant dense<0.000000e+00> : vector<16xf32>
    %359 = vector.multi_reduction <add>, %354, %cst_189 [1] : vector<16x32xf32> to vector<16xf32>
    %360 = vector.shape_cast %359 : vector<16xf32> to vector<16x1xf32>
    %cst_190 = arith.constant 3.200000e+01 : f32
    %361 = vector.broadcast %cst_190 : f32 to vector<16x1xf32>
    %362 = arith.divf %360, %361 : vector<16x1xf32>
    %363 = vector.broadcast %362 : vector<16x1xf32> to vector<16x32xf32>
    %364 = arith.subf %354, %363 : vector<16x32xf32>
    %365 = arith.mulf %364, %364 : vector<16x32xf32>
    %cst_191 = arith.constant dense<0.000000e+00> : vector<16xf32>
    %366 = vector.multi_reduction <add>, %365, %cst_191 [1] : vector<16x32xf32> to vector<16xf32>
    %367 = vector.shape_cast %366 : vector<16xf32> to vector<16x1xf32>
    %cst_192 = arith.constant 3.200000e+01 : f32
    %368 = vector.broadcast %cst_192 : f32 to vector<16x1xf32>
    %369 = arith.divf %367, %368 : vector<16x1xf32>
    %cst_193 = arith.constant 9.99999974E-6 : f32
    %370 = vector.broadcast %cst_193 : f32 to vector<16x1xf32>
    %371 = arith.addf %369, %370 : vector<16x1xf32>
    %372 = math.rsqrt %371 : vector<16x1xf32>
    %373 = vector.broadcast %372 : vector<16x1xf32> to vector<16x32xf32>
    %374 = arith.mulf %364, %373 : vector<16x32xf32>
    %375 = vector.broadcast %356 : vector<1x32xf32> to vector<16x32xf32>
    %376 = arith.mulf %374, %375 : vector<16x32xf32>
    %377 = vector.broadcast %358 : vector<1x32xf32> to vector<16x32xf32>
    %378 = arith.addf %376, %377 : vector<16x32xf32>
    %c0_194 = arith.constant 0 : index
    %c0_195 = arith.constant 0 : index
    %c0_196 = arith.constant 0 : index
    %379 = vector.load %arg12[%c0_194, %c0_195, %c0_196] : memref<2x32x64xf32, #tpu.memory_space<vmem>>, vector<1x32x64xf32>
    %380 = vector.shape_cast %379 : vector<1x32x64xf32> to vector<32x64xf32>
    %cst_197 = arith.constant dense<0.000000e+00> : vector<16x64xf32>
    %381 = tpu.matmul %378, %380, %cst_197 {dimension_numbers = #tpu.dot_dimension_numbers<[1], [0], [0], [1], [0, 0, 1, 1], [], []>} : vector<16x32xf32>, vector<32x64xf32>, vector<16x64xf32> -> vector<16x64xf32>
    %c0_198 = arith.constant 0 : index
    %c0_199 = arith.constant 0 : index
    %c0_200 = arith.constant 0 : index
    %382 = vector.load %arg13[%c0_198, %c0_199, %c0_200] : memref<2x1x64xf32, #tpu.memory_space<vmem>>, vector<1x1x64xf32>
    %383 = vector.shape_cast %382 : vector<1x1x64xf32> to vector<1x64xf32>
    %384 = vector.broadcast %383 : vector<1x64xf32> to vector<16x64xf32>
    %385 = arith.addf %381, %384 : vector<16x64xf32>
    %cst_201 = arith.constant 5.000000e-01 : f32
    %386 = vector.broadcast %cst_201 : f32 to vector<16x64xf32>
    %387 = arith.mulf %386, %385 : vector<16x64xf32>
    %cst_202 = arith.constant 4.471500e-02 : f32
    %388 = vector.broadcast %cst_202 : f32 to vector<16x64xf32>
    %389 = arith.mulf %388, %385 : vector<16x64xf32>
    %390 = arith.mulf %389, %385 : vector<16x64xf32>
    %391 = arith.mulf %390, %385 : vector<16x64xf32>
    %392 = arith.addf %385, %391 : vector<16x64xf32>
    %cst_203 = arith.constant 0.797884583 : f32
    %393 = vector.broadcast %cst_203 : f32 to vector<16x64xf32>
    %394 = arith.mulf %393, %392 : vector<16x64xf32>
    %395 = math.tanh %394 : vector<16x64xf32>
    %cst_204 = arith.constant 1.000000e+00 : f32
    %396 = vector.broadcast %cst_204 : f32 to vector<16x64xf32>
    %397 = arith.addf %396, %395 : vector<16x64xf32>
    %398 = arith.mulf %387, %397 : vector<16x64xf32>
    %c0_205 = arith.constant 0 : index
    %c0_206 = arith.constant 0 : index
    %c0_207 = arith.constant 0 : index
    %399 = vector.load %arg14[%c0_205, %c0_206, %c0_207] : memref<2x64x32xf32, #tpu.memory_space<vmem>>, vector<1x64x32xf32>
    %400 = vector.shape_cast %399 : vector<1x64x32xf32> to vector<64x32xf32>
    %cst_208 = arith.constant dense<0.000000e+00> : vector<16x32xf32>
    %401 = tpu.matmul %398, %400, %cst_208 {dimension_numbers = #tpu.dot_dimension_numbers<[1], [0], [0], [1], [0, 0, 1, 1], [], []>} : vector<16x64xf32>, vector<64x32xf32>, vector<16x32xf32> -> vector<16x32xf32>
    %c0_209 = arith.constant 0 : index
    %c0_210 = arith.constant 0 : index
    %c0_211 = arith.constant 0 : index
    %402 = vector.load %arg15[%c0_209, %c0_210, %c0_211] : memref<2x1x32xf32, #tpu.memory_space<vmem>>, vector<1x1x32xf32>
    %403 = vector.shape_cast %402 : vector<1x1x32xf32> to vector<1x32xf32>
    %404 = vector.broadcast %403 : vector<1x32xf32> to vector<16x32xf32>
    %405 = arith.addf %401, %404 : vector<16x32xf32>
    %406 = arith.addf %378, %405 : vector<16x32xf32>
    %c0_212 = arith.constant 0 : index
    %c2_213 = arith.constant 2 : index
    %c0_214 = arith.constant 0 : index
    %c0_215 = arith.constant 0 : index
    %407 = vector.load %arg10[%c0_212, %c2_213, %c0_214, %c0_215] : memref<2x3x1x32xf32, #tpu.memory_space<vmem>>, vector<1x1x1x32xf32>
    %408 = vector.shape_cast %407 : vector<1x1x1x32xf32> to vector<1x32xf32>
    %c0_216 = arith.constant 0 : index
    %c2_217 = arith.constant 2 : index
    %c0_218 = arith.constant 0 : index
    %c0_219 = arith.constant 0 : index
    %409 = vector.load %arg11[%c0_216, %c2_217, %c0_218, %c0_219] : memref<2x3x1x32xf32, #tpu.memory_space<vmem>>, vector<1x1x1x32xf32>
    %410 = vector.shape_cast %409 : vector<1x1x1x32xf32> to vector<1x32xf32>
    %cst_220 = arith.constant dense<0.000000e+00> : vector<16xf32>
    %411 = vector.multi_reduction <add>, %406, %cst_220 [1] : vector<16x32xf32> to vector<16xf32>
    %412 = vector.shape_cast %411 : vector<16xf32> to vector<16x1xf32>
    %cst_221 = arith.constant 3.200000e+01 : f32
    %413 = vector.broadcast %cst_221 : f32 to vector<16x1xf32>
    %414 = arith.divf %412, %413 : vector<16x1xf32>
    %415 = vector.broadcast %414 : vector<16x1xf32> to vector<16x32xf32>
    %416 = arith.subf %406, %415 : vector<16x32xf32>
    %417 = arith.mulf %416, %416 : vector<16x32xf32>
    %cst_222 = arith.constant dense<0.000000e+00> : vector<16xf32>
    %418 = vector.multi_reduction <add>, %417, %cst_222 [1] : vector<16x32xf32> to vector<16xf32>
    %419 = vector.shape_cast %418 : vector<16xf32> to vector<16x1xf32>
    %cst_223 = arith.constant 3.200000e+01 : f32
    %420 = vector.broadcast %cst_223 : f32 to vector<16x1xf32>
    %421 = arith.divf %419, %420 : vector<16x1xf32>
    %cst_224 = arith.constant 9.99999974E-6 : f32
    %422 = vector.broadcast %cst_224 : f32 to vector<16x1xf32>
    %423 = arith.addf %421, %422 : vector<16x1xf32>
    %424 = math.rsqrt %423 : vector<16x1xf32>
    %425 = vector.broadcast %424 : vector<16x1xf32> to vector<16x32xf32>
    %426 = arith.mulf %416, %425 : vector<16x32xf32>
    %427 = vector.broadcast %408 : vector<1x32xf32> to vector<16x32xf32>
    %428 = arith.mulf %426, %427 : vector<16x32xf32>
    %429 = vector.broadcast %410 : vector<1x32xf32> to vector<16x32xf32>
    %430 = arith.addf %428, %429 : vector<16x32xf32>
    %c1_225 = arith.constant 1 : index
    %c0_226 = arith.constant 0 : index
    %c0_227 = arith.constant 0 : index
    %c0_228 = arith.constant 0 : index
    %431 = vector.load %arg8[%c1_225, %c0_226, %c0_227, %c0_228] : memref<2x8x32x32xf32, #tpu.memory_space<vmem>>, vector<1x1x32x32xf32>
    %432 = vector.shape_cast %431 : vector<1x1x32x32xf32> to vector<32x32xf32>
    %c1_229 = arith.constant 1 : index
    %c0_230 = arith.constant 0 : index
    %c0_231 = arith.constant 0 : index
    %c0_232 = arith.constant 0 : index
    %433 = vector.load %arg9[%c1_229, %c0_230, %c0_231, %c0_232] : memref<2x8x1x32xf32, #tpu.memory_space<vmem>>, vector<1x1x1x32xf32>
    %434 = vector.shape_cast %433 : vector<1x1x1x32xf32> to vector<1x32xf32>
    %c1_233 = arith.constant 1 : index
    %c1_234 = arith.constant 1 : index
    %c0_235 = arith.constant 0 : index
    %c0_236 = arith.constant 0 : index
    %435 = vector.load %arg8[%c1_233, %c1_234, %c0_235, %c0_236] : memref<2x8x32x32xf32, #tpu.memory_space<vmem>>, vector<1x1x32x32xf32>
    %436 = vector.shape_cast %435 : vector<1x1x32x32xf32> to vector<32x32xf32>
    %c1_237 = arith.constant 1 : index
    %c1_238 = arith.constant 1 : index
    %c0_239 = arith.constant 0 : index
    %c0_240 = arith.constant 0 : index
    %437 = vector.load %arg9[%c1_237, %c1_238, %c0_239, %c0_240] : memref<2x8x1x32xf32, #tpu.memory_space<vmem>>, vector<1x1x1x32xf32>
    %438 = vector.shape_cast %437 : vector<1x1x1x32xf32> to vector<1x32xf32>
    %c1_241 = arith.constant 1 : index
    %c2_242 = arith.constant 2 : index
    %c0_243 = arith.constant 0 : index
    %c0_244 = arith.constant 0 : index
    %439 = vector.load %arg8[%c1_241, %c2_242, %c0_243, %c0_244] : memref<2x8x32x32xf32, #tpu.memory_space<vmem>>, vector<1x1x32x32xf32>
    %440 = vector.shape_cast %439 : vector<1x1x32x32xf32> to vector<32x32xf32>
    %c1_245 = arith.constant 1 : index
    %c2_246 = arith.constant 2 : index
    %c0_247 = arith.constant 0 : index
    %c0_248 = arith.constant 0 : index
    %441 = vector.load %arg9[%c1_245, %c2_246, %c0_247, %c0_248] : memref<2x8x1x32xf32, #tpu.memory_space<vmem>>, vector<1x1x1x32xf32>
    %442 = vector.shape_cast %441 : vector<1x1x1x32xf32> to vector<1x32xf32>
    %c1_249 = arith.constant 1 : index
    %c3_250 = arith.constant 3 : index
    %c0_251 = arith.constant 0 : index
    %c0_252 = arith.constant 0 : index
    %443 = vector.load %arg8[%c1_249, %c3_250, %c0_251, %c0_252] : memref<2x8x32x32xf32, #tpu.memory_space<vmem>>, vector<1x1x32x32xf32>
    %444 = vector.shape_cast %443 : vector<1x1x32x32xf32> to vector<32x32xf32>
    %c1_253 = arith.constant 1 : index
    %c3_254 = arith.constant 3 : index
    %c0_255 = arith.constant 0 : index
    %c0_256 = arith.constant 0 : index
    %445 = vector.load %arg9[%c1_253, %c3_254, %c0_255, %c0_256] : memref<2x8x1x32xf32, #tpu.memory_space<vmem>>, vector<1x1x1x32xf32>
    %446 = vector.shape_cast %445 : vector<1x1x1x32xf32> to vector<1x32xf32>
    %cst_257 = arith.constant dense<0.000000e+00> : vector<16x32xf32>
    %447 = tpu.matmul %430, %432, %cst_257 {dimension_numbers = #tpu.dot_dimension_numbers<[1], [0], [0], [1], [0, 0, 1, 1], [], []>} : vector<16x32xf32>, vector<32x32xf32>, vector<16x32xf32> -> vector<16x32xf32>
    %448 = vector.broadcast %434 : vector<1x32xf32> to vector<16x32xf32>
    %449 = arith.addf %447, %448 : vector<16x32xf32>
    %cst_258 = arith.constant dense<0.000000e+00> : vector<16x32xf32>
    %450 = tpu.matmul %430, %436, %cst_258 {dimension_numbers = #tpu.dot_dimension_numbers<[1], [0], [0], [1], [0, 0, 1, 1], [], []>} : vector<16x32xf32>, vector<32x32xf32>, vector<16x32xf32> -> vector<16x32xf32>
    %451 = vector.broadcast %438 : vector<1x32xf32> to vector<16x32xf32>
    %452 = arith.addf %450, %451 : vector<16x32xf32>
    %cst_259 = arith.constant dense<0.000000e+00> : vector<16x32xf32>
    %453 = tpu.matmul %430, %440, %cst_259 {dimension_numbers = #tpu.dot_dimension_numbers<[1], [0], [0], [1], [0, 0, 1, 1], [], []>} : vector<16x32xf32>, vector<32x32xf32>, vector<16x32xf32> -> vector<16x32xf32>
    %454 = vector.broadcast %442 : vector<1x32xf32> to vector<16x32xf32>
    %455 = arith.addf %453, %454 : vector<16x32xf32>
    %cst_260 = arith.constant 0.000000e+00 : f32
    %456 = vector.broadcast %cst_260 : f32 to vector<16x32xf32>
    %457 = vector.broadcast %7 : vector<1x32xf32> to vector<16x32xf32>
    %458 = arith.mulf %449, %457 : vector<16x32xf32>
    %cst_261 = arith.constant dense<0.000000e+00> : vector<16x16xf32>
    %459 = tpu.matmul %458, %452, %cst_261 {dimension_numbers = #tpu.dot_dimension_numbers<[1], [1], [0], [0], [0, 0, 1, 0], [], []>} : vector<16x32xf32>, vector<16x32xf32>, vector<16x16xf32> -> vector<16x16xf32>
    %cst_262 = arith.constant 0.353553385 : f32
    %460 = vector.broadcast %cst_262 : f32 to vector<16x16xf32>
    %461 = arith.mulf %459, %460 : vector<16x16xf32>
    %c0_263 = arith.constant 0 : index
    %c0_264 = arith.constant 0 : index
    %c0_265 = arith.constant 0 : index
    %462 = vector.load %arg2[%c0_263, %c0_264, %c0_265] : memref<4x16x16xf32, #tpu.memory_space<vmem>>, vector<1x16x16xf32>
    %463 = vector.shape_cast %462 : vector<1x16x16xf32> to vector<16x16xf32>
    %464 = arith.addf %461, %463 : vector<16x16xf32>
    %cst_266 = arith.constant dense<0xFF800000> : vector<16xf32>
    %465 = vector.multi_reduction <maximumf>, %464, %cst_266 [1] : vector<16x16xf32> to vector<16xf32>
    %466 = vector.shape_cast %465 : vector<16xf32> to vector<16x1xf32>
    %cst_267 = arith.constant 0xFF800000 : f32
    %467 = vector.broadcast %cst_267 : f32 to vector<16x1xf32>
    %468 = arith.cmpf oeq, %466, %467 : vector<16x1xf32>
    %cst_268 = arith.constant 0.000000e+00 : f32
    %469 = vector.broadcast %cst_268 : f32 to vector<16x1xf32>
    %470 = arith.select %468, %469, %466 : vector<16x1xi1>, vector<16x1xf32>
    %471 = vector.broadcast %470 : vector<16x1xf32> to vector<16x16xf32>
    %472 = arith.subf %464, %471 : vector<16x16xf32>
    %473 = math.exp %472 : vector<16x16xf32>
    %cst_269 = arith.constant dense<0.000000e+00> : vector<16xf32>
    %474 = vector.multi_reduction <add>, %473, %cst_269 [1] : vector<16x16xf32> to vector<16xf32>
    %475 = vector.shape_cast %474 : vector<16xf32> to vector<16x1xf32>
    %cst_270 = arith.constant 0.000000e+00 : f32
    %476 = vector.broadcast %cst_270 : f32 to vector<16x1xf32>
    %477 = arith.cmpf ogt, %475, %476 : vector<16x1xf32>
    %478 = tpu.reciprocal %475 {approx = true} : vector<16x1xf32> -> vector<16x1xf32>
    %cst_271 = arith.constant 0.000000e+00 : f32
    %479 = vector.broadcast %cst_271 : f32 to vector<16x1xf32>
    %480 = arith.select %477, %478, %479 : vector<16x1xi1>, vector<16x1xf32>
    %481 = vector.broadcast %480 : vector<16x1xf32> to vector<16x16xf32>
    %482 = arith.mulf %473, %481 : vector<16x16xf32>
    %483 = vector.broadcast %7 : vector<1x32xf32> to vector<16x32xf32>
    %484 = arith.mulf %455, %483 : vector<16x32xf32>
    %cst_272 = arith.constant dense<0.000000e+00> : vector<16x32xf32>
    %485 = tpu.matmul %482, %484, %cst_272 {dimension_numbers = #tpu.dot_dimension_numbers<[1], [0], [0], [1], [0, 0, 1, 1], [], []>} : vector<16x16xf32>, vector<16x32xf32>, vector<16x32xf32> -> vector<16x32xf32>
    %486 = arith.addf %456, %485 : vector<16x32xf32>
    %487 = vector.broadcast %14 : vector<1x32xf32> to vector<16x32xf32>
    %488 = arith.mulf %449, %487 : vector<16x32xf32>
    %cst_273 = arith.constant dense<0.000000e+00> : vector<16x16xf32>
    %489 = tpu.matmul %488, %452, %cst_273 {dimension_numbers = #tpu.dot_dimension_numbers<[1], [1], [0], [0], [0, 0, 1, 0], [], []>} : vector<16x32xf32>, vector<16x32xf32>, vector<16x16xf32> -> vector<16x16xf32>
    %cst_274 = arith.constant 0.353553385 : f32
    %490 = vector.broadcast %cst_274 : f32 to vector<16x16xf32>
    %491 = arith.mulf %489, %490 : vector<16x16xf32>
    %c1_275 = arith.constant 1 : index
    %c0_276 = arith.constant 0 : index
    %c0_277 = arith.constant 0 : index
    %492 = vector.load %arg2[%c1_275, %c0_276, %c0_277] : memref<4x16x16xf32, #tpu.memory_space<vmem>>, vector<1x16x16xf32>
    %493 = vector.shape_cast %492 : vector<1x16x16xf32> to vector<16x16xf32>
    %494 = arith.addf %491, %493 : vector<16x16xf32>
    %cst_278 = arith.constant dense<0xFF800000> : vector<16xf32>
    %495 = vector.multi_reduction <maximumf>, %494, %cst_278 [1] : vector<16x16xf32> to vector<16xf32>
    %496 = vector.shape_cast %495 : vector<16xf32> to vector<16x1xf32>
    %cst_279 = arith.constant 0xFF800000 : f32
    %497 = vector.broadcast %cst_279 : f32 to vector<16x1xf32>
    %498 = arith.cmpf oeq, %496, %497 : vector<16x1xf32>
    %cst_280 = arith.constant 0.000000e+00 : f32
    %499 = vector.broadcast %cst_280 : f32 to vector<16x1xf32>
    %500 = arith.select %498, %499, %496 : vector<16x1xi1>, vector<16x1xf32>
    %501 = vector.broadcast %500 : vector<16x1xf32> to vector<16x16xf32>
    %502 = arith.subf %494, %501 : vector<16x16xf32>
    %503 = math.exp %502 : vector<16x16xf32>
    %cst_281 = arith.constant dense<0.000000e+00> : vector<16xf32>
    %504 = vector.multi_reduction <add>, %503, %cst_281 [1] : vector<16x16xf32> to vector<16xf32>
    %505 = vector.shape_cast %504 : vector<16xf32> to vector<16x1xf32>
    %cst_282 = arith.constant 0.000000e+00 : f32
    %506 = vector.broadcast %cst_282 : f32 to vector<16x1xf32>
    %507 = arith.cmpf ogt, %505, %506 : vector<16x1xf32>
    %508 = tpu.reciprocal %505 {approx = true} : vector<16x1xf32> -> vector<16x1xf32>
    %cst_283 = arith.constant 0.000000e+00 : f32
    %509 = vector.broadcast %cst_283 : f32 to vector<16x1xf32>
    %510 = arith.select %507, %508, %509 : vector<16x1xi1>, vector<16x1xf32>
    %511 = vector.broadcast %510 : vector<16x1xf32> to vector<16x16xf32>
    %512 = arith.mulf %503, %511 : vector<16x16xf32>
    %513 = vector.broadcast %14 : vector<1x32xf32> to vector<16x32xf32>
    %514 = arith.mulf %455, %513 : vector<16x32xf32>
    %cst_284 = arith.constant dense<0.000000e+00> : vector<16x32xf32>
    %515 = tpu.matmul %512, %514, %cst_284 {dimension_numbers = #tpu.dot_dimension_numbers<[1], [0], [0], [1], [0, 0, 1, 1], [], []>} : vector<16x16xf32>, vector<16x32xf32>, vector<16x32xf32> -> vector<16x32xf32>
    %516 = arith.addf %486, %515 : vector<16x32xf32>
    %517 = vector.broadcast %21 : vector<1x32xf32> to vector<16x32xf32>
    %518 = arith.mulf %449, %517 : vector<16x32xf32>
    %cst_285 = arith.constant dense<0.000000e+00> : vector<16x16xf32>
    %519 = tpu.matmul %518, %452, %cst_285 {dimension_numbers = #tpu.dot_dimension_numbers<[1], [1], [0], [0], [0, 0, 1, 0], [], []>} : vector<16x32xf32>, vector<16x32xf32>, vector<16x16xf32> -> vector<16x16xf32>
    %cst_286 = arith.constant 0.353553385 : f32
    %520 = vector.broadcast %cst_286 : f32 to vector<16x16xf32>
    %521 = arith.mulf %519, %520 : vector<16x16xf32>
    %c2_287 = arith.constant 2 : index
    %c0_288 = arith.constant 0 : index
    %c0_289 = arith.constant 0 : index
    %522 = vector.load %arg2[%c2_287, %c0_288, %c0_289] : memref<4x16x16xf32, #tpu.memory_space<vmem>>, vector<1x16x16xf32>
    %523 = vector.shape_cast %522 : vector<1x16x16xf32> to vector<16x16xf32>
    %524 = arith.addf %521, %523 : vector<16x16xf32>
    %cst_290 = arith.constant dense<0xFF800000> : vector<16xf32>
    %525 = vector.multi_reduction <maximumf>, %524, %cst_290 [1] : vector<16x16xf32> to vector<16xf32>
    %526 = vector.shape_cast %525 : vector<16xf32> to vector<16x1xf32>
    %cst_291 = arith.constant 0xFF800000 : f32
    %527 = vector.broadcast %cst_291 : f32 to vector<16x1xf32>
    %528 = arith.cmpf oeq, %526, %527 : vector<16x1xf32>
    %cst_292 = arith.constant 0.000000e+00 : f32
    %529 = vector.broadcast %cst_292 : f32 to vector<16x1xf32>
    %530 = arith.select %528, %529, %526 : vector<16x1xi1>, vector<16x1xf32>
    %531 = vector.broadcast %530 : vector<16x1xf32> to vector<16x16xf32>
    %532 = arith.subf %524, %531 : vector<16x16xf32>
    %533 = math.exp %532 : vector<16x16xf32>
    %cst_293 = arith.constant dense<0.000000e+00> : vector<16xf32>
    %534 = vector.multi_reduction <add>, %533, %cst_293 [1] : vector<16x16xf32> to vector<16xf32>
    %535 = vector.shape_cast %534 : vector<16xf32> to vector<16x1xf32>
    %cst_294 = arith.constant 0.000000e+00 : f32
    %536 = vector.broadcast %cst_294 : f32 to vector<16x1xf32>
    %537 = arith.cmpf ogt, %535, %536 : vector<16x1xf32>
    %538 = tpu.reciprocal %535 {approx = true} : vector<16x1xf32> -> vector<16x1xf32>
    %cst_295 = arith.constant 0.000000e+00 : f32
    %539 = vector.broadcast %cst_295 : f32 to vector<16x1xf32>
    %540 = arith.select %537, %538, %539 : vector<16x1xi1>, vector<16x1xf32>
    %541 = vector.broadcast %540 : vector<16x1xf32> to vector<16x16xf32>
    %542 = arith.mulf %533, %541 : vector<16x16xf32>
    %543 = vector.broadcast %21 : vector<1x32xf32> to vector<16x32xf32>
    %544 = arith.mulf %455, %543 : vector<16x32xf32>
    %cst_296 = arith.constant dense<0.000000e+00> : vector<16x32xf32>
    %545 = tpu.matmul %542, %544, %cst_296 {dimension_numbers = #tpu.dot_dimension_numbers<[1], [0], [0], [1], [0, 0, 1, 1], [], []>} : vector<16x16xf32>, vector<16x32xf32>, vector<16x32xf32> -> vector<16x32xf32>
    %546 = arith.addf %516, %545 : vector<16x32xf32>
    %547 = vector.broadcast %28 : vector<1x32xf32> to vector<16x32xf32>
    %548 = arith.mulf %449, %547 : vector<16x32xf32>
    %cst_297 = arith.constant dense<0.000000e+00> : vector<16x16xf32>
    %549 = tpu.matmul %548, %452, %cst_297 {dimension_numbers = #tpu.dot_dimension_numbers<[1], [1], [0], [0], [0, 0, 1, 0], [], []>} : vector<16x32xf32>, vector<16x32xf32>, vector<16x16xf32> -> vector<16x16xf32>
    %cst_298 = arith.constant 0.353553385 : f32
    %550 = vector.broadcast %cst_298 : f32 to vector<16x16xf32>
    %551 = arith.mulf %549, %550 : vector<16x16xf32>
    %c3_299 = arith.constant 3 : index
    %c0_300 = arith.constant 0 : index
    %c0_301 = arith.constant 0 : index
    %552 = vector.load %arg2[%c3_299, %c0_300, %c0_301] : memref<4x16x16xf32, #tpu.memory_space<vmem>>, vector<1x16x16xf32>
    %553 = vector.shape_cast %552 : vector<1x16x16xf32> to vector<16x16xf32>
    %554 = arith.addf %551, %553 : vector<16x16xf32>
    %cst_302 = arith.constant dense<0xFF800000> : vector<16xf32>
    %555 = vector.multi_reduction <maximumf>, %554, %cst_302 [1] : vector<16x16xf32> to vector<16xf32>
    %556 = vector.shape_cast %555 : vector<16xf32> to vector<16x1xf32>
    %cst_303 = arith.constant 0xFF800000 : f32
    %557 = vector.broadcast %cst_303 : f32 to vector<16x1xf32>
    %558 = arith.cmpf oeq, %556, %557 : vector<16x1xf32>
    %cst_304 = arith.constant 0.000000e+00 : f32
    %559 = vector.broadcast %cst_304 : f32 to vector<16x1xf32>
    %560 = arith.select %558, %559, %556 : vector<16x1xi1>, vector<16x1xf32>
    %561 = vector.broadcast %560 : vector<16x1xf32> to vector<16x16xf32>
    %562 = arith.subf %554, %561 : vector<16x16xf32>
    %563 = math.exp %562 : vector<16x16xf32>
    %cst_305 = arith.constant dense<0.000000e+00> : vector<16xf32>
    %564 = vector.multi_reduction <add>, %563, %cst_305 [1] : vector<16x16xf32> to vector<16xf32>
    %565 = vector.shape_cast %564 : vector<16xf32> to vector<16x1xf32>
    %cst_306 = arith.constant 0.000000e+00 : f32
    %566 = vector.broadcast %cst_306 : f32 to vector<16x1xf32>
    %567 = arith.cmpf ogt, %565, %566 : vector<16x1xf32>
    %568 = tpu.reciprocal %565 {approx = true} : vector<16x1xf32> -> vector<16x1xf32>
    %cst_307 = arith.constant 0.000000e+00 : f32
    %569 = vector.broadcast %cst_307 : f32 to vector<16x1xf32>
    %570 = arith.select %567, %568, %569 : vector<16x1xi1>, vector<16x1xf32>
    %571 = vector.broadcast %570 : vector<16x1xf32> to vector<16x16xf32>
    %572 = arith.mulf %563, %571 : vector<16x16xf32>
    %573 = vector.broadcast %28 : vector<1x32xf32> to vector<16x32xf32>
    %574 = arith.mulf %455, %573 : vector<16x32xf32>
    %cst_308 = arith.constant dense<0.000000e+00> : vector<16x32xf32>
    %575 = tpu.matmul %572, %574, %cst_308 {dimension_numbers = #tpu.dot_dimension_numbers<[1], [0], [0], [1], [0, 0, 1, 1], [], []>} : vector<16x16xf32>, vector<16x32xf32>, vector<16x32xf32> -> vector<16x32xf32>
    %576 = arith.addf %546, %575 : vector<16x32xf32>
    %cst_309 = arith.constant dense<0.000000e+00> : vector<16x32xf32>
    %577 = tpu.matmul %576, %444, %cst_309 {dimension_numbers = #tpu.dot_dimension_numbers<[1], [0], [0], [1], [0, 0, 1, 1], [], []>} : vector<16x32xf32>, vector<32x32xf32>, vector<16x32xf32> -> vector<16x32xf32>
    %578 = vector.broadcast %446 : vector<1x32xf32> to vector<16x32xf32>
    %579 = arith.addf %577, %578 : vector<16x32xf32>
    %580 = arith.addf %430, %579 : vector<16x32xf32>
    %c1_310 = arith.constant 1 : index
    %c0_311 = arith.constant 0 : index
    %c0_312 = arith.constant 0 : index
    %c0_313 = arith.constant 0 : index
    %581 = vector.load %arg10[%c1_310, %c0_311, %c0_312, %c0_313] : memref<2x3x1x32xf32, #tpu.memory_space<vmem>>, vector<1x1x1x32xf32>
    %582 = vector.shape_cast %581 : vector<1x1x1x32xf32> to vector<1x32xf32>
    %c1_314 = arith.constant 1 : index
    %c0_315 = arith.constant 0 : index
    %c0_316 = arith.constant 0 : index
    %c0_317 = arith.constant 0 : index
    %583 = vector.load %arg11[%c1_314, %c0_315, %c0_316, %c0_317] : memref<2x3x1x32xf32, #tpu.memory_space<vmem>>, vector<1x1x1x32xf32>
    %584 = vector.shape_cast %583 : vector<1x1x1x32xf32> to vector<1x32xf32>
    %cst_318 = arith.constant dense<0.000000e+00> : vector<16xf32>
    %585 = vector.multi_reduction <add>, %580, %cst_318 [1] : vector<16x32xf32> to vector<16xf32>
    %586 = vector.shape_cast %585 : vector<16xf32> to vector<16x1xf32>
    %cst_319 = arith.constant 3.200000e+01 : f32
    %587 = vector.broadcast %cst_319 : f32 to vector<16x1xf32>
    %588 = arith.divf %586, %587 : vector<16x1xf32>
    %589 = vector.broadcast %588 : vector<16x1xf32> to vector<16x32xf32>
    %590 = arith.subf %580, %589 : vector<16x32xf32>
    %591 = arith.mulf %590, %590 : vector<16x32xf32>
    %cst_320 = arith.constant dense<0.000000e+00> : vector<16xf32>
    %592 = vector.multi_reduction <add>, %591, %cst_320 [1] : vector<16x32xf32> to vector<16xf32>
    %593 = vector.shape_cast %592 : vector<16xf32> to vector<16x1xf32>
    %cst_321 = arith.constant 3.200000e+01 : f32
    %594 = vector.broadcast %cst_321 : f32 to vector<16x1xf32>
    %595 = arith.divf %593, %594 : vector<16x1xf32>
    %cst_322 = arith.constant 9.99999974E-6 : f32
    %596 = vector.broadcast %cst_322 : f32 to vector<16x1xf32>
    %597 = arith.addf %595, %596 : vector<16x1xf32>
    %598 = math.rsqrt %597 : vector<16x1xf32>
    %599 = vector.broadcast %598 : vector<16x1xf32> to vector<16x32xf32>
    %600 = arith.mulf %590, %599 : vector<16x32xf32>
    %601 = vector.broadcast %582 : vector<1x32xf32> to vector<16x32xf32>
    %602 = arith.mulf %600, %601 : vector<16x32xf32>
    %603 = vector.broadcast %584 : vector<1x32xf32> to vector<16x32xf32>
    %604 = arith.addf %602, %603 : vector<16x32xf32>
    %c1_323 = arith.constant 1 : index
    %c4_324 = arith.constant 4 : index
    %c0_325 = arith.constant 0 : index
    %c0_326 = arith.constant 0 : index
    %605 = vector.load %arg8[%c1_323, %c4_324, %c0_325, %c0_326] : memref<2x8x32x32xf32, #tpu.memory_space<vmem>>, vector<1x1x32x32xf32>
    %606 = vector.shape_cast %605 : vector<1x1x32x32xf32> to vector<32x32xf32>
    %c1_327 = arith.constant 1 : index
    %c4_328 = arith.constant 4 : index
    %c0_329 = arith.constant 0 : index
    %c0_330 = arith.constant 0 : index
    %607 = vector.load %arg9[%c1_327, %c4_328, %c0_329, %c0_330] : memref<2x8x1x32xf32, #tpu.memory_space<vmem>>, vector<1x1x1x32xf32>
    %608 = vector.shape_cast %607 : vector<1x1x1x32xf32> to vector<1x32xf32>
    %c1_331 = arith.constant 1 : index
    %c5_332 = arith.constant 5 : index
    %c0_333 = arith.constant 0 : index
    %c0_334 = arith.constant 0 : index
    %609 = vector.load %arg8[%c1_331, %c5_332, %c0_333, %c0_334] : memref<2x8x32x32xf32, #tpu.memory_space<vmem>>, vector<1x1x32x32xf32>
    %610 = vector.shape_cast %609 : vector<1x1x32x32xf32> to vector<32x32xf32>
    %c1_335 = arith.constant 1 : index
    %c5_336 = arith.constant 5 : index
    %c0_337 = arith.constant 0 : index
    %c0_338 = arith.constant 0 : index
    %611 = vector.load %arg9[%c1_335, %c5_336, %c0_337, %c0_338] : memref<2x8x1x32xf32, #tpu.memory_space<vmem>>, vector<1x1x1x32xf32>
    %612 = vector.shape_cast %611 : vector<1x1x1x32xf32> to vector<1x32xf32>
    %c1_339 = arith.constant 1 : index
    %c6_340 = arith.constant 6 : index
    %c0_341 = arith.constant 0 : index
    %c0_342 = arith.constant 0 : index
    %613 = vector.load %arg8[%c1_339, %c6_340, %c0_341, %c0_342] : memref<2x8x32x32xf32, #tpu.memory_space<vmem>>, vector<1x1x32x32xf32>
    %614 = vector.shape_cast %613 : vector<1x1x32x32xf32> to vector<32x32xf32>
    %c1_343 = arith.constant 1 : index
    %c6_344 = arith.constant 6 : index
    %c0_345 = arith.constant 0 : index
    %c0_346 = arith.constant 0 : index
    %615 = vector.load %arg9[%c1_343, %c6_344, %c0_345, %c0_346] : memref<2x8x1x32xf32, #tpu.memory_space<vmem>>, vector<1x1x1x32xf32>
    %616 = vector.shape_cast %615 : vector<1x1x1x32xf32> to vector<1x32xf32>
    %c1_347 = arith.constant 1 : index
    %c7_348 = arith.constant 7 : index
    %c0_349 = arith.constant 0 : index
    %c0_350 = arith.constant 0 : index
    %617 = vector.load %arg8[%c1_347, %c7_348, %c0_349, %c0_350] : memref<2x8x32x32xf32, #tpu.memory_space<vmem>>, vector<1x1x32x32xf32>
    %618 = vector.shape_cast %617 : vector<1x1x32x32xf32> to vector<32x32xf32>
    %c1_351 = arith.constant 1 : index
    %c7_352 = arith.constant 7 : index
    %c0_353 = arith.constant 0 : index
    %c0_354 = arith.constant 0 : index
    %619 = vector.load %arg9[%c1_351, %c7_352, %c0_353, %c0_354] : memref<2x8x1x32xf32, #tpu.memory_space<vmem>>, vector<1x1x1x32xf32>
    %620 = vector.shape_cast %619 : vector<1x1x1x32xf32> to vector<1x32xf32>
    %cst_355 = arith.constant dense<0.000000e+00> : vector<16x32xf32>
    %621 = tpu.matmul %604, %606, %cst_355 {dimension_numbers = #tpu.dot_dimension_numbers<[1], [0], [0], [1], [0, 0, 1, 1], [], []>} : vector<16x32xf32>, vector<32x32xf32>, vector<16x32xf32> -> vector<16x32xf32>
    %622 = vector.broadcast %608 : vector<1x32xf32> to vector<16x32xf32>
    %623 = arith.addf %621, %622 : vector<16x32xf32>
    %cst_356 = arith.constant dense<0.000000e+00> : vector<16x32xf32>
    %624 = tpu.matmul %30, %610, %cst_356 {dimension_numbers = #tpu.dot_dimension_numbers<[1], [0], [0], [1], [0, 0, 1, 1], [], []>} : vector<16x32xf32>, vector<32x32xf32>, vector<16x32xf32> -> vector<16x32xf32>
    %625 = vector.broadcast %612 : vector<1x32xf32> to vector<16x32xf32>
    %626 = arith.addf %624, %625 : vector<16x32xf32>
    %cst_357 = arith.constant dense<0.000000e+00> : vector<16x32xf32>
    %627 = tpu.matmul %30, %614, %cst_357 {dimension_numbers = #tpu.dot_dimension_numbers<[1], [0], [0], [1], [0, 0, 1, 1], [], []>} : vector<16x32xf32>, vector<32x32xf32>, vector<16x32xf32> -> vector<16x32xf32>
    %628 = vector.broadcast %616 : vector<1x32xf32> to vector<16x32xf32>
    %629 = arith.addf %627, %628 : vector<16x32xf32>
    %cst_358 = arith.constant 0.000000e+00 : f32
    %630 = vector.broadcast %cst_358 : f32 to vector<16x32xf32>
    %631 = vector.broadcast %7 : vector<1x32xf32> to vector<16x32xf32>
    %632 = arith.mulf %623, %631 : vector<16x32xf32>
    %cst_359 = arith.constant dense<0.000000e+00> : vector<16x16xf32>
    %633 = tpu.matmul %632, %626, %cst_359 {dimension_numbers = #tpu.dot_dimension_numbers<[1], [1], [0], [0], [0, 0, 1, 0], [], []>} : vector<16x32xf32>, vector<16x32xf32>, vector<16x16xf32> -> vector<16x16xf32>
    %cst_360 = arith.constant 0.353553385 : f32
    %634 = vector.broadcast %cst_360 : f32 to vector<16x16xf32>
    %635 = arith.mulf %633, %634 : vector<16x16xf32>
    %c0_361 = arith.constant 0 : index
    %c0_362 = arith.constant 0 : index
    %c0_363 = arith.constant 0 : index
    %636 = vector.load %arg3[%c0_361, %c0_362, %c0_363] : memref<4x16x16xf32, #tpu.memory_space<vmem>>, vector<1x16x16xf32>
    %637 = vector.shape_cast %636 : vector<1x16x16xf32> to vector<16x16xf32>
    %638 = arith.addf %635, %637 : vector<16x16xf32>
    %cst_364 = arith.constant dense<0xFF800000> : vector<16xf32>
    %639 = vector.multi_reduction <maximumf>, %638, %cst_364 [1] : vector<16x16xf32> to vector<16xf32>
    %640 = vector.shape_cast %639 : vector<16xf32> to vector<16x1xf32>
    %cst_365 = arith.constant 0xFF800000 : f32
    %641 = vector.broadcast %cst_365 : f32 to vector<16x1xf32>
    %642 = arith.cmpf oeq, %640, %641 : vector<16x1xf32>
    %cst_366 = arith.constant 0.000000e+00 : f32
    %643 = vector.broadcast %cst_366 : f32 to vector<16x1xf32>
    %644 = arith.select %642, %643, %640 : vector<16x1xi1>, vector<16x1xf32>
    %645 = vector.broadcast %644 : vector<16x1xf32> to vector<16x16xf32>
    %646 = arith.subf %638, %645 : vector<16x16xf32>
    %647 = math.exp %646 : vector<16x16xf32>
    %cst_367 = arith.constant dense<0.000000e+00> : vector<16xf32>
    %648 = vector.multi_reduction <add>, %647, %cst_367 [1] : vector<16x16xf32> to vector<16xf32>
    %649 = vector.shape_cast %648 : vector<16xf32> to vector<16x1xf32>
    %cst_368 = arith.constant 0.000000e+00 : f32
    %650 = vector.broadcast %cst_368 : f32 to vector<16x1xf32>
    %651 = arith.cmpf ogt, %649, %650 : vector<16x1xf32>
    %652 = tpu.reciprocal %649 {approx = true} : vector<16x1xf32> -> vector<16x1xf32>
    %cst_369 = arith.constant 0.000000e+00 : f32
    %653 = vector.broadcast %cst_369 : f32 to vector<16x1xf32>
    %654 = arith.select %651, %652, %653 : vector<16x1xi1>, vector<16x1xf32>
    %655 = vector.broadcast %654 : vector<16x1xf32> to vector<16x16xf32>
    %656 = arith.mulf %647, %655 : vector<16x16xf32>
    %657 = vector.broadcast %7 : vector<1x32xf32> to vector<16x32xf32>
    %658 = arith.mulf %629, %657 : vector<16x32xf32>
    %cst_370 = arith.constant dense<0.000000e+00> : vector<16x32xf32>
    %659 = tpu.matmul %656, %658, %cst_370 {dimension_numbers = #tpu.dot_dimension_numbers<[1], [0], [0], [1], [0, 0, 1, 1], [], []>} : vector<16x16xf32>, vector<16x32xf32>, vector<16x32xf32> -> vector<16x32xf32>
    %660 = arith.addf %630, %659 : vector<16x32xf32>
    %661 = vector.broadcast %14 : vector<1x32xf32> to vector<16x32xf32>
    %662 = arith.mulf %623, %661 : vector<16x32xf32>
    %cst_371 = arith.constant dense<0.000000e+00> : vector<16x16xf32>
    %663 = tpu.matmul %662, %626, %cst_371 {dimension_numbers = #tpu.dot_dimension_numbers<[1], [1], [0], [0], [0, 0, 1, 0], [], []>} : vector<16x32xf32>, vector<16x32xf32>, vector<16x16xf32> -> vector<16x16xf32>
    %cst_372 = arith.constant 0.353553385 : f32
    %664 = vector.broadcast %cst_372 : f32 to vector<16x16xf32>
    %665 = arith.mulf %663, %664 : vector<16x16xf32>
    %c1_373 = arith.constant 1 : index
    %c0_374 = arith.constant 0 : index
    %c0_375 = arith.constant 0 : index
    %666 = vector.load %arg3[%c1_373, %c0_374, %c0_375] : memref<4x16x16xf32, #tpu.memory_space<vmem>>, vector<1x16x16xf32>
    %667 = vector.shape_cast %666 : vector<1x16x16xf32> to vector<16x16xf32>
    %668 = arith.addf %665, %667 : vector<16x16xf32>
    %cst_376 = arith.constant dense<0xFF800000> : vector<16xf32>
    %669 = vector.multi_reduction <maximumf>, %668, %cst_376 [1] : vector<16x16xf32> to vector<16xf32>
    %670 = vector.shape_cast %669 : vector<16xf32> to vector<16x1xf32>
    %cst_377 = arith.constant 0xFF800000 : f32
    %671 = vector.broadcast %cst_377 : f32 to vector<16x1xf32>
    %672 = arith.cmpf oeq, %670, %671 : vector<16x1xf32>
    %cst_378 = arith.constant 0.000000e+00 : f32
    %673 = vector.broadcast %cst_378 : f32 to vector<16x1xf32>
    %674 = arith.select %672, %673, %670 : vector<16x1xi1>, vector<16x1xf32>
    %675 = vector.broadcast %674 : vector<16x1xf32> to vector<16x16xf32>
    %676 = arith.subf %668, %675 : vector<16x16xf32>
    %677 = math.exp %676 : vector<16x16xf32>
    %cst_379 = arith.constant dense<0.000000e+00> : vector<16xf32>
    %678 = vector.multi_reduction <add>, %677, %cst_379 [1] : vector<16x16xf32> to vector<16xf32>
    %679 = vector.shape_cast %678 : vector<16xf32> to vector<16x1xf32>
    %cst_380 = arith.constant 0.000000e+00 : f32
    %680 = vector.broadcast %cst_380 : f32 to vector<16x1xf32>
    %681 = arith.cmpf ogt, %679, %680 : vector<16x1xf32>
    %682 = tpu.reciprocal %679 {approx = true} : vector<16x1xf32> -> vector<16x1xf32>
    %cst_381 = arith.constant 0.000000e+00 : f32
    %683 = vector.broadcast %cst_381 : f32 to vector<16x1xf32>
    %684 = arith.select %681, %682, %683 : vector<16x1xi1>, vector<16x1xf32>
    %685 = vector.broadcast %684 : vector<16x1xf32> to vector<16x16xf32>
    %686 = arith.mulf %677, %685 : vector<16x16xf32>
    %687 = vector.broadcast %14 : vector<1x32xf32> to vector<16x32xf32>
    %688 = arith.mulf %629, %687 : vector<16x32xf32>
    %cst_382 = arith.constant dense<0.000000e+00> : vector<16x32xf32>
    %689 = tpu.matmul %686, %688, %cst_382 {dimension_numbers = #tpu.dot_dimension_numbers<[1], [0], [0], [1], [0, 0, 1, 1], [], []>} : vector<16x16xf32>, vector<16x32xf32>, vector<16x32xf32> -> vector<16x32xf32>
    %690 = arith.addf %660, %689 : vector<16x32xf32>
    %691 = vector.broadcast %21 : vector<1x32xf32> to vector<16x32xf32>
    %692 = arith.mulf %623, %691 : vector<16x32xf32>
    %cst_383 = arith.constant dense<0.000000e+00> : vector<16x16xf32>
    %693 = tpu.matmul %692, %626, %cst_383 {dimension_numbers = #tpu.dot_dimension_numbers<[1], [1], [0], [0], [0, 0, 1, 0], [], []>} : vector<16x32xf32>, vector<16x32xf32>, vector<16x16xf32> -> vector<16x16xf32>
    %cst_384 = arith.constant 0.353553385 : f32
    %694 = vector.broadcast %cst_384 : f32 to vector<16x16xf32>
    %695 = arith.mulf %693, %694 : vector<16x16xf32>
    %c2_385 = arith.constant 2 : index
    %c0_386 = arith.constant 0 : index
    %c0_387 = arith.constant 0 : index
    %696 = vector.load %arg3[%c2_385, %c0_386, %c0_387] : memref<4x16x16xf32, #tpu.memory_space<vmem>>, vector<1x16x16xf32>
    %697 = vector.shape_cast %696 : vector<1x16x16xf32> to vector<16x16xf32>
    %698 = arith.addf %695, %697 : vector<16x16xf32>
    %cst_388 = arith.constant dense<0xFF800000> : vector<16xf32>
    %699 = vector.multi_reduction <maximumf>, %698, %cst_388 [1] : vector<16x16xf32> to vector<16xf32>
    %700 = vector.shape_cast %699 : vector<16xf32> to vector<16x1xf32>
    %cst_389 = arith.constant 0xFF800000 : f32
    %701 = vector.broadcast %cst_389 : f32 to vector<16x1xf32>
    %702 = arith.cmpf oeq, %700, %701 : vector<16x1xf32>
    %cst_390 = arith.constant 0.000000e+00 : f32
    %703 = vector.broadcast %cst_390 : f32 to vector<16x1xf32>
    %704 = arith.select %702, %703, %700 : vector<16x1xi1>, vector<16x1xf32>
    %705 = vector.broadcast %704 : vector<16x1xf32> to vector<16x16xf32>
    %706 = arith.subf %698, %705 : vector<16x16xf32>
    %707 = math.exp %706 : vector<16x16xf32>
    %cst_391 = arith.constant dense<0.000000e+00> : vector<16xf32>
    %708 = vector.multi_reduction <add>, %707, %cst_391 [1] : vector<16x16xf32> to vector<16xf32>
    %709 = vector.shape_cast %708 : vector<16xf32> to vector<16x1xf32>
    %cst_392 = arith.constant 0.000000e+00 : f32
    %710 = vector.broadcast %cst_392 : f32 to vector<16x1xf32>
    %711 = arith.cmpf ogt, %709, %710 : vector<16x1xf32>
    %712 = tpu.reciprocal %709 {approx = true} : vector<16x1xf32> -> vector<16x1xf32>
    %cst_393 = arith.constant 0.000000e+00 : f32
    %713 = vector.broadcast %cst_393 : f32 to vector<16x1xf32>
    %714 = arith.select %711, %712, %713 : vector<16x1xi1>, vector<16x1xf32>
    %715 = vector.broadcast %714 : vector<16x1xf32> to vector<16x16xf32>
    %716 = arith.mulf %707, %715 : vector<16x16xf32>
    %717 = vector.broadcast %21 : vector<1x32xf32> to vector<16x32xf32>
    %718 = arith.mulf %629, %717 : vector<16x32xf32>
    %cst_394 = arith.constant dense<0.000000e+00> : vector<16x32xf32>
    %719 = tpu.matmul %716, %718, %cst_394 {dimension_numbers = #tpu.dot_dimension_numbers<[1], [0], [0], [1], [0, 0, 1, 1], [], []>} : vector<16x16xf32>, vector<16x32xf32>, vector<16x32xf32> -> vector<16x32xf32>
    %720 = arith.addf %690, %719 : vector<16x32xf32>
    %721 = vector.broadcast %28 : vector<1x32xf32> to vector<16x32xf32>
    %722 = arith.mulf %623, %721 : vector<16x32xf32>
    %cst_395 = arith.constant dense<0.000000e+00> : vector<16x16xf32>
    %723 = tpu.matmul %722, %626, %cst_395 {dimension_numbers = #tpu.dot_dimension_numbers<[1], [1], [0], [0], [0, 0, 1, 0], [], []>} : vector<16x32xf32>, vector<16x32xf32>, vector<16x16xf32> -> vector<16x16xf32>
    %cst_396 = arith.constant 0.353553385 : f32
    %724 = vector.broadcast %cst_396 : f32 to vector<16x16xf32>
    %725 = arith.mulf %723, %724 : vector<16x16xf32>
    %c3_397 = arith.constant 3 : index
    %c0_398 = arith.constant 0 : index
    %c0_399 = arith.constant 0 : index
    %726 = vector.load %arg3[%c3_397, %c0_398, %c0_399] : memref<4x16x16xf32, #tpu.memory_space<vmem>>, vector<1x16x16xf32>
    %727 = vector.shape_cast %726 : vector<1x16x16xf32> to vector<16x16xf32>
    %728 = arith.addf %725, %727 : vector<16x16xf32>
    %cst_400 = arith.constant dense<0xFF800000> : vector<16xf32>
    %729 = vector.multi_reduction <maximumf>, %728, %cst_400 [1] : vector<16x16xf32> to vector<16xf32>
    %730 = vector.shape_cast %729 : vector<16xf32> to vector<16x1xf32>
    %cst_401 = arith.constant 0xFF800000 : f32
    %731 = vector.broadcast %cst_401 : f32 to vector<16x1xf32>
    %732 = arith.cmpf oeq, %730, %731 : vector<16x1xf32>
    %cst_402 = arith.constant 0.000000e+00 : f32
    %733 = vector.broadcast %cst_402 : f32 to vector<16x1xf32>
    %734 = arith.select %732, %733, %730 : vector<16x1xi1>, vector<16x1xf32>
    %735 = vector.broadcast %734 : vector<16x1xf32> to vector<16x16xf32>
    %736 = arith.subf %728, %735 : vector<16x16xf32>
    %737 = math.exp %736 : vector<16x16xf32>
    %cst_403 = arith.constant dense<0.000000e+00> : vector<16xf32>
    %738 = vector.multi_reduction <add>, %737, %cst_403 [1] : vector<16x16xf32> to vector<16xf32>
    %739 = vector.shape_cast %738 : vector<16xf32> to vector<16x1xf32>
    %cst_404 = arith.constant 0.000000e+00 : f32
    %740 = vector.broadcast %cst_404 : f32 to vector<16x1xf32>
    %741 = arith.cmpf ogt, %739, %740 : vector<16x1xf32>
    %742 = tpu.reciprocal %739 {approx = true} : vector<16x1xf32> -> vector<16x1xf32>
    %cst_405 = arith.constant 0.000000e+00 : f32
    %743 = vector.broadcast %cst_405 : f32 to vector<16x1xf32>
    %744 = arith.select %741, %742, %743 : vector<16x1xi1>, vector<16x1xf32>
    %745 = vector.broadcast %744 : vector<16x1xf32> to vector<16x16xf32>
    %746 = arith.mulf %737, %745 : vector<16x16xf32>
    %747 = vector.broadcast %28 : vector<1x32xf32> to vector<16x32xf32>
    %748 = arith.mulf %629, %747 : vector<16x32xf32>
    %cst_406 = arith.constant dense<0.000000e+00> : vector<16x32xf32>
    %749 = tpu.matmul %746, %748, %cst_406 {dimension_numbers = #tpu.dot_dimension_numbers<[1], [0], [0], [1], [0, 0, 1, 1], [], []>} : vector<16x16xf32>, vector<16x32xf32>, vector<16x32xf32> -> vector<16x32xf32>
    %750 = arith.addf %720, %749 : vector<16x32xf32>
    %cst_407 = arith.constant dense<0.000000e+00> : vector<16x32xf32>
    %751 = tpu.matmul %750, %618, %cst_407 {dimension_numbers = #tpu.dot_dimension_numbers<[1], [0], [0], [1], [0, 0, 1, 1], [], []>} : vector<16x32xf32>, vector<32x32xf32>, vector<16x32xf32> -> vector<16x32xf32>
    %752 = vector.broadcast %620 : vector<1x32xf32> to vector<16x32xf32>
    %753 = arith.addf %751, %752 : vector<16x32xf32>
    %754 = arith.addf %604, %753 : vector<16x32xf32>
    %c1_408 = arith.constant 1 : index
    %c1_409 = arith.constant 1 : index
    %c0_410 = arith.constant 0 : index
    %c0_411 = arith.constant 0 : index
    %755 = vector.load %arg10[%c1_408, %c1_409, %c0_410, %c0_411] : memref<2x3x1x32xf32, #tpu.memory_space<vmem>>, vector<1x1x1x32xf32>
    %756 = vector.shape_cast %755 : vector<1x1x1x32xf32> to vector<1x32xf32>
    %c1_412 = arith.constant 1 : index
    %c1_413 = arith.constant 1 : index
    %c0_414 = arith.constant 0 : index
    %c0_415 = arith.constant 0 : index
    %757 = vector.load %arg11[%c1_412, %c1_413, %c0_414, %c0_415] : memref<2x3x1x32xf32, #tpu.memory_space<vmem>>, vector<1x1x1x32xf32>
    %758 = vector.shape_cast %757 : vector<1x1x1x32xf32> to vector<1x32xf32>
    %cst_416 = arith.constant dense<0.000000e+00> : vector<16xf32>
    %759 = vector.multi_reduction <add>, %754, %cst_416 [1] : vector<16x32xf32> to vector<16xf32>
    %760 = vector.shape_cast %759 : vector<16xf32> to vector<16x1xf32>
    %cst_417 = arith.constant 3.200000e+01 : f32
    %761 = vector.broadcast %cst_417 : f32 to vector<16x1xf32>
    %762 = arith.divf %760, %761 : vector<16x1xf32>
    %763 = vector.broadcast %762 : vector<16x1xf32> to vector<16x32xf32>
    %764 = arith.subf %754, %763 : vector<16x32xf32>
    %765 = arith.mulf %764, %764 : vector<16x32xf32>
    %cst_418 = arith.constant dense<0.000000e+00> : vector<16xf32>
    %766 = vector.multi_reduction <add>, %765, %cst_418 [1] : vector<16x32xf32> to vector<16xf32>
    %767 = vector.shape_cast %766 : vector<16xf32> to vector<16x1xf32>
    %cst_419 = arith.constant 3.200000e+01 : f32
    %768 = vector.broadcast %cst_419 : f32 to vector<16x1xf32>
    %769 = arith.divf %767, %768 : vector<16x1xf32>
    %cst_420 = arith.constant 9.99999974E-6 : f32
    %770 = vector.broadcast %cst_420 : f32 to vector<16x1xf32>
    %771 = arith.addf %769, %770 : vector<16x1xf32>
    %772 = math.rsqrt %771 : vector<16x1xf32>
    %773 = vector.broadcast %772 : vector<16x1xf32> to vector<16x32xf32>
    %774 = arith.mulf %764, %773 : vector<16x32xf32>
    %775 = vector.broadcast %756 : vector<1x32xf32> to vector<16x32xf32>
    %776 = arith.mulf %774, %775 : vector<16x32xf32>
    %777 = vector.broadcast %758 : vector<1x32xf32> to vector<16x32xf32>
    %778 = arith.addf %776, %777 : vector<16x32xf32>
    %c1_421 = arith.constant 1 : index
    %c0_422 = arith.constant 0 : index
    %c0_423 = arith.constant 0 : index
    %779 = vector.load %arg12[%c1_421, %c0_422, %c0_423] : memref<2x32x64xf32, #tpu.memory_space<vmem>>, vector<1x32x64xf32>
    %780 = vector.shape_cast %779 : vector<1x32x64xf32> to vector<32x64xf32>
    %cst_424 = arith.constant dense<0.000000e+00> : vector<16x64xf32>
    %781 = tpu.matmul %778, %780, %cst_424 {dimension_numbers = #tpu.dot_dimension_numbers<[1], [0], [0], [1], [0, 0, 1, 1], [], []>} : vector<16x32xf32>, vector<32x64xf32>, vector<16x64xf32> -> vector<16x64xf32>
    %c1_425 = arith.constant 1 : index
    %c0_426 = arith.constant 0 : index
    %c0_427 = arith.constant 0 : index
    %782 = vector.load %arg13[%c1_425, %c0_426, %c0_427] : memref<2x1x64xf32, #tpu.memory_space<vmem>>, vector<1x1x64xf32>
    %783 = vector.shape_cast %782 : vector<1x1x64xf32> to vector<1x64xf32>
    %784 = vector.broadcast %783 : vector<1x64xf32> to vector<16x64xf32>
    %785 = arith.addf %781, %784 : vector<16x64xf32>
    %cst_428 = arith.constant 5.000000e-01 : f32
    %786 = vector.broadcast %cst_428 : f32 to vector<16x64xf32>
    %787 = arith.mulf %786, %785 : vector<16x64xf32>
    %cst_429 = arith.constant 4.471500e-02 : f32
    %788 = vector.broadcast %cst_429 : f32 to vector<16x64xf32>
    %789 = arith.mulf %788, %785 : vector<16x64xf32>
    %790 = arith.mulf %789, %785 : vector<16x64xf32>
    %791 = arith.mulf %790, %785 : vector<16x64xf32>
    %792 = arith.addf %785, %791 : vector<16x64xf32>
    %cst_430 = arith.constant 0.797884583 : f32
    %793 = vector.broadcast %cst_430 : f32 to vector<16x64xf32>
    %794 = arith.mulf %793, %792 : vector<16x64xf32>
    %795 = math.tanh %794 : vector<16x64xf32>
    %cst_431 = arith.constant 1.000000e+00 : f32
    %796 = vector.broadcast %cst_431 : f32 to vector<16x64xf32>
    %797 = arith.addf %796, %795 : vector<16x64xf32>
    %798 = arith.mulf %787, %797 : vector<16x64xf32>
    %c1_432 = arith.constant 1 : index
    %c0_433 = arith.constant 0 : index
    %c0_434 = arith.constant 0 : index
    %799 = vector.load %arg14[%c1_432, %c0_433, %c0_434] : memref<2x64x32xf32, #tpu.memory_space<vmem>>, vector<1x64x32xf32>
    %800 = vector.shape_cast %799 : vector<1x64x32xf32> to vector<64x32xf32>
    %cst_435 = arith.constant dense<0.000000e+00> : vector<16x32xf32>
    %801 = tpu.matmul %798, %800, %cst_435 {dimension_numbers = #tpu.dot_dimension_numbers<[1], [0], [0], [1], [0, 0, 1, 1], [], []>} : vector<16x64xf32>, vector<64x32xf32>, vector<16x32xf32> -> vector<16x32xf32>
    %c1_436 = arith.constant 1 : index
    %c0_437 = arith.constant 0 : index
    %c0_438 = arith.constant 0 : index
    %802 = vector.load %arg15[%c1_436, %c0_437, %c0_438] : memref<2x1x32xf32, #tpu.memory_space<vmem>>, vector<1x1x32xf32>
    %803 = vector.shape_cast %802 : vector<1x1x32xf32> to vector<1x32xf32>
    %804 = vector.broadcast %803 : vector<1x32xf32> to vector<16x32xf32>
    %805 = arith.addf %801, %804 : vector<16x32xf32>
    %806 = arith.addf %778, %805 : vector<16x32xf32>
    %c1_439 = arith.constant 1 : index
    %c2_440 = arith.constant 2 : index
    %c0_441 = arith.constant 0 : index
    %c0_442 = arith.constant 0 : index
    %807 = vector.load %arg10[%c1_439, %c2_440, %c0_441, %c0_442] : memref<2x3x1x32xf32, #tpu.memory_space<vmem>>, vector<1x1x1x32xf32>
    %808 = vector.shape_cast %807 : vector<1x1x1x32xf32> to vector<1x32xf32>
    %c1_443 = arith.constant 1 : index
    %c2_444 = arith.constant 2 : index
    %c0_445 = arith.constant 0 : index
    %c0_446 = arith.constant 0 : index
    %809 = vector.load %arg11[%c1_443, %c2_444, %c0_445, %c0_446] : memref<2x3x1x32xf32, #tpu.memory_space<vmem>>, vector<1x1x1x32xf32>
    %810 = vector.shape_cast %809 : vector<1x1x1x32xf32> to vector<1x32xf32>
    %cst_447 = arith.constant dense<0.000000e+00> : vector<16xf32>
    %811 = vector.multi_reduction <add>, %806, %cst_447 [1] : vector<16x32xf32> to vector<16xf32>
    %812 = vector.shape_cast %811 : vector<16xf32> to vector<16x1xf32>
    %cst_448 = arith.constant 3.200000e+01 : f32
    %813 = vector.broadcast %cst_448 : f32 to vector<16x1xf32>
    %814 = arith.divf %812, %813 : vector<16x1xf32>
    %815 = vector.broadcast %814 : vector<16x1xf32> to vector<16x32xf32>
    %816 = arith.subf %806, %815 : vector<16x32xf32>
    %817 = arith.mulf %816, %816 : vector<16x32xf32>
    %cst_449 = arith.constant dense<0.000000e+00> : vector<16xf32>
    %818 = vector.multi_reduction <add>, %817, %cst_449 [1] : vector<16x32xf32> to vector<16xf32>
    %819 = vector.shape_cast %818 : vector<16xf32> to vector<16x1xf32>
    %cst_450 = arith.constant 3.200000e+01 : f32
    %820 = vector.broadcast %cst_450 : f32 to vector<16x1xf32>
    %821 = arith.divf %819, %820 : vector<16x1xf32>
    %cst_451 = arith.constant 9.99999974E-6 : f32
    %822 = vector.broadcast %cst_451 : f32 to vector<16x1xf32>
    %823 = arith.addf %821, %822 : vector<16x1xf32>
    %824 = math.rsqrt %823 : vector<16x1xf32>
    %825 = vector.broadcast %824 : vector<16x1xf32> to vector<16x32xf32>
    %826 = arith.mulf %816, %825 : vector<16x32xf32>
    %827 = vector.broadcast %808 : vector<1x32xf32> to vector<16x32xf32>
    %828 = arith.mulf %826, %827 : vector<16x32xf32>
    %829 = vector.broadcast %810 : vector<1x32xf32> to vector<16x32xf32>
    %830 = arith.addf %828, %829 : vector<16x32xf32>
    %c0_452 = arith.constant 0 : index
    %c0_453 = arith.constant 0 : index
    %831 = vector.load %arg16[%c0_452, %c0_453] : memref<1x32xf32, #tpu.memory_space<vmem>>, vector<1x32xf32>
    %c0_454 = arith.constant 0 : index
    %c0_455 = arith.constant 0 : index
    %832 = vector.load %arg17[%c0_454, %c0_455] : memref<1x32xf32, #tpu.memory_space<vmem>>, vector<1x32xf32>
    %cst_456 = arith.constant dense<0.000000e+00> : vector<16xf32>
    %833 = vector.multi_reduction <add>, %830, %cst_456 [1] : vector<16x32xf32> to vector<16xf32>
    %834 = vector.shape_cast %833 : vector<16xf32> to vector<16x1xf32>
    %cst_457 = arith.constant 3.200000e+01 : f32
    %835 = vector.broadcast %cst_457 : f32 to vector<16x1xf32>
    %836 = arith.divf %834, %835 : vector<16x1xf32>
    %837 = vector.broadcast %836 : vector<16x1xf32> to vector<16x32xf32>
    %838 = arith.subf %830, %837 : vector<16x32xf32>
    %839 = arith.mulf %838, %838 : vector<16x32xf32>
    %cst_458 = arith.constant dense<0.000000e+00> : vector<16xf32>
    %840 = vector.multi_reduction <add>, %839, %cst_458 [1] : vector<16x32xf32> to vector<16xf32>
    %841 = vector.shape_cast %840 : vector<16xf32> to vector<16x1xf32>
    %cst_459 = arith.constant 3.200000e+01 : f32
    %842 = vector.broadcast %cst_459 : f32 to vector<16x1xf32>
    %843 = arith.divf %841, %842 : vector<16x1xf32>
    %cst_460 = arith.constant 9.99999974E-6 : f32
    %844 = vector.broadcast %cst_460 : f32 to vector<16x1xf32>
    %845 = arith.addf %843, %844 : vector<16x1xf32>
    %846 = math.rsqrt %845 : vector<16x1xf32>
    %847 = vector.broadcast %846 : vector<16x1xf32> to vector<16x32xf32>
    %848 = arith.mulf %838, %847 : vector<16x32xf32>
    %849 = vector.broadcast %831 : vector<1x32xf32> to vector<16x32xf32>
    %850 = arith.mulf %848, %849 : vector<16x32xf32>
    %851 = vector.broadcast %832 : vector<1x32xf32> to vector<16x32xf32>
    %852 = arith.addf %850, %851 : vector<16x32xf32>
    %c0_461 = arith.constant 0 : index
    %c0_462 = arith.constant 0 : index
    %853 = vector.load %arg18[%c0_461, %c0_462] : memref<32x24xf32, #tpu.memory_space<vmem>>, vector<32x24xf32>
    %cst_463 = arith.constant dense<0.000000e+00> : vector<16x24xf32>
    %854 = tpu.matmul %852, %853, %cst_463 {dimension_numbers = #tpu.dot_dimension_numbers<[1], [0], [0], [1], [0, 0, 1, 1], [], []>} : vector<16x32xf32>, vector<32x24xf32>, vector<16x24xf32> -> vector<16x24xf32>
    %c0_464 = arith.constant 0 : index
    %c0_465 = arith.constant 0 : index
    %855 = vector.load %arg19[%c0_464, %c0_465] : memref<1x24xf32, #tpu.memory_space<vmem>>, vector<1x24xf32>
    %856 = vector.broadcast %855 : vector<1x24xf32> to vector<16x24xf32>
    %857 = arith.addf %854, %856 : vector<16x24xf32>
    %c0_466 = arith.constant 0 : index
    %c0_467 = arith.constant 0 : index
    %858 = vector.load %arg20[%c0_466, %c0_467] : memref<32x32xf32, #tpu.memory_space<vmem>>, vector<32x32xf32>
    %cst_468 = arith.constant dense<0.000000e+00> : vector<16x32xf32>
    %859 = tpu.matmul %852, %858, %cst_468 {dimension_numbers = #tpu.dot_dimension_numbers<[1], [0], [0], [1], [0, 0, 1, 1], [], []>} : vector<16x32xf32>, vector<32x32xf32>, vector<16x32xf32> -> vector<16x32xf32>
    %c0_469 = arith.constant 0 : index
    %c0_470 = arith.constant 0 : index
    %860 = vector.load %arg21[%c0_469, %c0_470] : memref<1x32xf32, #tpu.memory_space<vmem>>, vector<1x32xf32>
    %861 = vector.broadcast %860 : vector<1x32xf32> to vector<16x32xf32>
    %862 = arith.addf %859, %861 : vector<16x32xf32>
    %c0_471 = arith.constant 0 : index
    %c0_472 = arith.constant 0 : index
    %863 = vector.load %arg22[%c0_471, %c0_472] : memref<32x32xf32, #tpu.memory_space<vmem>>, vector<32x32xf32>
    %cst_473 = arith.constant dense<0.000000e+00> : vector<16x32xf32>
    %864 = tpu.matmul %852, %863, %cst_473 {dimension_numbers = #tpu.dot_dimension_numbers<[1], [0], [0], [1], [0, 0, 1, 1], [], []>} : vector<16x32xf32>, vector<32x32xf32>, vector<16x32xf32> -> vector<16x32xf32>
    %c0_474 = arith.constant 0 : index
    %c0_475 = arith.constant 0 : index
    %865 = vector.load %arg23[%c0_474, %c0_475] : memref<1x32xf32, #tpu.memory_space<vmem>>, vector<1x32xf32>
    %866 = vector.broadcast %865 : vector<1x32xf32> to vector<16x32xf32>
    %867 = arith.addf %864, %866 : vector<16x32xf32>
    %868 = vector.extract_strided_slice %862 {offsets = [0, 0], sizes = [8, 32], strides = [1, 1]} : vector<16x32xf32> to vector<8x32xf32>
    %869 = vector.extract_strided_slice %867 {offsets = [0, 0], sizes = [8, 32], strides = [1, 1]} : vector<16x32xf32> to vector<8x32xf32>
    %c0_476 = arith.constant 0 : index
    %c0_477 = arith.constant 0 : index
    %c0_478 = arith.constant 0 : index
    %870 = vector.load %arg4[%c0_476, %c0_477, %c0_478] : memref<2x8x8xf32, #tpu.memory_space<vmem>>, vector<1x8x8xf32>
    %871 = vector.shape_cast %870 : vector<1x8x8xf32> to vector<8x8xf32>
    %cst_479 = arith.constant dense<0.000000e+00> : vector<8x32xf32>
    %872 = tpu.matmul %871, %869, %cst_479 {dimension_numbers = #tpu.dot_dimension_numbers<[1], [0], [0], [1], [0, 0, 1, 1], [], []>} : vector<8x8xf32>, vector<8x32xf32>, vector<8x32xf32> -> vector<8x32xf32>
    %cst_480 = arith.constant dense<0.000000e+00> : vector<8x8xf32>
    %873 = tpu.matmul %868, %872, %cst_480 {dimension_numbers = #tpu.dot_dimension_numbers<[1], [1], [0], [0], [0, 0, 1, 0], [], []>} : vector<8x32xf32>, vector<8x32xf32>, vector<8x8xf32> -> vector<8x8xf32>
    %cst_481 = arith.constant 0.176776692 : f32
    %874 = vector.broadcast %cst_481 : f32 to vector<8x8xf32>
    %875 = arith.mulf %874, %873 : vector<8x8xf32>
    %876 = vector.extract_strided_slice %862 {offsets = [8, 0], sizes = [8, 32], strides = [1, 1]} : vector<16x32xf32> to vector<8x32xf32>
    %877 = vector.extract_strided_slice %867 {offsets = [8, 0], sizes = [8, 32], strides = [1, 1]} : vector<16x32xf32> to vector<8x32xf32>
    %c1_482 = arith.constant 1 : index
    %c0_483 = arith.constant 0 : index
    %c0_484 = arith.constant 0 : index
    %878 = vector.load %arg4[%c1_482, %c0_483, %c0_484] : memref<2x8x8xf32, #tpu.memory_space<vmem>>, vector<1x8x8xf32>
    %879 = vector.shape_cast %878 : vector<1x8x8xf32> to vector<8x8xf32>
    %cst_485 = arith.constant dense<0.000000e+00> : vector<8x32xf32>
    %880 = tpu.matmul %879, %877, %cst_485 {dimension_numbers = #tpu.dot_dimension_numbers<[1], [0], [0], [1], [0, 0, 1, 1], [], []>} : vector<8x8xf32>, vector<8x32xf32>, vector<8x32xf32> -> vector<8x32xf32>
    %cst_486 = arith.constant dense<0.000000e+00> : vector<8x8xf32>
    %881 = tpu.matmul %876, %880, %cst_486 {dimension_numbers = #tpu.dot_dimension_numbers<[1], [1], [0], [0], [0, 0, 1, 0], [], []>} : vector<8x32xf32>, vector<8x32xf32>, vector<8x8xf32> -> vector<8x8xf32>
    %cst_487 = arith.constant 0.176776692 : f32
    %882 = vector.broadcast %cst_487 : f32 to vector<8x8xf32>
    %883 = arith.mulf %882, %881 : vector<8x8xf32>
    %884 = tpu.concatenate %875, %883 in 0 : vector<8x8xf32>, vector<8x8xf32> -> vector<16x8xf32>
    %c0_488 = arith.constant 0 : index
    %c0_489 = arith.constant 0 : index
    %885 = vector.load %arg6[%c0_488, %c0_489] : memref<24x32xf32, #tpu.memory_space<vmem>>, vector<24x32xf32>
    %cst_490 = arith.constant dense<0.000000e+00> : vector<16x32xf32>
    %886 = tpu.matmul %857, %885, %cst_490 {dimension_numbers = #tpu.dot_dimension_numbers<[1], [0], [0], [1], [0, 0, 1, 1], [], []>} : vector<16x24xf32>, vector<24x32xf32>, vector<16x32xf32> -> vector<16x32xf32>
    %c0_491 = arith.constant 0 : index
    %c0_492 = arith.constant 0 : index
    %887 = vector.load %arg7[%c0_491, %c0_492] : memref<8x32xf32, #tpu.memory_space<vmem>>, vector<8x32xf32>
    %cst_493 = arith.constant dense<0.000000e+00> : vector<16x32xf32>
    %888 = tpu.matmul %884, %887, %cst_493 {dimension_numbers = #tpu.dot_dimension_numbers<[1], [0], [0], [1], [0, 0, 1, 1], [], []>} : vector<16x8xf32>, vector<8x32xf32>, vector<16x32xf32> -> vector<16x32xf32>
    %889 = arith.addf %886, %888 : vector<16x32xf32>
    %c0_494 = arith.constant 0 : index
    %c0_495 = arith.constant 0 : index
    %890 = vector.load %arg5[%c0_494, %c0_495] : memref<16x32xf32, #tpu.memory_space<vmem>>, vector<16x32xf32>
    %cst_496 = arith.constant 0.000000e+00 : f32
    %891 = vector.broadcast %cst_496 : f32 to vector<16x32xf32>
    %892 = arith.cmpf ogt, %890, %891 : vector<16x32xf32>
    %cst_497 = arith.constant 0xFF800000 : f32
    %893 = vector.broadcast %cst_497 : f32 to vector<16x32xf32>
    %894 = arith.select %892, %893, %889 : vector<16x32xi1>, vector<16x32xf32>
    %c0_498 = arith.constant 0 : index
    %c0_499 = arith.constant 0 : index
    %895 = vector.load %arg24[%c0_498, %c0_499] : memref<16x32xf32, #tpu.memory_space<vmem>>, vector<16x32xf32>
    tpu.vector_store %arg24[%c0_498, %c0_499], %894 {strides = array<i32>} : memref<16x32xf32, #tpu.memory_space<vmem>>, vector<16x32xf32>,
    return
  }
}

</mosaic_0001>

<bundles_post_ra>
// kernel: base_decoder_forward.1
= control target key start
LH: loop header
LB: loop body
LE: loop exit
PB: predicated region body
PF: predicated region fallthrough
CT: control target
= control target key end

     0   :  { %s9316_s0 = inlined_call_operand.vmem [shape: f32[16,32], index: 0, kind: input, shape index: {}]   ;;  %s9317_s1 = inlined_call_operand.vmem [shape: f32[16,32], index: 1, kind: input, shape index: {}]   ;;  %s9318_s2 = inlined_call_operand.vmem [shape: f32[4,16,16], index: 2, kind: input, shape index: {}]   ;;  %s9319_s3 = inlined_call_operand.vmem [shape: f32[4,16,16], index: 3, kind: input, shape index: {}]   ;;  %s9320_s4 = inlined_call_operand.vmem [shape: f32[2,8,8], index: 4, kind: input, shape index: {}]   ;;  %s9321_s5 = inlined_call_operand.vmem [shape: f32[16,32], index: 5, kind: input, shape index: {}]   ;;  %s9322_s6 = inlined_call_operand.vmem [shape: f32[24,32], index: 6, kind: input, shape index: {}]   ;;  %s9323_s7 = inlined_call_operand.vmem [shape: f32[8,32], index: 7, kind: input, shape index: {}]   ;;  %s9324_s8 = inlined_call_operand.vmem [shape: f32[2,8,32,32], index: 8, kind: input, shape index: {}]   ;;  %s9325_s9 = inlined_call_operand.vmem [shape: f32[2,8,1,32], index: 9, kind: input, shape index: {}]   ;;  %s9326_s10 = inlined_call_operand.vmem [shape: f32[2,3,1,32], index: 10, kind: input, shape index: {}]   ;;  %s9327_s11 = inlined_call_operand.vmem [shape: f32[2,3,1,32], index: 11, kind: input, shape index: {}]   ;;  %s9328_s12 = inlined_call_operand.vmem [shape: f32[2,32,64], index: 12, kind: input, shape index: {}]   ;;  %s9329_s13 = inlined_call_operand.vmem [shape: f32[2,1,64], index: 13, kind: input, shape index: {}]   ;;  %s9330_s14 = inlined_call_operand.vmem [shape: f32[2,64,32], index: 14, kind: input, shape index: {}]   ;;  %s9331_s15 = inlined_call_operand.vmem [shape: f32[2,1,32], index: 15, kind: input, shape index: {}]   ;;  %s9332_s16 = inlined_call_operand.vmem [shape: f32[1,32], index: 16, kind: input, shape index: {}]   ;;  %s9333_s17 = inlined_call_operand.vmem [shape: f32[1,32], index: 17, kind: input, shape index: {}]   ;;  %s9334_s18 = inlined_call_operand.vmem [shape: f32[32,24], index: 18, kind: input, shape index: {}]   ;;  %s9335_s19 = inlined_call_operand.vmem [shape: f32[1,24], index: 19, kind: input, shape index: {}]   ;;  %s9336_s20 = inlined_call_operand.vmem [shape: f32[32,32], index: 20, kind: input, shape index: {}]   ;;  %s9337_s21 = inlined_call_operand.vmem [shape: f32[1,32], index: 21, kind: input, shape index: {}]   ;;  %s9338_s22 = inlined_call_operand.vmem [shape: f32[32,32], index: 22, kind: input, shape index: {}]   ;;  %s9339_s23 = inlined_call_operand.vmem [shape: f32[1,32], index: 23, kind: input, shape index: {}]   ;;  %s9340_s24 = inlined_call_operand.hbm [shape: f32[16,32], index: 24, kind: output, shape index: {}]  }
   0x1   :  { %9349 = sst [smem:[#allocation5_spill]] %s9316_s0 }
   0x2   :  { %9350 = sst [smem:[#allocation6_spill]] %s9317_s1 }
   0x3   :  { %9351 = sst [smem:[#allocation7_spill]] %s9318_s2 }
   0x4   :  { %9352 = sst [smem:[#allocation8_spill]] %s9319_s3 }
   0x5   :  { %9353 = sst [smem:[#allocation9_spill]] %s9320_s4 }
   0x6   :  { %9354 = sst [smem:[#allocation10_spill]] %s9321_s5 }
   0x7   :  { %9355 = sst [smem:[#allocation11_spill]] %s9322_s6 }
   0x8   :  { %9356 = sst [smem:[#allocation12_spill]] %s9323_s7 }
   0x9   :  { %9357 = sst [smem:[#allocation13_spill]] %s9324_s8 }
   0xa   :  { %s9358_s27 = sld [smem:[#allocation13_spill]]  ;;  %vm136_vm0 = vcmask 261120  }
   0xb   :  { %s9359_s5 = sld [smem:[#allocation5_spill]] }
  0x10   :  { %v6339_v0 = vld [vmem:[%s9358_s27 + $0x20] sm:$0xff]  ;;  %v6340_v1 = vld [vmem:[%s9358_s27 + $0x28] sm:$0xff]  ;;  %v6341_v2 = vld [vmem:[%s9358_s27 + $0x30] sm:$0xff] }
  0x11   :  { %v7465_v3 = vpack.c.bf16 %v6340_v1, %v6339_v0  ;;  %v6342_v4 = vld [vmem:[%s9358_s27 + $0x38] sm:$0xff]  ;;  %v104_v5 = vld [vmem:[%s9358_s27] sm:$0xff]  ;;  %v105_v6 = vld [vmem:[%s9358_s27 + $0x8] sm:$0xff] }
  0x12   :  { %v7469_v7 = vpack.c.bf16 %v6342_v4, %v6341_v2  ;;  %v7457_v8 = vpack.c.bf16 %v105_v6, %v104_v5  ;;  %v8209_v9 = vld [vmem:[%s9359_s5] sm:$0xff]  ;;  %v106_v10 = vld [vmem:[%s9358_s27 + $0x10] sm:$0xff]  ;;  %v107_v11 = vld [vmem:[%s9358_s27 + $0x18] sm:$0xff] }
  0x13   :  { %7466 = vmatprep.subr.bf16.mxu1 %v7465_v3  ;;  %6949 = vmatprep.mubr.msk.f32.mxu1 %vm136_vm0, %v8209_v9  ;;  %v6344_v12 = vld [vmem:[%s9358_s27 + $0x40] sm:$0xff]  ;;  %v6345_v13 = vld [vmem:[%s9358_s27 + $0x48] sm:$0xff]  ;;  %v7461_v14 = vpack.c.bf16 %v107_v11, %v106_v10 }
  0x14   :  { %7468 = vmatpush3.bf16.msra.mxu1 %v7465_v3  ;;  %7458 = vmatprep.subr.bf16.mxu0 %v7457_v8 }
  0x15   :  { %29 = vsyncpa [#allocation3], 0  ;;  %7470 = vmatprep.subr.bf16.mxu1 %v7469_v7  ;;  %7460 = vmatpush3.bf16.msra.mxu0 %v7457_v8  ;;  %v7473_v15 = vpack.c.bf16 %v6345_v13, %v6344_v12  ;;  %v6346_v16 = vld [vmem:[%s9358_s27 + $0x50] sm:$0xff]  ;;  %v6347_v17 = vld [vmem:[%s9358_s27 + $0x58] sm:$0xff]  ;;  %v78_v20 = vlaneseq  ;;  %v8058_v29 = vmov 0.0   ;;  %s9362_s3 = sld [smem:[#allocation7_spill]] }
  0x16   :  { %7462 = vmatprep.subr.bf16.mxu0 %v7461_v14  ;;  %6938 = vmatprep.mubr.msk.f32.mxu0 %vm136_vm0, %v8209_v9  ;;  %v8236_v18 = vld [vmem:[%s9359_s5 + $0x8] sm:$0xff]  ;;  %v7477_v19 = vpack.c.bf16 %v6347_v17, %v6346_v16  ;;  %v6357_v22 = vld [vmem:[%s9325_s9 + $0x1] ss:$0 sm:$0xff]  ;;  %v6354_v24 = vld [vmem:[%s9325_s9] ss:$0 sm:$0xff]  ;;  %vm475_vm9 = vcmask 130048  }
  0x17   :  { %v8246_v21 = vand.u32 127, %v78_v20  ;;  %vm8265_vm5 = vmpackc.low %vm136_vm0, %vm136_vm0  ;;  %v6360_v38 = vld [vmem:[%s9325_s9 + $0x2] ss:$0 sm:$0xff]  ;;  %s9363_s2 = sld [smem:[#allocation6_spill]]  ;;  %s9364_s4 = sld [smem:[#allocation8_spill]] }
  0x18   :  { %7472 = vmatpush3.bf16.msra.mxu1 %v7469_v7  ;;  %s9365_s6 = sld [smem:[#allocation9_spill]]  ;;  %s9366_s7 = sld [smem:[#allocation12_spill]] }
  0x19   :  { %7464 = vmatpush3.bf16.msra.mxu0 %v7461_v14  ;;  %vm85_vm1 = vcmp.ge.s32.totalorder %v8246_v21, 8  ;;  %vm86_vm2 = vcmp.lt.s32.totalorder %v8246_v21, 16  ;;  %vm81_vm3 = vcmp.lt.s32.totalorder %v8246_v21, 8  ;;  %vm90_vm6 = vcmp.ge.s32.totalorder %v8246_v21, 16  ;;  %s9368_s26 = sld [smem:[#allocation10_spill]] }
  0x1a   :  { %7474 = vmatprep.subr.bf16.mxu0 %v7473_v15  ;;  %vm87_vm4 = vmand %vm85_vm1, %vm86_vm2  ;;  %v8258_v30 = vsel %vm81_vm3, 1.0, %v8058_v29  ;;  %vm91_vm7 = vcmp.lt.s32.totalorder %v8246_v21, 24 }
  0x1b   :  { %6950 = vmatmul.mubr.msk.f32.vlgmr.msra.gmra.mrb[0].mxu1 %vm136_vm0, %v8236_v18  ;;  %v8261_v31 = vsel %vm87_vm4, 1.0, %v8058_v29  ;;  %vm92_vm8 = vmand %vm90_vm6, %vm91_vm7  ;;  %v6371_v60 = vld [vmem:[%s9362_s3 + $0x10] sm:$0xff]  ;;  %v471_v61 = vld [vmem:[%s9362_s3] sm:$0xff]  ;;  %vm95_vm7 = vcmp.ge.s32.totalorder %v8246_v21, 24 }
  0x1c   :  { %6939 = vmatmul.mubr.msk.f32.vlgmr.msra.gmra.mrb[0].mxu0 %vm136_vm0, %v8236_v18  ;;  %v8302_v41 = vsel %vm92_vm8, 1.0, %v8058_v29  ;;  %v6372_v1 = vld [vmem:[%s9362_s3 + $0x18] sm:$0xff]  ;;  %v472_v2 = vld [vmem:[%s9362_s3 + $0x8] sm:$0xff]  ;;  %v6381_v14 = vld [vmem:[%s9362_s3 + $0x20] sm:$0xff]  ;;  %vm96_vm8 = vcmp.lt.s32.totalorder %v8246_v21, 32 }
  0x1d   :  { %7476 = vmatpush3.bf16.msra.mxu0 %v7473_v15  ;;  %6960 = vmatprep.mubr.msk.f32.mxu0 %vm136_vm0, %v8209_v9  ;;  %v6382_v11 = vld [vmem:[%s9362_s3 + $0x28] sm:$0xff] }
  0x1e   :  { %7478 = vmatprep.subr.bf16.mxu0 %v7477_v19 }
  0x21   :  { %7480 = vmatpush3.bf16.msra.mxu0 %v7477_v19 }
  0x24   :  { %6961 = vmatmul.mubr.msk.f32.vlgmr.msra.gmra.mrb[2].mxu0 %vm136_vm0, %v8236_v18 }
  0xee   :  { %v6951_v23 = vpop.f32.mrb[0].mxu1 }
  0xef   :  { %v296_v25 = vadd.f32 %v6951_v23, %v6357_v22  ;;  %v290_v26 = vpop.f32.mrb[1].mxu1  ;;  %v6940_v27 = vpop.f32.mrb[0].mxu0 }
  0xf0   :  { %v291_v28 = vadd.f32 %v6357_v22, %v290_v26  ;;  %v209_v32 = vpop.f32.mrb[1].mxu0  ;;  %v8294_v39 = vadd.f32 %v6940_v27, %v6354_v24 }
  0xf1   :  { %v8269_v34 = vadd.f32 %v6354_v24, %v209_v32 }
  0xf2   :  { %v8271_v35 = vpack.c.bf16 %v296_v25, %v291_v28  ;;  %v381_v45 = vmul.f32 %v8258_v30, %v8294_v39  ;;  %v509_v46 = vmul.f32 %v8261_v31, %v8294_v39  ;;  %v793_v51 = vmul.f32 %v8302_v41, %v8294_v39 }
  0xf3   :  { %v380_v36 = vmul.f32 %v8258_v30, %v8269_v34  ;;  %v508_v37 = vmul.f32 %v8261_v31, %v8269_v34  ;;  %v792_v48 = vmul.f32 %v8302_v41, %v8269_v34 }
  0xf4   :  { %7483 = vmatprep.subr.msk.bf16.mxu1 %vm8265_vm5, %v8271_v35  ;;  %7489 = vmatprep.subr.msk.bf16.mxu0 %vm8265_vm5, %v8271_v35 }
  0xf5   :  { %7486 = vmatpush3.bf16.xpose.msk.msra.mxu1 %vm8265_vm5, %v8271_v35  ;;  %7492 = vmatpush3.bf16.xpose.msk.msra.mxu0 %vm8265_vm5, %v8271_v35 }
  0xf6   :  { %7503 = vmatprep.subr.msk.bf16.mxu0 %vm8265_vm5, %v8271_v35  ;;  %6967 = vmatprep.mubr.msk.f32.mxu1 %vm136_vm0, %v380_v36 }
  0xf7   :  { %6974 = vmatprep.mubr.msk.f32.mxu0 %vm136_vm0, %v508_v37  ;;  %v6962_v40 = vpop.f32.mrb[2].mxu0 }
  0xf8   :  { %v8304_v42 = vadd.f32 %v6962_v40, %v6360_v38  ;;  %v371_v43 = vpop.f32.mrb[3].mxu0 }
  0xf9   :  { %v8306_v44 = vadd.f32 %v6360_v38, %v371_v43 }
  0xfa   :  { %v629_v47 = vmul.f32 %v8261_v31, %v8304_v42  ;;  %v507_v53 = vmul.f32 %v8258_v30, %v8304_v42 }
  0xfb   :  { %v628_v49 = vmul.f32 %v8261_v31, %v8306_v44  ;;  %v506_v52 = vmul.f32 %v8258_v30, %v8306_v44 }
  0xfc   :  { %6968 = vmatmul.mubr.msk.f32.vlgmr.msra.gmra.mrb[2].mxu1 %vm136_vm0, %v381_v45  ;;  %6975 = vmatmul.mubr.msk.f32.vlgmr.msra.gmra.mrb[4].mxu0 %vm136_vm0, %v509_v46 }
  0xfd   :  { %7506 = vmatpush3.bf16.xpose.msk.msra.mxu0 %vm8265_vm5, %v8271_v35  ;;  %6995 = vmatprep.mubr.msk.f32.mxu0 %vm136_vm0, %v792_v48  ;;  %v7493_v50 = vpack.c.bf16 %v629_v47, %v628_v49  ;;  %v8331_v54 = vpack.c.bf16 %v507_v53, %v506_v52 }
  0xff   :  { %7494 = vmatprep.subr.bf16.mxu1 %v7493_v50 }
 0x100   :  { %7496 = vmatpush3.bf16.msra.mxu1 %v7493_v50 }
 0x101   :  { %7498 = vmatprep.subr.bf16.mxu1 %v8331_v54 }
 0x104   :  { %6996 = vmatmul.mubr.msk.f32.vlgmr.msra.gmra.mrb[6].mxu0 %vm136_vm0, %v793_v51 }
 0x1cf   :  { %v6969_v55 = vpop.f32.mrb[2].mxu1  ;;  %v6976_v56 = vpop.f32.mrb[4].mxu0 }
 0x1d0   :  { %v470_v57 = vmul.f32 0.35355338, %v6969_v55  ;;  %v460_v58 = vpop.f32.mrb[3].mxu1  ;;  %v582_v59 = vpop.f32.mrb[5].mxu0  ;;  %v592_v62 = vmul.f32 0.35355338, %v6976_v56 }
 0x1d1   :  { %v469_v63 = vmul.f32 0.35355338, %v460_v58  ;;  %v591_v0 = vmul.f32 0.35355338, %v582_v59 }
 0x1d2   :  { %v597_v7 = vadd.f32 %v6372_v1, %v592_v62  ;;  %v474_v8 = vadd.f32 %v472_v2, %v470_v57 }
 0x1d3   :  { %v596_v3 = vadd.f32 %v6371_v60, %v591_v0  ;;  %v473_v4 = vadd.f32 %v471_v61, %v469_v63 }
 0x1d4   :  { %v601_v16 = vsel %vm475_vm9, %v597_v7, -inf  ;;  %v479_v17 = vsel %vm475_vm9, %v474_v8, -inf }
 0x1d5   :  { %v598_v5 = vsel %vm475_vm9, %v596_v3, -inf  ;;  %v476_v6 = vsel %vm475_vm9, %v473_v4, -inf }
 0x1d6   :  { %599 = vmax.xlane.f32.xlu0 %v598_v5  ;;  %477 = vmax.xlane.f32.xlu1 %v476_v6 }
 0x1d7   :  { %v6997_v10 = vpop.f32.mrb[6].mxu0 }
 0x1d8   :  { %v876_v12 = vmul.f32 0.35355338, %v6997_v10  ;;  %v866_v13 = vpop.f32.mrb[7].mxu0 }
 0x1d9   :  { %v875_v15 = vmul.f32 0.35355338, %v866_v13 }
 0x1da   :  { %602 = vmax.xlane.f32.xlu0 %v601_v16  ;;  %480 = vmax.xlane.f32.xlu1 %v479_v17  ;;  %v881_v19 = vadd.f32 %v6382_v11, %v876_v12 }
 0x1db   :  { %v880_v20 = vadd.f32 %v6381_v14, %v875_v15 }
 0x1dc   :  { %v885_v22 = vsel %vm475_vm9, %v881_v19, -inf }
 0x1dd   :  { %v882_v23 = vsel %vm475_vm9, %v880_v20, -inf }
 0x1de   :  { %883 = vmax.xlane.f32.xlu0 %v882_v23  ;;  %886 = vmax.xlane.f32.xlu1 %v885_v22  ;;  %v912_v22 = vmul.f32 %v8302_v41, %v8306_v44  ;;  %v913_v23 = vmul.f32 %v8302_v41, %v8304_v42 }
 0x263   :  { %v600_v24 = vpop.xlane.xlu0 %599  ;;  %v478_v25 = vpop.xlane.xlu1 %477 }
 0x264   :  { %vm604_vm10 = vcmp.eq.f32.partialorder %v600_v24, -inf  ;;  %vm482_vm11 = vcmp.eq.f32.partialorder %v478_v25, -inf }
 0x265   :  { %v606_v26 = vsel %vm604_vm10, 0.0, %v600_v24  ;;  %v484_v27 = vsel %vm482_vm11, 0.0, %v478_v25  ;;  %vm97_vm10 = vmand %vm95_vm7, %vm96_vm8 }
 0x266   :  { %v608_v28 = vsub.f32 %v596_v3, %v606_v26  ;;  %v486_v32 = vsub.f32 %v473_v4, %v484_v27 }
 0x267   :  { %v603_v36 = vpop.xlane.xlu0 %602  ;;  %v481_v37 = vpop.xlane.xlu1 %480 }
 0x268   :  { %v610_v38 = vmul.f32 1.442695, %v608_v28  ;;  %v488_v40 = vmul.f32 1.442695, %v486_v32  ;;  %vm605_vm12 = vcmp.eq.f32.partialorder %v603_v36, -inf  ;;  %vm483_vm13 = vcmp.eq.f32.partialorder %v481_v37, -inf }
 0x269   :  { %v607_v43 = vsel %vm605_vm12, 0.0, %v603_v36  ;;  %v485_v45 = vsel %vm483_vm13, 0.0, %v481_v37  ;;  %v7507_v28 = vpack.c.bf16 %v913_v23, %v912_v22 }
 0x26a   :  { %7852 = vpow2.f32 %v610_v38  ;;  %v609_v46 = vsub.f32 %v597_v7, %v607_v43  ;;  %v487_v47 = vsub.f32 %v474_v8, %v485_v45  ;;  %v8380_v45 = vsel %vm97_vm10, 1.0, %v8058_v29 }
 0x26b   :  { %7854 = vpow2.f32 %v488_v40  ;;  %v884_v48 = vpop.xlane.xlu0 %883  ;;  %v887_v49 = vpop.xlane.xlu1 %886  ;;  %v1117_v21 = vmul.f32 %v8380_v45, %v8306_v44  ;;  %v998_v44 = vmul.f32 %v8380_v45, %v8294_v39 }
 0x26c   :  { %v612_v50 = vmul.f32 1.442695, %v609_v46  ;;  %v490_v51 = vmul.f32 1.442695, %v487_v47  ;;  %vm888_vm14 = vcmp.eq.f32.partialorder %v884_v48, -inf  ;;  %vm889_vm15 = vcmp.eq.f32.partialorder %v887_v49, -inf }
 0x26d   :  { %v890_v52 = vsel %vm888_vm14, 0.0, %v884_v48  ;;  %v891_v53 = vsel %vm889_vm15, 0.0, %v887_v49  ;;  %v1118_v46 = vmul.f32 %v8380_v45, %v8304_v42  ;;  %v997_v48 = vmul.f32 %v8380_v45, %v8269_v34  ;;  %v6390_v34 = vld [vmem:[%s9362_s3 + $0x38] sm:$0xff] }
 0x26e   :  { %7856 = vpow2.f32 %v612_v50  ;;  %v892_v55 = vsub.f32 %v880_v20, %v890_v52  ;;  %v893_v56 = vsub.f32 %v881_v19, %v891_v53  ;;  %v6389_v52 = vld [vmem:[%s9362_s3 + $0x30] sm:$0xff] }
 0x26f   :  { %7858 = vpow2.f32 %v490_v51  ;;  %v7517_v49 = vpack.c.bf16 %v1118_v46, %v1117_v21 }
 0x270   :  { %v894_v57 = vmul.f32 1.442695, %v892_v55  ;;  %v896_v58 = vmul.f32 1.442695, %v893_v56 }
 0x272   :  { %7860 = vpow2.f32 %v894_v57 }
 0x273   :  { %7862 = vpow2.f32 %v896_v58 }
 0x274   :  { %v7853_v59 = vpop.eup %7852 }
 0x275   :  { %v7855_v60 = vpop.eup %7854  ;;  %v614_v61 = vsel %vm475_vm9, %v7853_v59, 0.0 }
 0x276   :  { %615 = vadd.xlane.f32.xlu0 %v614_v61  ;;  %v492_v0 = vsel %vm475_vm9, %v7855_v60, 0.0 }
 0x278   :  { %v7857_v62 = vpop.eup %7856 }
 0x279   :  { %v617_v63 = vsel %vm475_vm9, %v7857_v62, 0.0  ;;  %v7859_v1 = vpop.eup %7858 }
 0x27a   :  { %618 = vadd.xlane.f32.xlu1 %v617_v63  ;;  %493 = vadd.xlane.f32.xlu0 %v492_v0  ;;  %v495_v4 = vsel %vm475_vm9, %v7859_v1, 0.0 }
 0x27c   :  { %v7861_v2 = vpop.eup %7860 }
 0x27d   :  { %v898_v3 = vsel %vm475_vm9, %v7861_v2, 0.0  ;;  %v7863_v5 = vpop.eup %7862 }
 0x27e   :  { %899 = vadd.xlane.f32.xlu0 %v898_v3  ;;  %496 = vadd.xlane.f32.xlu1 %v495_v4  ;;  %v901_v6 = vsel %vm475_vm9, %v7863_v5, 0.0 }
 0x282   :  { %902 = vadd.xlane.f32.xlu1 %v901_v6  ;;  %v6350_v6 = vld [vmem:[%s9358_s27 + $0x68] sm:$0xff] }
 0x303   :  { %v616_v7 = vpop.xlane.xlu0 %615 }
 0x304   :  { %7864 = vrcp.f32 %v616_v7  ;;  %vm620_vm1 = vcmp.gt.f32.partialorder %v616_v7, 0.0  ;;  %v6351_v7 = vld [vmem:[%s9358_s27 + $0x70] sm:$0xff] }
 0x307   :  { %v494_v8 = vpop.xlane.xlu0 %493  ;;  %v619_v10 = vpop.xlane.xlu1 %618 }
 0x308   :  { %7866 = vrcp.f32 %v494_v8  ;;  %vm498_vm2 = vcmp.gt.f32.partialorder %v494_v8, 0.0  ;;  %vm621_vm3 = vcmp.gt.f32.partialorder %v619_v10, 0.0 }
 0x309   :  { %7868 = vrcp.f32 %v619_v10  ;;  %v6352_v10 = vld [vmem:[%s9358_s27 + $0x78] sm:$0xff] }
 0x30b   :  { %v900_v11 = vpop.xlane.xlu0 %899  ;;  %v497_v12 = vpop.xlane.xlu1 %496 }
 0x30c   :  { %7870 = vrcp.f32 %v497_v12  ;;  %vm499_vm4 = vcmp.gt.f32.partialorder %v497_v12, 0.0  ;;  %vm904_vm6 = vcmp.gt.f32.partialorder %v900_v11, 0.0 }
 0x30d   :  { %7872 = vrcp.f32 %v900_v11  ;;  %v7525_v11 = vpack.c.bf16 %v6352_v10, %v6351_v7 }
 0x30e   :  { %v7865_v13 = vpop.eup %7864 }
 0x30f   :  { %v624_v14 = vsel %vm620_vm1, %v7865_v13, 0.0  ;;  %v903_v17 = vpop.xlane.xlu1 %902 }
 0x310   :  { %v626_v15 = vmul.f32 %v7853_v59, %v624_v14  ;;  %7874 = vrcp.f32 %v903_v17  ;;  %vm905_vm11 = vcmp.gt.f32.partialorder %v903_v17, 0.0 }
 0x312   :  { %v7867_v16 = vpop.eup %7866  ;;  %6981 = vmatprep.mubr.msk.f32.mxu1 %vm475_vm9, %v626_v15 }
 0x313   :  { %v7869_v19 = vpop.eup %7868  ;;  %v502_v20 = vsel %vm498_vm2, %v7867_v16, 0.0 }
 0x314   :  { %v504_v24 = vmul.f32 %v7855_v60, %v502_v20  ;;  %v625_v25 = vsel %vm621_vm3, %v7869_v19, 0.0 }
 0x315   :  { %v627_v26 = vmul.f32 %v7857_v62, %v625_v25 }
 0x316   :  { %v7871_v27 = vpop.eup %7870 }
 0x317   :  { %6982 = vmatmul.mubr.msk.f32.vlgmr.msra.gmra.mrb[4].mxu1 %vm475_vm9, %v627_v26  ;;  %v7873_v32 = vpop.eup %7872  ;;  %v503_v36 = vsel %vm499_vm4, %v7871_v27, 0.0 }
 0x318   :  { %7500 = vmatpush3.bf16.msra.mxu1 %v8331_v54  ;;  %6988 = vmatprep.mubr.msk.f32.mxu1 %vm475_vm9, %v504_v24  ;;  %v908_v37 = vsel %vm904_vm6, %v7873_v32, 0.0  ;;  %v505_v38 = vmul.f32 %v7859_v1, %v503_v36  ;;  %v6393_v24 = vld [vmem:[%s9325_s9 + $0x3] ss:$0 sm:$0xff] }
 0x319   :  { %7508 = vmatprep.subr.bf16.mxu1 %v7507_v28  ;;  %v910_v40 = vmul.f32 %v7861_v2, %v908_v37 }
 0x31a   :  { %v7875_v43 = vpop.eup %7874 }
 0x31b   :  { %v909_v54 = vsel %vm905_vm11, %v7875_v43, 0.0 }
 0x31c   :  { %v911_v47 = vmul.f32 %v7863_v5, %v909_v54  ;;  %v6349_v5 = vld [vmem:[%s9358_s27 + $0x60] sm:$0xff] }
 0x31d   :  { %v7521_v8 = vpack.c.bf16 %v6350_v6, %v6349_v5  ;;  %v6396_v6 = vld [vmem:[%s9326_s10] ss:$0 sm:$0xff] }
 0x31f   :  { %6989 = vmatmul.mubr.msk.f32.vlgmr.msra.gmra.mrb[4].mxu1 %vm475_vm9, %v505_v38  ;;  %7522 = vmatprep.subr.bf16.mxu0 %v7521_v8 }
 0x320   :  { %7510 = vmatpush3.bf16.msra.mxu1 %v7507_v28  ;;  %7002 = vmatprep.mubr.msk.f32.mxu1 %vm475_vm9, %v910_v40 }
 0x321   :  { %7513 = vmatprep.subr.msk.bf16.mxu1 %vm8265_vm5, %v8271_v35  ;;  %7524 = vmatpush3.bf16.msra.mxu0 %v7521_v8 }
 0x322   :  { %7526 = vmatprep.subr.bf16.mxu0 %v7525_v11 }
 0x325   :  { %7528 = vmatpush3.bf16.msra.mxu0 %v7525_v11  ;;  %v6397_v11 = vld [vmem:[%s9327_s11] ss:$0 sm:$0xff] }
 0x327   :  { %7003 = vmatmul.mubr.msk.f32.vlgmr.msra.gmra.mrb[4].mxu1 %vm475_vm9, %v911_v47 }
 0x328   :  { %7009 = vmatprep.mubr.msk.f32.mxu1 %vm136_vm0, %v997_v48 }
 0x329   :  { %7516 = vmatpush3.bf16.xpose.msk.msra.mxu1 %vm8265_vm5, %v8271_v35 }
 0x32a   :  { %7518 = vmatprep.subr.bf16.mxu1 %v7517_v49 }
 0x330   :  { %7010 = vmatmul.mubr.msk.f32.vlgmr.msra.gmra.mrb[6].mxu1 %vm136_vm0, %v998_v44 }
 0x331   :  { %7520 = vmatpush3.bf16.msra.mxu1 %v7517_v49 }
 0x403   :  { %v7011_v42 = vpop.f32.mrb[6].mxu1 }
 0x404   :  { %v1081_v50 = vmul.f32 0.35355338, %v7011_v42  ;;  %v1071_v51 = vpop.f32.mrb[7].mxu1  ;;  %v6404_v42 = vld [vmem:[%s9358_s27 + $0xa8] sm:$0xff] }
 0x405   :  { %v1080_v53 = vmul.f32 0.35355338, %v1071_v51  ;;  %v6406_v51 = vld [vmem:[%s9358_s27 + $0xb8] sm:$0xff] }
 0x406   :  { %v1086_v35 = vadd.f32 %v6390_v34, %v1081_v50  ;;  %v6405_v50 = vld [vmem:[%s9358_s27 + $0xb0] sm:$0xff] }
 0x407   :  { %v1085_v55 = vadd.f32 %v6389_v52, %v1080_v53  ;;  %v7541_v52 = vpack.c.bf16 %v6406_v51, %v6405_v50  ;;  %v102_v53 = vld [vmem:[%s9363_s2] sm:$0xff] }
 0x408   :  { %v1090_v56 = vsel %vm475_vm9, %v1086_v35, -inf }
 0x409   :  { %1091 = vmax.xlane.f32.xlu1 %v1090_v56  ;;  %v1087_v39 = vsel %vm475_vm9, %v1085_v55, -inf  ;;  %v6399_v56 = vld [vmem:[%s9358_s27 + $0x88] sm:$0xff] }
 0x40a   :  { %1088 = vmax.xlane.f32.xlu0 %v1087_v39 }
 0x496   :  { %v1092_v57 = vpop.xlane.xlu1 %1091 }
 0x497   :  { %vm1094_vm12 = vcmp.eq.f32.partialorder %v1092_v57, -inf  ;;  %v1089_v58 = vpop.xlane.xlu0 %1088 }
 0x498   :  { %v1096_v59 = vsel %vm1094_vm12, 0.0, %v1092_v57  ;;  %vm1093_vm13 = vcmp.eq.f32.partialorder %v1089_v58, -inf  ;;  %v6400_v57 = vld [vmem:[%s9358_s27 + $0x90] sm:$0xff] }
 0x499   :  { %v1098_v60 = vsub.f32 %v1086_v35, %v1096_v59  ;;  %v1095_v61 = vsel %vm1093_vm13, 0.0, %v1089_v58  ;;  %v103_v35 = vld [vmem:[%s9363_s2 + $0x8] sm:$0xff]  ;;  %v6401_v58 = vld [vmem:[%s9358_s27 + $0x98] sm:$0xff] }
 0x49a   :  { %v1097_v62 = vsub.f32 %v1085_v55, %v1095_v61  ;;  %v6398_v55 = vld [vmem:[%s9358_s27 + $0x80] sm:$0xff]  ;;  %v7533_v59 = vpack.c.bf16 %v6401_v58, %v6400_v57  ;;  %v6409_v61 = vld [vmem:[%s9358_s27 + $0xc8] sm:$0xff] }
 0x49b   :  { %v1101_v63 = vmul.f32 1.442695, %v1098_v60  ;;  %v7529_v39 = vpack.c.bf16 %v6399_v56, %v6398_v55  ;;  %v6408_v60 = vld [vmem:[%s9358_s27 + $0xc0] sm:$0xff]  ;;  %v6436_v55 = vld [vmem:[%s9364_s4 + $0x18] sm:$0xff]  ;;  %v6435_v56 = vld [vmem:[%s9364_s4 + $0x10] sm:$0xff] }
 0x49c   :  { %v1099_v0 = vmul.f32 1.442695, %v1097_v62  ;;  %v7545_v62 = vpack.c.bf16 %v6409_v61, %v6408_v60 }
 0x49d   :  { %7876 = vpow2.f32 %v1101_v63  ;;  %7530 = vmatprep.subr.bf16.mxu0 %v7529_v39 }
 0x49e   :  { %7878 = vpow2.f32 %v1099_v0 }
 0x4a7   :  { %v7877_v1 = vpop.eup %7876 }
 0x4a8   :  { %v7879_v2 = vpop.eup %7878  ;;  %v1106_v3 = vsel %vm475_vm9, %v7877_v1, 0.0 }
 0x4a9   :  { %1107 = vadd.xlane.f32.xlu1 %v1106_v3  ;;  %v1103_v4 = vsel %vm475_vm9, %v7879_v2, 0.0 }
 0x4aa   :  { %1104 = vadd.xlane.f32.xlu0 %v1103_v4 }
 0x536   :  { %v1108_v12 = vpop.xlane.xlu1 %1107 }
 0x537   :  { %7880 = vrcp.f32 %v1108_v12  ;;  %v1105_v13 = vpop.xlane.xlu0 %1104  ;;  %vm1110_vm14 = vcmp.gt.f32.partialorder %v1108_v12, 0.0 }
 0x538   :  { %7882 = vrcp.f32 %v1105_v13  ;;  %vm1109_vm15 = vcmp.gt.f32.partialorder %v1105_v13, 0.0 }
 0x541   :  { %v7881_v14 = vpop.eup %7880 }
 0x542   :  { %v7883_v15 = vpop.eup %7882  ;;  %v1114_v16 = vsel %vm1110_vm14, %v7881_v14, 0.0  ;;  %v6410_v14 = vld [vmem:[%s9358_s27 + $0xd0] sm:$0xff] }
 0x543   :  { %v1113_v17 = vsel %vm1109_vm15, %v7883_v15, 0.0  ;;  %v1116_v20 = vmul.f32 %v7877_v1, %v1114_v16  ;;  %v6411_v15 = vld [vmem:[%s9358_s27 + $0xd8] sm:$0xff] }
 0x544   :  { %v1115_v19 = vmul.f32 %v7879_v2, %v1113_v17 }
 0x546   :  { %7016 = vmatprep.mubr.msk.f32.mxu1 %vm475_vm9, %v1115_v19  ;;  %v7549_v19 = vpack.c.bf16 %v6411_v15, %v6410_v14 }
 0x547   :  { %7017 = vmatmul.mubr.msk.f32.vlgmr.msra.gmra.mrb[4].mxu1 %vm475_vm9, %v1116_v20  ;;  %v6421_v20 = vld [vmem:[%s9325_s9 + $0x5] ss:$0 sm:$0xff] }
 0x548   :  { %7049 = vmatprep.mubr.msk.f32.mxu1 %vm136_vm0, %v102_v53 }
 0x61a   :  { %v7018_v22 = vpop.f32.mrb[4].mxu1 }
 0x61b   :  { %v1191_v23 = vpop.f32.mrb[5].mxu1 }
 0x61c   :  { %7027 = vmatprep.mubr.msk.f32.mxu0 %vm136_vm0, %v1191_v23 }
 0x61d   :  { %7028 = vmatmul.mubr.msk.f32.vlgmr.msra.gmra.mrb[8].mxu0 %vm136_vm0, %v7018_v22 }
 0x61e   :  { %7532 = vmatpush3.bf16.msra.mxu0 %v7529_v39 }
 0x61f   :  { %7534 = vmatprep.subr.bf16.mxu0 %v7533_v59 }
 0x622   :  { %7536 = vmatpush3.bf16.msra.mxu0 %v7533_v59 }
 0x623   :  { %7546 = vmatprep.subr.bf16.mxu0 %v7545_v62 }
 0x6f0   :  { %v7029_v25 = vpop.f32.mrb[8].mxu0 }
 0x6f1   :  { %v1286_v26 = vadd.f32 %v7029_v25, %v6393_v24  ;;  %v1280_v27 = vpop.f32.mrb[9].mxu0 }
 0x6f2   :  { %v1281_v28 = vadd.f32 %v6393_v24, %v1280_v27  ;;  %v6418_v27 = vld [vmem:[%s9325_s9 + $0x4] ss:$0 sm:$0xff] }
 0x6f3   :  { %v1290_v32 = vadd.f32 %v1286_v26, %v8236_v18 }
 0x6f4   :  { %v1289_v36 = vadd.f32 %v1281_v28, %v8209_v9  ;;  %v6403_v9 = vld [vmem:[%s9358_s27 + $0xa0] sm:$0xff] }
 0x6f5   :  { %v1296_v37 = vsel %vm136_vm0, %v1290_v32, 0.0  ;;  %v7537_v34 = vpack.c.bf16 %v6404_v42, %v6403_v9 }
 0x6f6   :  { %1297 = vadd.xlane.f32.xlu1 %v1296_v37  ;;  %v1293_v38 = vsel %vm136_vm0, %v1289_v36, 0.0 }
 0x6f7   :  { %1294 = vadd.xlane.f32.xlu0 %v1293_v38  ;;  %7538 = vmatprep.subr.bf16.mxu1 %v7537_v34 }
 0x6f8   :  { %7540 = vmatpush3.bf16.msra.mxu1 %v7537_v34 }
 0x6f9   :  { %7542 = vmatprep.subr.bf16.mxu1 %v7541_v52 }
 0x6fc   :  { %7544 = vmatpush3.bf16.msra.mxu1 %v7541_v52 }
 0x6ff   :  { %7050 = vmatmul.mubr.msk.f32.vlgmr.msra.gmra.mrb[8].mxu1 %vm136_vm0, %v103_v35 }
 0x783   :  { %v1298_v40 = vpop.xlane.xlu1 %1297 }
 0x784   :  { %v1301_v43 = vmul.f32 0.03125, %v1298_v40  ;;  %v1295_v54 = vpop.xlane.xlu0 %1294 }
 0x785   :  { %v1300_v21 = vmul.f32 0.03125, %v1295_v54 }
 0x786   :  { %v1303_v46 = vsub.f32 %v1290_v32, %v1301_v43 }
 0x787   :  { %v1302_v47 = vsub.f32 %v1289_v36, %v1300_v21 }
 0x788   :  { %v1305_v48 = vmul.f32 %v1303_v46, %v1303_v46 }
 0x789   :  { %v1304_v49 = vmul.f32 %v1302_v47, %v1302_v47 }
 0x78a   :  { %v1309_v44 = vsel %vm136_vm0, %v1305_v48, 0.0 }
 0x78b   :  { %1310 = vadd.xlane.f32.xlu1 %v1309_v44  ;;  %v1306_v18 = vsel %vm136_vm0, %v1304_v49, 0.0 }
 0x78c   :  { %1307 = vadd.xlane.f32.xlu0 %v1306_v18 }
 0x7d2   :  { %v7051_v22 = vpop.f32.mrb[8].mxu1 }
 0x7d3   :  { %v1535_v23 = vadd.f32 %v7051_v22, %v6421_v20  ;;  %v1529_v24 = vpop.f32.mrb[9].mxu1 }
 0x7d4   :  { %v1530_v25 = vadd.f32 %v6421_v20, %v1529_v24 }
 0x7d6   :  { %v8494_v26 = vpack.c.bf16 %v1535_v23, %v1530_v25 }
 0x7d8   :  { %7555 = vmatprep.subr.msk.bf16.mxu1 %vm8265_vm5, %v8494_v26 }
 0x7d9   :  { %7558 = vmatpush3.bf16.xpose.msk.msra.mxu1 %vm8265_vm5, %v8494_v26 }
 0x818   :  { %v1311_v63 = vpop.xlane.xlu1 %1310 }
 0x819   :  { %v1313_v0 = vmul.f32 0.03125, %v1311_v63  ;;  %v1308_v1 = vpop.xlane.xlu0 %1307 }
 0x81a   :  { %v1312_v2 = vmul.f32 0.03125, %v1308_v1 }
 0x81b   :  { %v1315_v3 = vadd.f32 1e-05, %v1313_v0  ;;  %v1710_v0 = vld [vmem:[%s9364_s4] sm:$0xff] }
 0x81c   :  { %v1314_v4 = vadd.f32 1e-05, %v1312_v2 }
 0x81d   :  { %7884 = vrsqrt.f32 %v1315_v3 }
 0x81e   :  { %7886 = vrsqrt.f32 %v1314_v4 }
 0x827   :  { %v7885_v5 = vpop.eup %7884 }
 0x828   :  { %v7887_v7 = vpop.eup %7886  ;;  %v1319_v8 = vmul.f32 %v7885_v5, %v1303_v46  ;;  %v6424_v46 = vld [vmem:[%s9325_s9 + $0x6] ss:$0 sm:$0xff] }
 0x829   :  { %v1318_v10 = vmul.f32 %v7887_v7, %v1302_v47  ;;  %v6446_v7 = vld [vmem:[%s9364_s4 + $0x28] sm:$0xff] }
 0x82a   :  { %v1327_v12 = vmul.f32 %v6396_v6, %v1319_v8 }
 0x82b   :  { %v1326_v13 = vmul.f32 %v6396_v6, %v1318_v10 }
 0x82c   :  { %v8483_v17 = vadd.f32 %v6397_v11, %v1327_v12  ;;  %v6445_v12 = vld [vmem:[%s9364_s4 + $0x20] sm:$0xff] }
 0x82d   :  { %v8481_v16 = vadd.f32 %v6397_v11, %v1326_v13 }
 0x82f   :  { %7038 = vmatprep.mubr.msk.f32.mxu0 %vm136_vm0, %v8481_v16 }
 0x830   :  { %7039 = vmatmul.mubr.msk.f32.vlgmr.msra.gmra.mrb[10].mxu0 %vm136_vm0, %v8483_v17 }
 0x831   :  { %7548 = vmatpush3.bf16.msra.mxu0 %v7545_v62  ;;  %7060 = vmatprep.mubr.msk.f32.mxu0 %vm136_vm0, %v102_v53  ;;  %v1711_v62 = vld [vmem:[%s9364_s4 + $0x8] sm:$0xff] }
 0x832   :  { %7550 = vmatprep.subr.bf16.mxu0 %v7549_v19 }
 0x835   :  { %7552 = vmatpush3.bf16.msra.mxu0 %v7549_v19 }
 0x836   :  { %7561 = vmatprep.subr.msk.bf16.mxu0 %vm8265_vm5, %v8494_v26 }
 0x838   :  { %7061 = vmatmul.mubr.msk.f32.vlgmr.msra.gmra.mrb[12].mxu0 %vm136_vm0, %v103_v35 }
 0x83e   :  { %7564 = vmatpush3.bf16.xpose.msk.msra.mxu0 %vm8265_vm5, %v8494_v26 }
 0x83f   :  { %7575 = vmatprep.subr.msk.bf16.mxu0 %vm8265_vm5, %v8494_v26 }
 0x903   :  { %v7040_v28 = vpop.f32.mrb[10].mxu0 }
 0x904   :  { %v8514_v32 = vadd.f32 %v7040_v28, %v6418_v27  ;;  %v1442_v36 = vpop.f32.mrb[11].mxu0 }
 0x905   :  { %v8516_v37 = vadd.f32 %v6418_v27, %v1442_v36 }
 0x906   :  { %v1620_v43 = vmul.f32 %v8258_v30, %v8514_v32  ;;  %v1747_v54 = vmul.f32 %v8261_v31, %v8514_v32  ;;  %v2031_v42 = vmul.f32 %v8302_v41, %v8514_v32 }
 0x907   :  { %v1619_v38 = vmul.f32 %v8258_v30, %v8516_v37  ;;  %v1746_v40 = vmul.f32 %v8261_v31, %v8516_v37  ;;  %v2030_v21 = vmul.f32 %v8302_v41, %v8516_v37 }
 0x909   :  { %7067 = vmatprep.mubr.msk.f32.mxu1 %vm136_vm0, %v1619_v38  ;;  %7074 = vmatprep.mubr.msk.f32.mxu0 %vm136_vm0, %v1746_v40 }
 0x90a   :  { %7068 = vmatmul.mubr.msk.f32.vlgmr.msra.gmra.mrb[10].mxu1 %vm136_vm0, %v1620_v43  ;;  %7075 = vmatmul.mubr.msk.f32.vlgmr.msra.gmra.mrb[14].mxu0 %vm136_vm0, %v1747_v54 }
 0x90b   :  { %7578 = vmatpush3.bf16.xpose.msk.msra.mxu0 %vm8265_vm5, %v8494_v26  ;;  %7095 = vmatprep.mubr.msk.f32.mxu0 %vm136_vm0, %v2030_v21  ;;  %v7062_v47 = vpop.f32.mrb[12].mxu0 }
 0x90c   :  { %v8539_v48 = vadd.f32 %v7062_v47, %v6424_v46  ;;  %v1610_v49 = vpop.f32.mrb[13].mxu0 }
 0x90d   :  { %v8541_v44 = vadd.f32 %v6424_v46, %v1610_v49 }
 0x90e   :  { %v1867_v18 = vmul.f32 %v8261_v31, %v8539_v48  ;;  %v1745_v51 = vmul.f32 %v8258_v30, %v8539_v48 }
 0x90f   :  { %v1866_v9 = vmul.f32 %v8261_v31, %v8541_v44  ;;  %v1744_v50 = vmul.f32 %v8258_v30, %v8541_v44 }
 0x911   :  { %v7565_v34 = vpack.c.bf16 %v1867_v18, %v1866_v9  ;;  %v8554_v52 = vpack.c.bf16 %v1745_v51, %v1744_v50 }
 0x912   :  { %7096 = vmatmul.mubr.msk.f32.vlgmr.msra.gmra.mrb[16].mxu0 %vm136_vm0, %v2031_v42 }
 0x913   :  { %7566 = vmatprep.subr.bf16.mxu1 %v7565_v34 }
 0x914   :  { %7568 = vmatpush3.bf16.msra.mxu1 %v7565_v34 }
 0x915   :  { %7570 = vmatprep.subr.bf16.mxu1 %v8554_v52 }
 0x9dd   :  { %v7069_v53 = vpop.f32.mrb[10].mxu1  ;;  %v7076_v35 = vpop.f32.mrb[14].mxu0 }
 0x9de   :  { %v1709_v39 = vmul.f32 0.35355338, %v7069_v53  ;;  %v1830_v57 = vmul.f32 0.35355338, %v7076_v35  ;;  %v1699_v58 = vpop.f32.mrb[11].mxu1  ;;  %v1820_v59 = vpop.f32.mrb[15].mxu0 }
 0x9df   :  { %v1708_v60 = vmul.f32 0.35355338, %v1699_v58  ;;  %v1829_v61 = vmul.f32 0.35355338, %v1820_v59 }
 0x9e0   :  { %v1835_v63 = vadd.f32 %v6436_v55, %v1830_v57  ;;  %v1713_v3 = vadd.f32 %v1711_v62, %v1709_v39 }
 0x9e1   :  { %v1834_v1 = vadd.f32 %v6435_v56, %v1829_v61  ;;  %v1712_v5 = vadd.f32 %v1710_v0, %v1708_v60 }
 0x9e2   :  { %v1839_v2 = vsel %vm475_vm9, %v1835_v63, -inf  ;;  %v1717_v11 = vsel %vm475_vm9, %v1713_v3, -inf }
 0x9e3   :  { %1840 = vmax.xlane.f32.xlu1 %v1839_v2  ;;  %v1836_v4 = vsel %vm475_vm9, %v1834_v1, -inf  ;;  %v1714_v14 = vsel %vm475_vm9, %v1712_v5, -inf }
 0x9e4   :  { %1837 = vmax.xlane.f32.xlu0 %v1836_v4 }
 0x9e5   :  { %v7097_v6 = vpop.f32.mrb[16].mxu0 }
 0x9e6   :  { %v2114_v8 = vmul.f32 0.35355338, %v7097_v6  ;;  %v2104_v10 = vpop.f32.mrb[17].mxu0 }
 0x9e7   :  { %v2113_v13 = vmul.f32 0.35355338, %v2104_v10  ;;  %1718 = vmax.xlane.f32.xlu1 %v1717_v11 }
 0x9e8   :  { %1715 = vmax.xlane.f32.xlu0 %v1714_v14  ;;  %v2119_v15 = vadd.f32 %v6446_v7, %v2114_v8 }
 0x9e9   :  { %v2118_v19 = vadd.f32 %v6445_v12, %v2113_v13 }
 0x9ea   :  { %v2123_v20 = vsel %vm475_vm9, %v2119_v15, -inf }
 0x9eb   :  { %2124 = vmax.xlane.f32.xlu1 %v2123_v20  ;;  %v2120_v22 = vsel %vm475_vm9, %v2118_v19, -inf }
 0x9ec   :  { %2121 = vmax.xlane.f32.xlu0 %v2120_v22 }
 0xa70   :  { %v1841_v23 = vpop.xlane.xlu1 %1840 }
 0xa71   :  { %vm1843_vm1 = vcmp.eq.f32.partialorder %v1841_v23, -inf  ;;  %v1838_v24 = vpop.xlane.xlu0 %1837 }
 0xa72   :  { %v1845_v25 = vsel %vm1843_vm1, 0.0, %v1841_v23  ;;  %vm1842_vm2 = vcmp.eq.f32.partialorder %v1838_v24, -inf }
 0xa73   :  { %v1847_v27 = vsub.f32 %v1835_v63, %v1845_v25  ;;  %v1844_v28 = vsel %vm1842_vm2, 0.0, %v1838_v24 }
 0xa74   :  { %v1846_v36 = vsub.f32 %v1834_v1, %v1844_v28  ;;  %v1719_v38 = vpop.xlane.xlu1 %1718 }
 0xa75   :  { %v1850_v40 = vmul.f32 1.442695, %v1847_v27  ;;  %vm1721_vm3 = vcmp.eq.f32.partialorder %v1719_v38, -inf  ;;  %v1716_v43 = vpop.xlane.xlu0 %1715 }
 0xa76   :  { %v1848_v54 = vmul.f32 1.442695, %v1846_v36  ;;  %v1723_v21 = vsel %vm1721_vm3, 0.0, %v1719_v38  ;;  %vm1720_vm4 = vcmp.eq.f32.partialorder %v1716_v43, -inf }
 0xa77   :  { %7888 = vpow2.f32 %v1850_v40  ;;  %v1725_v46 = vsub.f32 %v1713_v3, %v1723_v21  ;;  %v1722_v47 = vsel %vm1720_vm4, 0.0, %v1716_v43  ;;  %vm2700_vm4 = vcmask 523264  }
 0xa78   :  { %7890 = vpow2.f32 %v1848_v54  ;;  %v1724_v49 = vsub.f32 %v1712_v5, %v1722_v47  ;;  %v2125_v18 = vpop.xlane.xlu1 %2124  ;;  %v2356_v47 = vmul.f32 %v8380_v45, %v8539_v48 }
 0xa79   :  { %v1728_v9 = vmul.f32 1.442695, %v1725_v46  ;;  %vm2127_vm6 = vcmp.eq.f32.partialorder %v2125_v18, -inf  ;;  %v2122_v42 = vpop.xlane.xlu0 %2121  ;;  %v2355_v46 = vmul.f32 %v8380_v45, %v8541_v44 }
 0xa7a   :  { %v1726_v34 = vmul.f32 1.442695, %v1724_v49  ;;  %v2129_v50 = vsel %vm2127_vm6, 0.0, %v2125_v18  ;;  %vm2126_vm7 = vcmp.eq.f32.partialorder %v2122_v42, -inf  ;;  %v2235_v18 = vmul.f32 %v8380_v45, %v8516_v37  ;;  %v6454_v37 = vld [vmem:[%s9364_s4 + $0x38] sm:$0xff] }
 0xa7b   :  { %7892 = vpow2.f32 %v1728_v9  ;;  %v2131_v51 = vsub.f32 %v2119_v15, %v2129_v50  ;;  %v2128_v53 = vsel %vm2126_vm7, 0.0, %v2122_v42  ;;  %v2150_v15 = vmul.f32 %v8302_v41, %v8541_v44  ;;  %v6453_v50 = vld [vmem:[%s9364_s4 + $0x30] sm:$0xff] }
 0xa7c   :  { %7894 = vpow2.f32 %v1726_v34  ;;  %v2130_v35 = vsub.f32 %v2118_v19, %v2128_v53  ;;  %v2151_v19 = vmul.f32 %v8302_v41, %v8539_v48  ;;  %v7589_v9 = vpack.c.bf16 %v2356_v47, %v2355_v46 }
 0xa7d   :  { %v2134_v55 = vmul.f32 1.442695, %v2131_v51  ;;  %v2236_v44 = vmul.f32 %v8380_v45, %v8514_v32 }
 0xa7e   :  { %v2132_v56 = vmul.f32 1.442695, %v2130_v35  ;;  %v7579_v27 = vpack.c.bf16 %v2151_v19, %v2150_v15 }
 0xa7f   :  { %7896 = vpow2.f32 %v2134_v55 }
 0xa80   :  { %7898 = vpow2.f32 %v2132_v56 }
 0xa81   :  { %v7889_v39 = vpop.eup %7888 }
 0xa82   :  { %v7891_v57 = vpop.eup %7890  ;;  %v1855_v58 = vsel %vm475_vm9, %v7889_v39, 0.0 }
 0xa83   :  { %1856 = vadd.xlane.f32.xlu1 %v1855_v58  ;;  %v1852_v59 = vsel %vm475_vm9, %v7891_v57, 0.0 }
 0xa84   :  { %1853 = vadd.xlane.f32.xlu0 %v1852_v59 }
 0xa85   :  { %v7893_v60 = vpop.eup %7892 }
 0xa86   :  { %v7895_v61 = vpop.eup %7894  ;;  %v1733_v62 = vsel %vm475_vm9, %v7893_v60, 0.0 }
 0xa87   :  { %1734 = vadd.xlane.f32.xlu1 %v1733_v62  ;;  %v1730_v63 = vsel %vm475_vm9, %v7895_v61, 0.0 }
 0xa88   :  { %1731 = vadd.xlane.f32.xlu0 %v1730_v63 }
 0xa89   :  { %v7897_v0 = vpop.eup %7896 }
 0xa8a   :  { %v7899_v1 = vpop.eup %7898  ;;  %v2139_v2 = vsel %vm475_vm9, %v7897_v0, 0.0 }
 0xa8b   :  { %2140 = vadd.xlane.f32.xlu1 %v2139_v2  ;;  %v2136_v3 = vsel %vm475_vm9, %v7899_v1, 0.0  ;;  %v6413_v2 = vld [vmem:[%s9358_s27 + $0xe0] sm:$0xff] }
 0xa8c   :  { %2137 = vadd.xlane.f32.xlu0 %v2136_v3  ;;  %v6414_v3 = vld [vmem:[%s9358_s27 + $0xe8] sm:$0xff] }
 0xb10   :  { %v1857_v4 = vpop.xlane.xlu1 %1856 }
 0xb11   :  { %7900 = vrcp.f32 %v1857_v4  ;;  %v1854_v5 = vpop.xlane.xlu0 %1853  ;;  %vm1859_vm8 = vcmp.gt.f32.partialorder %v1857_v4, 0.0  ;;  %v6415_v4 = vld [vmem:[%s9358_s27 + $0xf0] sm:$0xff] }
 0xb12   :  { %7902 = vrcp.f32 %v1854_v5  ;;  %vm1858_vm10 = vcmp.gt.f32.partialorder %v1854_v5, 0.0  ;;  %v7593_v5 = vpack.c.bf16 %v6414_v3, %v6413_v2  ;;  %v2686_v2 = vld [vmem:[%s9330_s14 + $0x8] sm:$0xff] }
 0xb14   :  { %v1735_v6 = vpop.xlane.xlu1 %1734  ;;  %7594 = vmatprep.subr.bf16.mxu0 %v7593_v5 }
 0xb15   :  { %v1732_v7 = vpop.xlane.xlu0 %1731  ;;  %vm1737_vm12 = vcmp.gt.f32.partialorder %v1735_v6, 0.0  ;;  %7596 = vmatpush3.bf16.msra.mxu0 %v7593_v5  ;;  %v2688_v5 = vld [vmem:[%s9330_s14 + $0x18] sm:$0xff] }
 0xb16   :  { %7904 = vrcp.f32 %v1732_v7  ;;  %vm1736_vm11 = vcmp.gt.f32.partialorder %v1732_v7, 0.0 }
 0xb17   :  { %7906 = vrcp.f32 %v1735_v6  ;;  %v6416_v6 = vld [vmem:[%s9358_s27 + $0xf8] sm:$0xff] }
 0xb18   :  { %v2141_v13 = vpop.xlane.xlu1 %2140  ;;  %v7597_v7 = vpack.c.bf16 %v6416_v6, %v6415_v4  ;;  %v2687_v4 = vld [vmem:[%s9330_s14 + $0x10] sm:$0xff]  ;;  %v2689_v6 = vld [vmem:[%s9330_s14 + $0x20] sm:$0xff] }
 0xb19   :  { %v2138_v8 = vpop.xlane.xlu0 %2137  ;;  %vm2143_vm14 = vcmp.gt.f32.partialorder %v2141_v13, 0.0 }
 0xb1a   :  { %7908 = vrcp.f32 %v2138_v8  ;;  %vm2142_vm13 = vcmp.gt.f32.partialorder %v2138_v8, 0.0  ;;  %7598 = vmatprep.subr.bf16.mxu0 %v7597_v7 }
 0xb1b   :  { %v7901_v10 = vpop.eup %7900  ;;  %7910 = vrcp.f32 %v2141_v13  ;;  %7600 = vmatpush3.bf16.msra.mxu0 %v7597_v7  ;;  %v7613_v7 = vpack.c.bf16 %v2688_v5, %v2687_v4  ;;  %v6477_v4 = vld [vmem:[%s9358_s27 + $0x118] sm:$0xff]  ;;  %v6486_v5 = vld [vmem:[%s9358_s27 + $0x150] sm:$0xff] }
 0xb1c   :  { %v7903_v11 = vpop.eup %7902  ;;  %v1863_v12 = vsel %vm1859_vm8, %v7901_v10, 0.0 }
 0xb1d   :  { %v1862_v14 = vsel %vm1858_vm10, %v7903_v11, 0.0  ;;  %v1865_v22 = vmul.f32 %v7889_v39, %v1863_v12 }
 0xb1e   :  { %v1864_v20 = vmul.f32 %v7891_v57, %v1862_v14 }
 0xb20   :  { %v7905_v23 = vpop.eup %7904  ;;  %7081 = vmatprep.mubr.msk.f32.mxu1 %vm475_vm9, %v1864_v20 }
 0xb21   :  { %v7907_v24 = vpop.eup %7906  ;;  %v1740_v25 = vsel %vm1736_vm11, %v7905_v23, 0.0  ;;  %7082 = vmatmul.mubr.msk.f32.vlgmr.msra.gmra.mrb[12].mxu1 %vm475_vm9, %v1865_v22  ;;  %v6457_v23 = vld [vmem:[%s9325_s9 + $0x7] ss:$0 sm:$0xff] }
 0xb22   :  { %v1742_v28 = vmul.f32 %v7895_v61, %v1740_v25  ;;  %7572 = vmatpush3.bf16.msra.mxu1 %v8554_v52  ;;  %v1741_v38 = vsel %vm1737_vm12, %v7907_v24, 0.0 }
 0xb23   :  { %7580 = vmatprep.subr.bf16.mxu1 %v7579_v27  ;;  %v1743_v43 = vmul.f32 %v7893_v60, %v1741_v38 }
 0xb24   :  { %v7909_v36 = vpop.eup %7908  ;;  %7088 = vmatprep.mubr.msk.f32.mxu1 %vm475_vm9, %v1742_v28 }
 0xb25   :  { %v2146_v40 = vsel %vm2142_vm13, %v7909_v36, 0.0  ;;  %v7911_v21 = vpop.eup %7910 }
 0xb26   :  { %v2148_v54 = vmul.f32 %v7899_v1, %v2146_v40  ;;  %v2147_v52 = vsel %vm2143_vm14, %v7911_v21, 0.0 }
 0xb27   :  { %v2149_v49 = vmul.f32 %v7897_v0, %v2147_v52 }
 0xb29   :  { %7089 = vmatmul.mubr.msk.f32.vlgmr.msra.gmra.mrb[12].mxu1 %vm475_vm9, %v1743_v43 }
 0xb2a   :  { %7582 = vmatpush3.bf16.msra.mxu1 %v7579_v27  ;;  %7102 = vmatprep.mubr.msk.f32.mxu1 %vm475_vm9, %v2148_v54 }
 0xb2b   :  { %7585 = vmatprep.subr.msk.bf16.mxu1 %vm8265_vm5, %v8494_v26 }
 0xb31   :  { %7103 = vmatmul.mubr.msk.f32.vlgmr.msra.gmra.mrb[12].mxu1 %vm475_vm9, %v2149_v49 }
 0xb32   :  { %7109 = vmatprep.mubr.msk.f32.mxu1 %vm136_vm0, %v2235_v18 }
 0xb33   :  { %7588 = vmatpush3.bf16.xpose.msk.msra.mxu1 %vm8265_vm5, %v8494_v26 }
 0xb34   :  { %7590 = vmatprep.subr.bf16.mxu1 %v7589_v9 }
 0xb3a   :  { %7110 = vmatmul.mubr.msk.f32.vlgmr.msra.gmra.mrb[14].mxu1 %vm136_vm0, %v2236_v44 }
 0xb3b   :  { %7592 = vmatpush3.bf16.msra.mxu1 %v7589_v9 }
 0xc0d   :  { %v7111_v48 = vpop.f32.mrb[14].mxu1 }
 0xc0e   :  { %v2319_v42 = vmul.f32 0.35355338, %v7111_v48  ;;  %v2309_v34 = vpop.f32.mrb[15].mxu1  ;;  %v2576_v48 = vld [vmem:[%s9328_s12 + $0x8] sm:$0xff] }
 0xc0f   :  { %v2318_v51 = vmul.f32 0.35355338, %v2309_v34  ;;  %v2578_v34 = vld [vmem:[%s9328_s12 + $0x18] sm:$0xff] }
 0xc10   :  { %v2324_v26 = vadd.f32 %v6454_v37, %v2319_v42  ;;  %v2577_v42 = vld [vmem:[%s9328_s12 + $0x10] sm:$0xff] }
 0xc11   :  { %v2323_v53 = vadd.f32 %v6453_v50, %v2318_v51  ;;  %v7605_v50 = vpack.c.bf16 %v2578_v34, %v2577_v42 }
 0xc12   :  { %v2328_v35 = vsel %vm475_vm9, %v2324_v26, -inf }
 0xc13   :  { %2329 = vmax.xlane.f32.xlu1 %v2328_v35  ;;  %v2325_v32 = vsel %vm475_vm9, %v2323_v53, -inf }
 0xc14   :  { %2326 = vmax.xlane.f32.xlu0 %v2325_v32 }
 0xca0   :  { %v2330_v55 = vpop.xlane.xlu1 %2329 }
 0xca1   :  { %vm2332_vm15 = vcmp.eq.f32.partialorder %v2330_v55, -inf  ;;  %v2327_v56 = vpop.xlane.xlu0 %2326 }
 0xca2   :  { %v2334_v39 = vsel %vm2332_vm15, 0.0, %v2330_v55  ;;  %vm2331_vm1 = vcmp.eq.f32.partialorder %v2327_v56, -inf }
 0xca3   :  { %v2336_v57 = vsub.f32 %v2324_v26, %v2334_v39  ;;  %v2333_v58 = vsel %vm2331_vm1, 0.0, %v2327_v56  ;;  %v6462_v39 = vld [vmem:[%s9326_s10 + $0x1] ss:$0 sm:$0xff] }
 0xca4   :  { %v2335_v59 = vsub.f32 %v2323_v53, %v2333_v58 }
 0xca5   :  { %v2339_v60 = vmul.f32 1.442695, %v2336_v57 }
 0xca6   :  { %v2337_v61 = vmul.f32 1.442695, %v2335_v59 }
 0xca7   :  { %7912 = vpow2.f32 %v2339_v60  ;;  %v6463_v60 = vld [vmem:[%s9327_s11 + $0x1] ss:$0 sm:$0xff] }
 0xca8   :  { %7914 = vpow2.f32 %v2337_v61 }
 0xcb1   :  { %v7913_v62 = vpop.eup %7912 }
 0xcb2   :  { %v7915_v63 = vpop.eup %7914  ;;  %v2344_v0 = vsel %vm475_vm9, %v7913_v62, 0.0 }
 0xcb3   :  { %2345 = vadd.xlane.f32.xlu1 %v2344_v0  ;;  %v2341_v1 = vsel %vm475_vm9, %v7915_v63, 0.0 }
 0xcb4   :  { %2342 = vadd.xlane.f32.xlu0 %v2341_v1  ;;  %v2685_v1 = vld [vmem:[%s9330_s14] sm:$0xff] }
 0xcb5   :  { %v7609_v3 = vpack.c.bf16 %v2686_v2, %v2685_v1  ;;  %v6485_v1 = vld [vmem:[%s9358_s27 + $0x148] sm:$0xff] }
 0xcb7   :  { %7610 = vmatprep.subr.bf16.mxu1 %v7609_v3 }
 0xd40   :  { %v2346_v8 = vpop.xlane.xlu1 %2345 }
 0xd41   :  { %7916 = vrcp.f32 %v2346_v8  ;;  %v2343_v10 = vpop.xlane.xlu0 %2342  ;;  %vm2348_vm2 = vcmp.gt.f32.partialorder %v2346_v8, 0.0  ;;  %v2690_v8 = vld [vmem:[%s9330_s14 + $0x28] sm:$0xff] }
 0xd42   :  { %7918 = vrcp.f32 %v2343_v10  ;;  %vm2347_vm3 = vcmp.gt.f32.partialorder %v2343_v10, 0.0  ;;  %v7617_v10 = vpack.c.bf16 %v2690_v8, %v2689_v6 }
 0xd4b   :  { %v7917_v11 = vpop.eup %7916 }
 0xd4c   :  { %v7919_v12 = vpop.eup %7918  ;;  %v2352_v13 = vsel %vm2348_vm2, %v7917_v11, 0.0  ;;  %v2691_v11 = vld [vmem:[%s9330_s14 + $0x30] sm:$0xff] }
 0xd4d   :  { %v2351_v14 = vsel %vm2347_vm3, %v7919_v12, 0.0  ;;  %v2354_v19 = vmul.f32 %v7913_v62, %v2352_v13  ;;  %v2692_v12 = vld [vmem:[%s9330_s14 + $0x38] sm:$0xff] }
 0xd4e   :  { %v2353_v15 = vmul.f32 %v7915_v63, %v2351_v14  ;;  %v7621_v13 = vpack.c.bf16 %v2692_v12, %v2691_v11  ;;  %v6464_v14 = vld [vmem:[%s9329_s13] ss:$0 sm:$0xff]  ;;  %v6480_v11 = vld [vmem:[%s9358_s27 + $0x128] sm:$0xff] }
 0xd50   :  { %7116 = vmatprep.mubr.msk.f32.mxu1 %vm475_vm9, %v2353_v15 }
 0xd51   :  { %7117 = vmatmul.mubr.msk.f32.vlgmr.msra.gmra.mrb[12].mxu1 %vm475_vm9, %v2354_v19 }
 0xd52   :  { %7612 = vmatpush3.bf16.msra.mxu1 %v7609_v3  ;;  %v6476_v3 = vld [vmem:[%s9358_s27 + $0x110] sm:$0xff] }
 0xd53   :  { %7614 = vmatprep.subr.bf16.mxu1 %v7613_v7  ;;  %v7629_v6 = vpack.c.bf16 %v6477_v4, %v6476_v3 }
 0xd56   :  { %7616 = vmatpush3.bf16.msra.mxu1 %v7613_v7  ;;  %v6487_v7 = vld [vmem:[%s9358_s27 + $0x158] sm:$0xff] }
 0xd57   :  { %7618 = vmatprep.subr.bf16.mxu1 %v7617_v10  ;;  %v7645_v8 = vpack.c.bf16 %v6487_v7, %v6486_v5 }
 0xd5a   :  { %7620 = vmatpush3.bf16.msra.mxu1 %v7617_v10  ;;  %v6479_v10 = vld [vmem:[%s9358_s27 + $0x120] sm:$0xff] }
 0xd5b   :  { %7622 = vmatprep.subr.bf16.mxu1 %v7621_v13  ;;  %v7633_v12 = vpack.c.bf16 %v6480_v11, %v6479_v10 }
 0xd5e   :  { %7624 = vmatpush3.bf16.msra.mxu1 %v7621_v13 }
 0xe24   :  { %v7118_v20 = vpop.f32.mrb[12].mxu1 }
 0xe25   :  { %v2429_v22 = vpop.f32.mrb[13].mxu1 }
 0xe26   :  { %7127 = vmatprep.mubr.msk.f32.mxu0 %vm136_vm0, %v2429_v22 }
 0xe27   :  { %7128 = vmatmul.mubr.msk.f32.vlgmr.msra.gmra.mrb[18].mxu0 %vm136_vm0, %v7118_v20 }
 0xefa   :  { %v7129_v24 = vpop.f32.mrb[18].mxu0 }
 0xefb   :  { %v2524_v25 = vadd.f32 %v7129_v24, %v6457_v23  ;;  %v2518_v27 = vpop.f32.mrb[19].mxu0 }
 0xefc   :  { %v2519_v28 = vadd.f32 %v6457_v23, %v2518_v27 }
 0xefd   :  { %v2528_v36 = vadd.f32 %v2524_v25, %v8483_v17 }
 0xefe   :  { %v2527_v38 = vadd.f32 %v2519_v28, %v8481_v16  ;;  %v2575_v16 = vld [vmem:[%s9328_s12] sm:$0xff] }
 0xeff   :  { %v2536_v40 = vsel %vm136_vm0, %v2528_v36, 0.0  ;;  %v7601_v37 = vpack.c.bf16 %v2576_v48, %v2575_v16 }
 0xf00   :  { %2537 = vadd.xlane.f32.xlu1 %v2536_v40  ;;  %v2533_v43 = vsel %vm136_vm0, %v2527_v38, 0.0 }
 0xf01   :  { %2534 = vadd.xlane.f32.xlu0 %v2533_v43  ;;  %7602 = vmatprep.subr.bf16.mxu0 %v7601_v37 }
 0xf02   :  { %7604 = vmatpush3.bf16.msra.mxu0 %v7601_v37 }
 0xf03   :  { %7606 = vmatprep.subr.bf16.mxu0 %v7605_v50 }
 0xf06   :  { %7608 = vmatpush3.bf16.msra.mxu0 %v7605_v50 }
 0xf8d   :  { %v2538_v54 = vpop.xlane.xlu1 %2537 }
 0xf8e   :  { %v2540_v21 = vmul.f32 0.03125, %v2538_v54  ;;  %v2535_v52 = vpop.xlane.xlu0 %2534 }
 0xf8f   :  { %v2539_v46 = vmul.f32 0.03125, %v2535_v52 }
 0xf90   :  { %v2542_v47 = vsub.f32 %v2528_v36, %v2540_v21 }
 0xf91   :  { %v2541_v49 = vsub.f32 %v2527_v38, %v2539_v46 }
 0xf92   :  { %v2544_v18 = vmul.f32 %v2542_v47, %v2542_v47 }
 0xf93   :  { %v2543_v9 = vmul.f32 %v2541_v49, %v2541_v49 }
 0xf94   :  { %v2548_v44 = vsel %vm136_vm0, %v2544_v18, 0.0 }
 0xf95   :  { %2549 = vadd.xlane.f32.xlu1 %v2548_v44  ;;  %v2545_v17 = vsel %vm136_vm0, %v2543_v9, 0.0 }
 0xf96   :  { %2546 = vadd.xlane.f32.xlu0 %v2545_v17  ;;  %v6467_v17 = vld [vmem:[%s9331_s15] ss:$0 sm:$0xff] }
0x1022   :  { %v2550_v51 = vpop.xlane.xlu1 %2549 }
0x1023   :  { %v2552_v26 = vmul.f32 0.03125, %v2550_v51  ;;  %v2547_v53 = vpop.xlane.xlu0 %2546 }
0x1024   :  { %v2551_v35 = vmul.f32 0.03125, %v2547_v53 }
0x1025   :  { %v2554_v32 = vadd.f32 1e-05, %v2552_v26 }
0x1026   :  { %v2553_v55 = vadd.f32 1e-05, %v2551_v35 }
0x1027   :  { %7920 = vrsqrt.f32 %v2554_v32 }
0x1028   :  { %7922 = vrsqrt.f32 %v2553_v55 }
0x1031   :  { %v7921_v56 = vpop.eup %7920 }
0x1032   :  { %v7923_v57 = vpop.eup %7922  ;;  %v2558_v58 = vmul.f32 %v7921_v56, %v2542_v47 }
0x1033   :  { %v2557_v59 = vmul.f32 %v7923_v57, %v2541_v49 }
0x1034   :  { %v2566_v61 = vmul.f32 %v6462_v39, %v2558_v58 }
0x1035   :  { %v2565_v62 = vmul.f32 %v6462_v39, %v2557_v59 }
0x1036   :  { %v2574_v0 = vadd.f32 %v6463_v60, %v2566_v61  ;;  %v6474_v61 = vld [vmem:[%s9358_s27 + $0x100] sm:$0xff] }
0x1037   :  { %v2573_v63 = vadd.f32 %v6463_v60, %v2565_v62  ;;  %v6475_v62 = vld [vmem:[%s9358_s27 + $0x108] sm:$0xff] }
0x1039   :  { %7138 = vmatprep.mubr.msk.f32.mxu0 %vm136_vm0, %v2573_v63 }
0x103a   :  { %7139 = vmatmul.mubr.msk.f32.vlgmr.msra.gmra.mrb[20].mxu0 %vm136_vm0, %v2574_v0 }
0x110d   :  { %v7140_v15 = vpop.f32.mrb[20].mxu0 }
0x110e   :  { %v2664_v19 = vadd.f32 %v7140_v15, %v6464_v14  ;;  %v2658_v20 = vpop.f32.mrb[21].mxu0 }
0x110f   :  { %v2659_v22 = vadd.f32 %v6464_v14, %v2658_v20 }
0x1110   :  { %v2670_v23 = vmul.f32 0.044715, %v2664_v19  ;;  %v2668_v18 = vmul.f32 0.5, %v2664_v19 }
0x1111   :  { %v2669_v24 = vmul.f32 0.044715, %v2659_v22  ;;  %v2667_v47 = vmul.f32 0.5, %v2659_v22 }
0x1112   :  { %v2672_v25 = vmul.f32 %v2670_v23, %v2664_v19 }
0x1113   :  { %v2671_v27 = vmul.f32 %v2669_v24, %v2659_v22  ;;  %v6472_v24 = vld [vmem:[%s9326_s10 + $0x2] ss:$0 sm:$0xff] }
0x1114   :  { %v2674_v28 = vmul.f32 %v2672_v25, %v2664_v19 }
0x1115   :  { %v2673_v36 = vmul.f32 %v2671_v27, %v2659_v22 }
0x1116   :  { %v2676_v38 = vadd.f32 %v2674_v28, %v2664_v19 }
0x1117   :  { %v2675_v40 = vadd.f32 %v2673_v36, %v2659_v22  ;;  %v6473_v36 = vld [vmem:[%s9327_s11 + $0x2] ss:$0 sm:$0xff] }
0x1118   :  { %v2678_v43 = vmul.f32 0.7978846, %v2676_v38 }
0x1119   :  { %v2677_v54 = vmul.f32 0.7978846, %v2675_v40 }
0x111a   :  { %7924 = vtanh.f32 %v2678_v43  ;;  %v6481_v43 = vld [vmem:[%s9358_s27 + $0x130] sm:$0xff] }
0x111b   :  { %7926 = vtanh.f32 %v2677_v54  ;;  %v6482_v54 = vld [vmem:[%s9358_s27 + $0x138] sm:$0xff] }
0x1124   :  { %v7925_v21 = vpop.eup %7924 }
0x1125   :  { %v7927_v52 = vpop.eup %7926  ;;  %v2682_v46 = vadd.f32 1.0, %v7925_v21 }
0x1126   :  { %v2681_v49 = vadd.f32 1.0, %v7927_v52 }
0x1127   :  { %v2684_v44 = vmul.f32 %v2682_v46, %v2668_v18  ;;  %v7637_v46 = vpack.c.bf16 %v6482_v54, %v6481_v43 }
0x1128   :  { %v2683_v9 = vmul.f32 %v2681_v49, %v2667_v47  ;;  %v6500_v47 = vld [vmem:[%s9325_s9 + $0xa] ss:$0 sm:$0xff]  ;;  %v6494_v49 = vld [vmem:[%s9325_s9 + $0x8] ss:$0 sm:$0xff] }
0x112a   :  { %7157 = vmatprep.mubr.msk.f32.mxu1 %vm2700_vm4, %v2683_v9 }
0x112b   :  { %7158 = vmatmul.mubr.msk.f32.vlgmr.msra.gmra.mrb[16].mxu1 %vm2700_vm4, %v2684_v44 }
0x11fe   :  { %v7159_v16 = vpop.f32.mrb[16].mxu1 }
0x11ff   :  { %v2779_v48 = vadd.f32 %v7159_v16, %v6467_v17  ;;  %v2773_v37 = vpop.f32.mrb[17].mxu1 }
0x1200   :  { %v2774_v42 = vadd.f32 %v6467_v17, %v2773_v37 }
0x1201   :  { %v2783_v34 = vadd.f32 %v2779_v48, %v2574_v0  ;;  %v6484_v0 = vld [vmem:[%s9358_s27 + $0x140] sm:$0xff] }
0x1202   :  { %v2782_v50 = vadd.f32 %v2774_v42, %v2573_v63  ;;  %v7625_v63 = vpack.c.bf16 %v6475_v62, %v6474_v61  ;;  %v7641_v2 = vpack.c.bf16 %v6485_v1, %v6484_v0 }
0x1203   :  { %v2791_v51 = vsel %vm136_vm0, %v2783_v34, 0.0 }
0x1204   :  { %2792 = vadd.xlane.f32.xlu1 %v2791_v51  ;;  %v2788_v26 = vsel %vm136_vm0, %v2782_v50, 0.0  ;;  %7626 = vmatprep.subr.bf16.mxu0 %v7625_v63 }
0x1205   :  { %2789 = vadd.xlane.f32.xlu0 %v2788_v26  ;;  %7628 = vmatpush3.bf16.msra.mxu0 %v7625_v63 }
0x1206   :  { %7642 = vmatprep.subr.bf16.mxu1 %v7641_v2  ;;  %7630 = vmatprep.subr.bf16.mxu0 %v7629_v6 }
0x1207   :  { %7644 = vmatpush3.bf16.msra.mxu1 %v7641_v2 }
0x1208   :  { %7646 = vmatprep.subr.bf16.mxu1 %v7645_v8 }
0x1209   :  { %7632 = vmatpush3.bf16.msra.mxu0 %v7629_v6 }
0x120a   :  { %7634 = vmatprep.subr.bf16.mxu0 %v7633_v12 }
0x120b   :  { %7648 = vmatpush3.bf16.msra.mxu1 %v7645_v8 }
0x1291   :  { %v2793_v53 = vpop.xlane.xlu1 %2792 }
0x1292   :  { %v2795_v35 = vmul.f32 0.03125, %v2793_v53  ;;  %v2790_v32 = vpop.xlane.xlu0 %2789 }
0x1293   :  { %v2794_v55 = vmul.f32 0.03125, %v2790_v32 }
0x1294   :  { %v2797_v56 = vsub.f32 %v2783_v34, %v2795_v35 }
0x1295   :  { %v2796_v39 = vsub.f32 %v2782_v50, %v2794_v55  ;;  %v6497_v55 = vld [vmem:[%s9325_s9 + $0x9] ss:$0 sm:$0xff] }
0x1296   :  { %v2799_v57 = vmul.f32 %v2797_v56, %v2797_v56 }
0x1297   :  { %v2798_v58 = vmul.f32 %v2796_v39, %v2796_v39 }
0x1298   :  { %v2803_v59 = vsel %vm136_vm0, %v2799_v57, 0.0 }
0x1299   :  { %2804 = vadd.xlane.f32.xlu1 %v2803_v59  ;;  %v2800_v60 = vsel %vm136_vm0, %v2798_v58, 0.0 }
0x129a   :  { %2801 = vadd.xlane.f32.xlu0 %v2800_v60 }
0x1326   :  { %v2805_v13 = vpop.xlane.xlu1 %2804 }
0x1327   :  { %v2807_v14 = vmul.f32 0.03125, %v2805_v13  ;;  %v2802_v15 = vpop.xlane.xlu0 %2801 }
0x1328   :  { %v2806_v19 = vmul.f32 0.03125, %v2802_v15 }
0x1329   :  { %v2809_v20 = vadd.f32 1e-05, %v2807_v14  ;;  %v8017_v14 = vld [vmem:[%s9362_s3 + $0x10] sm:$0xff] }
0x132a   :  { %v2808_v22 = vadd.f32 1e-05, %v2806_v19 }
0x132b   :  { %7928 = vrsqrt.f32 %v2809_v20 }
0x132c   :  { %7930 = vrsqrt.f32 %v2808_v22 }
0x1335   :  { %v7929_v23 = vpop.eup %7928 }
0x1336   :  { %v7931_v25 = vpop.eup %7930  ;;  %v2813_v27 = vmul.f32 %v7929_v23, %v2797_v56 }
0x1337   :  { %v2812_v28 = vmul.f32 %v7931_v25, %v2796_v39 }
0x1338   :  { %v2821_v38 = vmul.f32 %v6472_v24, %v2813_v27 }
0x1339   :  { %v2820_v40 = vmul.f32 %v6472_v24, %v2812_v28 }
0x133a   :  { %v8749_v52 = vadd.f32 %v6473_v36, %v2821_v38 }
0x133b   :  { %v8747_v21 = vadd.f32 %v6473_v36, %v2820_v40 }
0x133d   :  { %7168 = vmatprep.mubr.msk.f32.mxu0 %vm136_vm0, %v8747_v21  ;;  %7190 = vmatprep.mubr.msk.f32.mxu1 %vm136_vm0, %v8747_v21 }
0x133e   :  { %7169 = vmatmul.mubr.msk.f32.vlgmr.msra.gmra.mrb[22].mxu0 %vm136_vm0, %v8749_v52  ;;  %7191 = vmatmul.mubr.msk.f32.vlgmr.msra.gmra.mrb[18].mxu1 %vm136_vm0, %v8749_v52 }
0x133f   :  { %7636 = vmatpush3.bf16.msra.mxu0 %v7633_v12  ;;  %7179 = vmatprep.mubr.msk.f32.mxu0 %vm136_vm0, %v8747_v21  ;;  %v8016_v12 = vld [vmem:[%s9362_s3 + $0x18] sm:$0xff] }
0x1340   :  { %7638 = vmatprep.subr.bf16.mxu0 %v7637_v46 }
0x1343   :  { %7640 = vmatpush3.bf16.msra.mxu0 %v7637_v46 }
0x1346   :  { %7180 = vmatmul.mubr.msk.f32.vlgmr.msra.gmra.mrb[24].mxu0 %vm136_vm0, %v8749_v52 }
0x1411   :  { %v7170_v18 = vpop.f32.mrb[22].mxu0  ;;  %v7192_v9 = vpop.f32.mrb[18].mxu1 }
0x1412   :  { %v3104_v44 = vadd.f32 %v7192_v9, %v6500_v47  ;;  %v2936_v17 = vpop.f32.mrb[23].mxu0  ;;  %v3098_v16 = vpop.f32.mrb[19].mxu1  ;;  %v8806_v2 = vadd.f32 %v7170_v18, %v6494_v49 }
0x1413   :  { %v8769_v48 = vadd.f32 %v6494_v49, %v2936_v17  ;;  %v3099_v37 = vadd.f32 %v6500_v47, %v3098_v16  ;;  %v8018_v49 = vld [vmem:[%s9362_s3 + $0x8] sm:$0xff] }
0x1414   :  { %v3350_v51 = vmul.f32 %v8261_v31, %v3104_v44  ;;  %v3231_v53 = vmul.f32 %v8258_v30, %v3104_v44  ;;  %v3631_v32 = vmul.f32 %v8302_v41, %v3104_v44  ;;  %v3833_v59 = vmul.f32 %v8380_v45, %v3104_v44  ;;  %v8019_v44 = vld [vmem:[%s9362_s3] sm:$0xff] }
0x1415   :  { %v3107_v42 = vmul.f32 %v8258_v30, %v8769_v48  ;;  %v3232_v34 = vmul.f32 %v8261_v31, %v8769_v48  ;;  %v3349_v50 = vmul.f32 %v8261_v31, %v3099_v37  ;;  %v3230_v26 = vmul.f32 %v8258_v30, %v3099_v37 }
0x1416   :  { %v3630_v35 = vmul.f32 %v8302_v41, %v3099_v37  ;;  %v3832_v58 = vmul.f32 %v8380_v45, %v3099_v37  ;;  %v3108_v3 = vmul.f32 %v8258_v30, %v8806_v2  ;;  %v3233_v4 = vmul.f32 %v8261_v31, %v8806_v2 }
0x1417   :  { %7197 = vmatprep.mubr.msk.f32.mxu0 %vm136_vm0, %v3107_v42  ;;  %7204 = vmatprep.mubr.msk.f32.mxu1 %vm136_vm0, %v3232_v34  ;;  %v7661_v56 = vpack.c.bf16 %v3350_v51, %v3349_v50  ;;  %v7665_v39 = vpack.c.bf16 %v3231_v53, %v3230_v26 }
0x1418   :  { %v8786_v57 = vpack.c.bf16 %v3631_v32, %v3630_v35  ;;  %v8790_v63 = vpack.c.bf16 %v3833_v59, %v3832_v58  ;;  %v3716_v58 = vmul.f32 %v8380_v45, %v8806_v2 }
0x1419   :  { %v7181_v60 = vpop.f32.mrb[24].mxu0 }
0x141a   :  { %v3023_v61 = vadd.f32 %v7181_v60, %v6497_v55  ;;  %v3017_v62 = vpop.f32.mrb[25].mxu0 }
0x141b   :  { %v3018_v0 = vadd.f32 %v6497_v55, %v3017_v62  ;;  %v3513_v55 = vmul.f32 %v8302_v41, %v8769_v48 }
0x141d   :  { %v8792_v1 = vpack.c.bf16 %v3023_v61, %v3018_v0 }
0x141f   :  { %7651 = vmatprep.subr.msk.bf16.mxu0 %vm8265_vm5, %v8792_v1  ;;  %7657 = vmatprep.subr.msk.bf16.mxu1 %vm8265_vm5, %v8792_v1 }
0x1420   :  { %7654 = vmatpush3.bf16.xpose.msk.msra.mxu0 %vm8265_vm5, %v8792_v1  ;;  %7660 = vmatpush3.bf16.xpose.msk.msra.mxu1 %vm8265_vm5, %v8792_v1 }
0x1421   :  { %7662 = vmatprep.subr.bf16.mxu1 %v7661_v56  ;;  %7666 = vmatprep.subr.bf16.mxu0 %v7665_v39 }
0x1427   :  { %7198 = vmatmul.mubr.msk.f32.vlgmr.msra.gmra.mrb[26].mxu0 %vm136_vm0, %v3108_v3  ;;  %7205 = vmatmul.mubr.msk.f32.vlgmr.msra.gmra.mrb[20].mxu1 %vm136_vm0, %v3233_v4 }
0x1428   :  { %7664 = vmatpush3.bf16.msra.mxu1 %v7661_v56  ;;  %7668 = vmatpush3.bf16.msra.mxu0 %v7665_v39  ;;  %v3514_v56 = vmul.f32 %v8302_v41, %v8806_v2  ;;  %v3715_v39 = vmul.f32 %v8380_v45, %v8769_v48 }
0x1429   :  { %7671 = vmatprep.subr.msk.bf16.mxu1 %vm8265_vm5, %v8792_v1  ;;  %7676 = vmatprep.subr.bf16.mxu0 %v8786_v57 }
0x14fa   :  { %v7199_v5 = vpop.f32.mrb[26].mxu0  ;;  %v7206_v6 = vpop.f32.mrb[20].mxu1 }
0x14fb   :  { %v3316_v7 = vmul.f32 0.35355338, %v7206_v6  ;;  %v3187_v8 = vpop.f32.mrb[27].mxu0  ;;  %v3306_v10 = vpop.f32.mrb[21].mxu1  ;;  %v3197_v40 = vmul.f32 0.35355338, %v7199_v5 }
0x14fc   :  { %v3315_v11 = vmul.f32 0.35355338, %v3306_v10  ;;  %v3196_v43 = vmul.f32 0.35355338, %v3187_v8  ;;  %v8020_v10 = vld [vmem:[%s9362_s3 + $0x28] sm:$0xff] }
0x14fd   :  { %v3318_v13 = vadd.f32 %v8016_v12, %v3316_v7  ;;  %v3199_v18 = vadd.f32 %v8018_v49, %v3197_v40  ;;  %v8021_v12 = vld [vmem:[%s9362_s3 + $0x20] sm:$0xff] }
0x14fe   :  { %v3317_v15 = vadd.f32 %v8017_v14, %v3315_v11  ;;  %v3198_v17 = vadd.f32 %v8019_v44, %v3196_v43 }
0x14ff   :  { %v3322_v19 = vsel %vm475_vm9, %v3318_v13, -inf  ;;  %v3203_v16 = vsel %vm475_vm9, %v3199_v18, -inf }
0x1500   :  { %3323 = vmax.xlane.f32.xlu1 %v3322_v19  ;;  %v3319_v20 = vsel %vm475_vm9, %v3317_v15, -inf  ;;  %v3200_v37 = vsel %vm475_vm9, %v3198_v17, -inf }
0x1501   :  { %3320 = vmax.xlane.f32.xlu0 %v3319_v20 }
0x158d   :  { %v3324_v22 = vpop.xlane.xlu1 %3323 }
0x158e   :  { %vm3326_vm6 = vcmp.eq.f32.partialorder %v3324_v22, -inf  ;;  %v3321_v23 = vpop.xlane.xlu0 %3320 }
0x158f   :  { %v3328_v24 = vsel %vm3326_vm6, 0.0, %v3324_v22  ;;  %vm3325_vm7 = vcmp.eq.f32.partialorder %v3321_v23, -inf }
0x1590   :  { %v3330_v25 = vsub.f32 %v3318_v13, %v3328_v24  ;;  %v3327_v27 = vsel %vm3325_vm7, 0.0, %v3321_v23  ;;  %v8022_v24 = vld [vmem:[%s9362_s3 + $0x38] sm:$0xff] }
0x1591   :  { %v3329_v28 = vsub.f32 %v3317_v15, %v3327_v27  ;;  %v8023_v27 = vld [vmem:[%s9362_s3 + $0x30] sm:$0xff] }
0x1592   :  { %v3333_v36 = vmul.f32 1.442695, %v3330_v25 }
0x1593   :  { %v3331_v38 = vmul.f32 1.442695, %v3329_v28 }
0x1594   :  { %7932 = vpow2.f32 %v3333_v36 }
0x1595   :  { %7934 = vpow2.f32 %v3331_v38 }
0x159e   :  { %v7933_v54 = vpop.eup %7932 }
0x159f   :  { %v7935_v46 = vpop.eup %7934  ;;  %v3338_v47 = vsel %vm475_vm9, %v7933_v54, 0.0 }
0x15a0   :  { %3339 = vadd.xlane.f32.xlu1 %v3338_v47  ;;  %v3335_v9 = vsel %vm475_vm9, %v7935_v46, 0.0 }
0x15a1   :  { %3336 = vadd.xlane.f32.xlu0 %v3335_v9 }
0x15a4   :  { %3204 = vmax.xlane.f32.xlu1 %v3203_v16 }
0x15a5   :  { %3201 = vmax.xlane.f32.xlu0 %v3200_v37 }
0x162d   :  { %v3340_v42 = vpop.xlane.xlu1 %3339 }
0x162e   :  { %7936 = vrcp.f32 %v3340_v42  ;;  %v3337_v34 = vpop.xlane.xlu0 %3336  ;;  %vm3342_vm8 = vcmp.gt.f32.partialorder %v3340_v42, 0.0 }
0x162f   :  { %7938 = vrcp.f32 %v3337_v34  ;;  %vm3341_vm10 = vcmp.gt.f32.partialorder %v3337_v34, 0.0 }
0x1631   :  { %v3205_v59 = vpop.xlane.xlu1 %3204 }
0x1632   :  { %v3202_v60 = vpop.xlane.xlu0 %3201  ;;  %vm3207_vm11 = vcmp.eq.f32.partialorder %v3205_v59, -inf }
0x1633   :  { %vm3206_vm12 = vcmp.eq.f32.partialorder %v3202_v60, -inf  ;;  %v3209_v48 = vsel %vm3207_vm11, 0.0, %v3205_v59 }
0x1634   :  { %v3208_v0 = vsel %vm3206_vm12, 0.0, %v3202_v60  ;;  %v3211_v3 = vsub.f32 %v3199_v18, %v3209_v48 }
0x1635   :  { %v3210_v4 = vsub.f32 %v3198_v17, %v3208_v0 }
0x1637   :  { %v3212_v6 = vmul.f32 1.442695, %v3210_v4 }
0x1638   :  { %v7937_v50 = vpop.eup %7936 }
0x1639   :  { %v7939_v51 = vpop.eup %7938  ;;  %v3346_v26 = vsel %vm3342_vm8, %v7937_v50, 0.0 }
0x163a   :  { %v3345_v53 = vsel %vm3341_vm10, %v7939_v51, 0.0  ;;  %v3348_v32 = vmul.f32 %v7933_v54, %v3346_v26 }
0x163b   :  { %v3347_v35 = vmul.f32 %v7935_v46, %v3345_v53 }
0x163d   :  { %7211 = vmatprep.mubr.msk.f32.mxu1 %vm475_vm9, %v3347_v35 }
0x163e   :  { %7212 = vmatmul.mubr.msk.f32.vlgmr.msra.gmra.mrb[22].mxu1 %vm475_vm9, %v3348_v32 }
0x163f   :  { %7674 = vmatpush3.bf16.xpose.msk.msra.mxu1 %vm8265_vm5, %v8792_v1  ;;  %7225 = vmatprep.mubr.msk.f32.mxu1 %vm136_vm0, %v3513_v55 }
0x1640   :  { %7681 = vmatprep.subr.msk.bf16.mxu1 %vm8265_vm5, %v8792_v1 }
0x1646   :  { %7226 = vmatmul.mubr.msk.f32.vlgmr.msra.gmra.mrb[24].mxu1 %vm136_vm0, %v3514_v56 }
0x1647   :  { %7684 = vmatpush3.bf16.xpose.msk.msra.mxu1 %vm8265_vm5, %v8792_v1  ;;  %7239 = vmatprep.mubr.msk.f32.mxu1 %vm136_vm0, %v3715_v39  ;;  %v3214_v1 = vmul.f32 1.442695, %v3211_v3 }
0x1649   :  { %7940 = vpow2.f32 %v3214_v1 }
0x164a   :  { %7942 = vpow2.f32 %v3212_v6 }
0x164e   :  { %7240 = vmatmul.mubr.msk.f32.vlgmr.msra.gmra.mrb[26].mxu1 %vm136_vm0, %v3716_v58 }
0x1653   :  { %v7941_v38 = vpop.eup %7940 }
0x1654   :  { %v7943_v43 = vpop.eup %7942  ;;  %v3219_v54 = vsel %vm475_vm9, %v7941_v38, 0.0 }
0x1655   :  { %v3216_v46 = vsel %vm475_vm9, %v7943_v43, 0.0 }
0x1711   :  { %v8859_v61 = vpop.f32.mrb[22].mxu1 }
0x1712   :  { %v8861_v62 = vpop.f32.mrb[23].mxu1 }
0x1719   :  { %v7227_v5 = vpop.f32.mrb[24].mxu1 }
0x171a   :  { %v3597_v7 = vmul.f32 0.35355338, %v7227_v5  ;;  %v3587_v8 = vpop.f32.mrb[25].mxu1 }
0x171b   :  { %v3596_v2 = vmul.f32 0.35355338, %v3587_v8 }
0x171c   :  { %v3599_v11 = vadd.f32 %v8020_v10, %v3597_v7 }
0x171d   :  { %v3598_v13 = vadd.f32 %v8021_v12, %v3596_v2 }
0x171e   :  { %v3603_v14 = vsel %vm475_vm9, %v3599_v11, -inf }
0x171f   :  { %3604 = vmax.xlane.f32.xlu1 %v3603_v14  ;;  %v3600_v15 = vsel %vm475_vm9, %v3598_v13, -inf }
0x1720   :  { %3601 = vmax.xlane.f32.xlu0 %v3600_v15 }
0x1721   :  { %v7241_v19 = vpop.f32.mrb[26].mxu1 }
0x1722   :  { %v3799_v20 = vmul.f32 0.35355338, %v7241_v19  ;;  %v3789_v22 = vpop.f32.mrb[27].mxu1 }
0x1723   :  { %v3798_v23 = vmul.f32 0.35355338, %v3789_v22 }
0x1724   :  { %v3801_v25 = vadd.f32 %v8022_v24, %v3799_v20  ;;  %v6489_v20 = vld [vmem:[%s9358_s27 + $0x160] sm:$0xff] }
0x1725   :  { %v3800_v28 = vadd.f32 %v8023_v27, %v3798_v23 }
0x1726   :  { %v3805_v36 = vsel %vm475_vm9, %v3801_v25, -inf }
0x1727   :  { %3806 = vmax.xlane.f32.xlu1 %v3805_v36  ;;  %v3802_v40 = vsel %vm475_vm9, %v3800_v28, -inf }
0x1728   :  { %3803 = vmax.xlane.f32.xlu0 %v3802_v40 }
0x172b   :  { %3220 = vadd.xlane.f32.xlu1 %v3219_v54  ;;  %v6491_v54 = vld [vmem:[%s9358_s27 + $0x170] sm:$0xff] }
0x172c   :  { %3217 = vadd.xlane.f32.xlu0 %v3216_v46 }
0x17ac   :  { %v3605_v47 = vpop.xlane.xlu1 %3604 }
0x17ad   :  { %vm3607_vm13 = vcmp.eq.f32.partialorder %v3605_v47, -inf  ;;  %v3602_v49 = vpop.xlane.xlu0 %3601 }
0x17ae   :  { %v3609_v18 = vsel %vm3607_vm13, 0.0, %v3605_v47  ;;  %vm3606_vm14 = vcmp.eq.f32.partialorder %v3602_v49, -inf }
0x17af   :  { %v3611_v9 = vsub.f32 %v3599_v11, %v3609_v18  ;;  %v3608_v44 = vsel %vm3606_vm14, 0.0, %v3602_v49 }
0x17b0   :  { %v3610_v17 = vsub.f32 %v3598_v13, %v3608_v44  ;;  %v8913_v44 = vld [vmem:[%s9363_s2] sm:$0xff] }
0x17b1   :  { %v3614_v16 = vmul.f32 1.442695, %v3611_v9 }
0x17b2   :  { %v3612_v37 = vmul.f32 1.442695, %v3610_v17  ;;  %v6527_v17 = vld [vmem:[%s9325_s9 + $0xb] ss:$0 sm:$0xff] }
0x17b3   :  { %7944 = vpow2.f32 %v3614_v16 }
0x17b4   :  { %7946 = vpow2.f32 %v3612_v37  ;;  %v3807_v42 = vpop.xlane.xlu1 %3806 }
0x17b5   :  { %vm3809_vm15 = vcmp.eq.f32.partialorder %v3807_v42, -inf  ;;  %v3804_v34 = vpop.xlane.xlu0 %3803 }
0x17b6   :  { %v3811_v50 = vsel %vm3809_vm15, 0.0, %v3807_v42  ;;  %vm3808_vm1 = vcmp.eq.f32.partialorder %v3804_v34, -inf }
0x17b7   :  { %v3813_v51 = vsub.f32 %v3801_v25, %v3811_v50  ;;  %v3810_v26 = vsel %vm3808_vm1, 0.0, %v3804_v34 }
0x17b8   :  { %v3812_v53 = vsub.f32 %v3800_v28, %v3810_v26  ;;  %v3221_v35 = vpop.xlane.xlu1 %3220 }
0x17b9   :  { %v3816_v32 = vmul.f32 1.442695, %v3813_v51  ;;  %7948 = vrcp.f32 %v3221_v35  ;;  %v3218_v55 = vpop.xlane.xlu0 %3217  ;;  %vm3223_vm2 = vcmp.gt.f32.partialorder %v3221_v35, 0.0 }
0x17ba   :  { %v3814_v56 = vmul.f32 1.442695, %v3812_v53  ;;  %7950 = vrcp.f32 %v3218_v55  ;;  %vm3222_vm3 = vcmp.gt.f32.partialorder %v3218_v55, 0.0 }
0x17bb   :  { %7952 = vpow2.f32 %v3816_v32 }
0x17bc   :  { %7954 = vpow2.f32 %v3814_v56 }
0x17bd   :  { %v7945_v39 = vpop.eup %7944 }
0x17be   :  { %v7947_v58 = vpop.eup %7946  ;;  %v3619_v59 = vsel %vm475_vm9, %v7945_v39, 0.0 }
0x17bf   :  { %3620 = vadd.xlane.f32.xlu1 %v3619_v59  ;;  %v3616_v60 = vsel %vm475_vm9, %v7947_v58, 0.0 }
0x17c0   :  { %3617 = vadd.xlane.f32.xlu0 %v3616_v60  ;;  %v6540_v60 = vld [vmem:[%s9358_s27 + $0x1a8] sm:$0xff] }
0x17c3   :  { %v7949_v48 = vpop.eup %7948 }
0x17c4   :  { %v7951_v0 = vpop.eup %7950  ;;  %v3227_v3 = vsel %vm3223_vm2, %v7949_v48, 0.0 }
0x17c5   :  { %v7953_v4 = vpop.eup %7952  ;;  %v3226_v1 = vsel %vm3222_vm3, %v7951_v0, 0.0  ;;  %v3229_v8 = vmul.f32 %v7941_v38, %v3227_v3  ;;  %v6541_v0 = vld [vmem:[%s9358_s27 + $0x1b0] sm:$0xff]  ;;  %v6542_v3 = vld [vmem:[%s9358_s27 + $0x1b8] sm:$0xff] }
0x17c6   :  { %v7955_v5 = vpop.eup %7954  ;;  %v3228_v6 = vmul.f32 %v7943_v43, %v3226_v1  ;;  %v3821_v7 = vsel %vm475_vm9, %v7953_v4, 0.0  ;;  %v6534_v1 = vld [vmem:[%s9358_s27 + $0x180] sm:$0xff] }
0x17c7   :  { %3822 = vadd.xlane.f32.xlu1 %v3821_v7  ;;  %v3818_v2 = vsel %vm475_vm9, %v7955_v5, 0.0 }
0x17c8   :  { %3819 = vadd.xlane.f32.xlu0 %v3818_v2  ;;  %7218 = vmatprep.mubr.msk.f32.mxu0 %vm475_vm9, %v3228_v6  ;;  %v8025_v6 = vld [vmem:[%s9363_s2 + $0x8] sm:$0xff]  ;;  %v6537_v2 = vld [vmem:[%s9358_s27 + $0x198] sm:$0xff] }
0x17c9   :  { %7219 = vmatmul.mubr.msk.f32.vlgmr.msra.gmra.mrb[28].mxu0 %vm475_vm9, %v3229_v8  ;;  %v6536_v8 = vld [vmem:[%s9358_s27 + $0x190] sm:$0xff] }
0x17ca   :  { %7678 = vmatpush3.bf16.msra.mxu0 %v8786_v57  ;;  %v6490_v57 = vld [vmem:[%s9358_s27 + $0x168] sm:$0xff] }
0x17cb   :  { %7686 = vmatprep.subr.bf16.mxu0 %v8790_v63  ;;  %v7689_v25 = vpack.c.bf16 %v6490_v57, %v6489_v20 }
0x184c   :  { %v3621_v10 = vpop.xlane.xlu1 %3620 }
0x184d   :  { %7956 = vrcp.f32 %v3621_v10  ;;  %v3618_v11 = vpop.xlane.xlu0 %3617  ;;  %vm3623_vm6 = vcmp.gt.f32.partialorder %v3621_v10, 0.0  ;;  %v7701_v10 = vpack.c.bf16 %v6537_v2, %v6536_v8 }
0x184e   :  { %7958 = vrcp.f32 %v3618_v11  ;;  %vm3622_vm7 = vcmp.gt.f32.partialorder %v3618_v11, 0.0  ;;  %v6544_v11 = vld [vmem:[%s9358_s27 + $0x1c0] sm:$0xff] }
0x1854   :  { %v3823_v12 = vpop.xlane.xlu1 %3822 }
0x1855   :  { %7960 = vrcp.f32 %v3823_v12  ;;  %v3820_v13 = vpop.xlane.xlu0 %3819  ;;  %vm3825_vm8 = vcmp.gt.f32.partialorder %v3823_v12, 0.0  ;;  %v6545_v12 = vld [vmem:[%s9358_s27 + $0x1c8] sm:$0xff] }
0x1856   :  { %7962 = vrcp.f32 %v3820_v13  ;;  %vm3824_vm10 = vcmp.gt.f32.partialorder %v3820_v13, 0.0  ;;  %v7713_v13 = vpack.c.bf16 %v6545_v12, %v6544_v11  ;;  %v8026_v11 = vld [vmem:[%s9364_s4 + $0x18] sm:$0xff] }
0x1857   :  { %v7957_v14 = vpop.eup %7956 }
0x1858   :  { %v7959_v15 = vpop.eup %7958  ;;  %v3627_v19 = vsel %vm3623_vm6, %v7957_v14, 0.0 }
0x1859   :  { %v3626_v22 = vsel %vm3622_vm7, %v7959_v15, 0.0  ;;  %v3629_v24 = vmul.f32 %v7945_v39, %v3627_v19 }
0x185a   :  { %v3628_v23 = vmul.f32 %v7947_v58, %v3626_v22 }
0x185c   :  { %7232 = vmatprep.mubr.msk.f32.mxu0 %vm475_vm9, %v3628_v23 }
0x185d   :  { %7233 = vmatmul.mubr.msk.f32.vlgmr.msra.gmra.mrb[28].mxu0 %vm475_vm9, %v3629_v24  ;;  %v6532_v24 = vld [vmem:[%s9326_s10 + $0x3] ss:$0 sm:$0xff] }
0x185e   :  { %7688 = vmatpush3.bf16.msra.mxu0 %v8790_v63  ;;  %v6492_v63 = vld [vmem:[%s9358_s27 + $0x178] sm:$0xff] }
0x185f   :  { %v7961_v27 = vpop.eup %7960  ;;  %7690 = vmatprep.subr.bf16.mxu0 %v7689_v25  ;;  %v7693_v46 = vpack.c.bf16 %v6492_v63, %v6491_v54  ;;  %v6547_v54 = vld [vmem:[%s9358_s27 + $0x1d8] sm:$0xff] }
0x1860   :  { %v7963_v28 = vpop.eup %7962  ;;  %v3829_v36 = vsel %vm3825_vm8, %v7961_v27, 0.0 }
0x1861   :  { %v3828_v38 = vsel %vm3824_vm10, %v7963_v28, 0.0  ;;  %v3831_v43 = vmul.f32 %v7953_v4, %v3829_v36  ;;  %v7709_v4 = vpack.c.bf16 %v6542_v3, %v6541_v0  ;;  %v6533_v36 = vld [vmem:[%s9327_s11 + $0x3] ss:$0 sm:$0xff] }
0x1862   :  { %v3830_v40 = vmul.f32 %v7955_v5, %v3828_v38  ;;  %v6535_v5 = vld [vmem:[%s9358_s27 + $0x188] sm:$0xff] }
0x1863   :  { %v7697_v7 = vpack.c.bf16 %v6535_v5, %v6534_v1 }
0x1864   :  { %7246 = vmatprep.mubr.msk.f32.mxu0 %vm475_vm9, %v3830_v40 }
0x1865   :  { %7247 = vmatmul.mubr.msk.f32.vlgmr.msra.gmra.mrb[28].mxu0 %vm475_vm9, %v3831_v43  ;;  %7698 = vmatprep.subr.bf16.mxu1 %v7697_v7  ;;  %v6546_v43 = vld [vmem:[%s9358_s27 + $0x1d0] sm:$0xff] }
0x1866   :  { %7692 = vmatpush3.bf16.msra.mxu0 %v7689_v25  ;;  %7700 = vmatpush3.bf16.msra.mxu1 %v7697_v7 }
0x1867   :  { %7694 = vmatprep.subr.bf16.mxu0 %v7693_v46  ;;  %7702 = vmatprep.subr.bf16.mxu1 %v7701_v10 }
0x186a   :  { %7696 = vmatpush3.bf16.msra.mxu0 %v7693_v46  ;;  %7704 = vmatpush3.bf16.msra.mxu1 %v7701_v10 }
0x186b   :  { %7714 = vmatprep.subr.bf16.mxu1 %v7713_v13 }
0x1938   :  { %v7248_v47 = vpop.f32.mrb[28].mxu0 }
0x1939   :  { %v7821_v49 = vadd.f32 %v7248_v47, %v8859_v61  ;;  %v3906_v18 = vpop.f32.mrb[29].mxu0  ;;  %v7717_v47 = vpack.c.bf16 %v6547_v54, %v6546_v43  ;;  %v8031_v43 = vld [vmem:[%s9364_s4 + $0x20] sm:$0xff] }
0x193a   :  { %v7822_v9 = vadd.f32 %v3906_v18, %v8861_v62 }
0x193c   :  { %7257 = vmatprep.mubr.msk.f32.mxu0 %vm136_vm0, %v7822_v9 }
0x193d   :  { %7258 = vmatmul.mubr.msk.f32.vlgmr.msra.gmra.mrb[30].mxu0 %vm136_vm0, %v7821_v49  ;;  %v6557_v49 = vld [vmem:[%s9325_s9 + $0xd] ss:$0 sm:$0xff] }
0x193e   :  { %7279 = vmatprep.mubr.msk.f32.mxu0 %vm136_vm0, %v8913_v44 }
0x1a10   :  { %v7259_v61 = vpop.f32.mrb[30].mxu0 }
0x1a11   :  { %v4001_v16 = vadd.f32 %v7259_v61, %v6527_v17  ;;  %v3995_v37 = vpop.f32.mrb[31].mxu0 }
0x1a12   :  { %v3996_v62 = vadd.f32 %v6527_v17, %v3995_v37 }
0x1a13   :  { %v4005_v42 = vadd.f32 %v4001_v16, %v8749_v52 }
0x1a14   :  { %v4004_v34 = vadd.f32 %v3996_v62, %v8747_v21  ;;  %v6539_v21 = vld [vmem:[%s9358_s27 + $0x1a0] sm:$0xff] }
0x1a15   :  { %v4013_v50 = vsel %vm136_vm0, %v4005_v42, 0.0  ;;  %v7705_v48 = vpack.c.bf16 %v6540_v60, %v6539_v21 }
0x1a16   :  { %4014 = vadd.xlane.f32.xlu1 %v4013_v50  ;;  %v4010_v51 = vsel %vm136_vm0, %v4004_v34, 0.0 }
0x1a17   :  { %4011 = vadd.xlane.f32.xlu0 %v4010_v51  ;;  %7706 = vmatprep.subr.bf16.mxu0 %v7705_v48 }
0x1a18   :  { %7708 = vmatpush3.bf16.msra.mxu0 %v7705_v48 }
0x1a19   :  { %7710 = vmatprep.subr.bf16.mxu0 %v7709_v4 }
0x1a1c   :  { %7712 = vmatpush3.bf16.msra.mxu0 %v7709_v4 }
0x1a1f   :  { %7280 = vmatmul.mubr.msk.f32.vlgmr.msra.gmra.mrb[32].mxu0 %vm136_vm0, %v8025_v6 }
0x1aa3   :  { %v4015_v26 = vpop.xlane.xlu1 %4014 }
0x1aa4   :  { %v4017_v53 = vmul.f32 0.03125, %v4015_v26  ;;  %v4012_v35 = vpop.xlane.xlu0 %4011 }
0x1aa5   :  { %v4016_v32 = vmul.f32 0.03125, %v4012_v35 }
0x1aa6   :  { %v4019_v55 = vsub.f32 %v4005_v42, %v4017_v53 }
0x1aa7   :  { %v4018_v56 = vsub.f32 %v4004_v34, %v4016_v32  ;;  %v6560_v32 = vld [vmem:[%s9325_s9 + $0xe] ss:$0 sm:$0xff] }
0x1aa8   :  { %v4021_v39 = vmul.f32 %v4019_v55, %v4019_v55 }
0x1aa9   :  { %v4020_v58 = vmul.f32 %v4018_v56, %v4018_v56 }
0x1aaa   :  { %v4025_v59 = vsel %vm136_vm0, %v4021_v39, 0.0 }
0x1aab   :  { %4026 = vadd.xlane.f32.xlu1 %v4025_v59  ;;  %v4022_v52 = vsel %vm136_vm0, %v4020_v58, 0.0 }
0x1aac   :  { %4023 = vadd.xlane.f32.xlu0 %v4022_v52 }
0x1af2   :  { %v7281_v18 = vpop.f32.mrb[32].mxu0 }
0x1af3   :  { %v4245_v9 = vadd.f32 %v7281_v18, %v6557_v49  ;;  %v4239_v17 = vpop.f32.mrb[33].mxu0 }
0x1af4   :  { %v4240_v61 = vadd.f32 %v6557_v49, %v4239_v17 }
0x1af6   :  { %v7721_v16 = vpack.c.bf16 %v4245_v9, %v4240_v61 }
0x1af8   :  { %7723 = vmatprep.subr.msk.bf16.mxu0 %vm8265_vm5, %v7721_v16 }
0x1af9   :  { %7726 = vmatpush3.bf16.xpose.msk.msra.mxu0 %vm8265_vm5, %v7721_v16 }
0x1b38   :  { %v4027_v14 = vpop.xlane.xlu1 %4026 }
0x1b39   :  { %v4029_v15 = vmul.f32 0.03125, %v4027_v14  ;;  %v4024_v19 = vpop.xlane.xlu0 %4023 }
0x1b3a   :  { %v4028_v20 = vmul.f32 0.03125, %v4024_v19 }
0x1b3b   :  { %v4031_v57 = vadd.f32 1e-05, %v4029_v15  ;;  %v8028_v15 = vld [vmem:[%s9364_s4 + $0x8] sm:$0xff] }
0x1b3c   :  { %v4030_v22 = vadd.f32 1e-05, %v4028_v20 }
0x1b3d   :  { %7964 = vrsqrt.f32 %v4031_v57  ;;  %v8029_v57 = vld [vmem:[%s9364_s4] sm:$0xff] }
0x1b3e   :  { %7966 = vrsqrt.f32 %v4030_v22 }
0x1b47   :  { %v7965_v23 = vpop.eup %7964 }
0x1b48   :  { %v7967_v25 = vpop.eup %7966  ;;  %v4035_v27 = vmul.f32 %v7965_v23, %v4019_v55 }
0x1b49   :  { %v4034_v28 = vmul.f32 %v7967_v25, %v4018_v56 }
0x1b4a   :  { %v4043_v38 = vmul.f32 %v6532_v24, %v4035_v27 }
0x1b4b   :  { %v4042_v40 = vmul.f32 %v6532_v24, %v4034_v28 }
0x1b4c   :  { %v8974_v46 = vadd.f32 %v6533_v36, %v4043_v38  ;;  %v8030_v38 = vld [vmem:[%s9364_s4 + $0x28] sm:$0xff] }
0x1b4d   :  { %v8972_v63 = vadd.f32 %v6533_v36, %v4042_v40 }
0x1b4f   :  { %7268 = vmatprep.mubr.msk.f32.mxu1 %vm136_vm0, %v8972_v63 }
0x1b50   :  { %7269 = vmatmul.mubr.msk.f32.vlgmr.msra.gmra.mrb[28].mxu1 %vm136_vm0, %v8974_v46 }
0x1b51   :  { %7716 = vmatpush3.bf16.msra.mxu1 %v7713_v13  ;;  %7290 = vmatprep.mubr.msk.f32.mxu1 %vm136_vm0, %v8913_v44  ;;  %v6554_v44 = vld [vmem:[%s9325_s9 + $0xc] ss:$0 sm:$0xff] }
0x1b52   :  { %7718 = vmatprep.subr.bf16.mxu1 %v7717_v47 }
0x1b55   :  { %7720 = vmatpush3.bf16.msra.mxu1 %v7717_v47 }
0x1b56   :  { %7729 = vmatprep.subr.msk.bf16.mxu1 %vm8265_vm5, %v7721_v16 }
0x1b58   :  { %7291 = vmatmul.mubr.msk.f32.vlgmr.msra.gmra.mrb[30].mxu1 %vm136_vm0, %v8025_v6 }
0x1b5e   :  { %7732 = vmatpush3.bf16.xpose.msk.msra.mxu1 %vm8265_vm5, %v7721_v16 }
0x1b5f   :  { %7743 = vmatprep.subr.msk.bf16.mxu1 %vm8265_vm5, %v7721_v16 }
0x1c23   :  { %v7270_v37 = vpop.f32.mrb[28].mxu1 }
0x1c24   :  { %v4164_v62 = vadd.f32 %v7270_v37, %v6554_v44  ;;  %v4158_v42 = vpop.f32.mrb[29].mxu1  ;;  %v8033_v37 = vld [vmem:[%s9364_s4 + $0x30] sm:$0xff] }
0x1c25   :  { %v4159_v34 = vadd.f32 %v6554_v44, %v4158_v42 }
0x1c26   :  { %v4330_v26 = vmul.f32 %v8258_v30, %v4164_v62  ;;  %v4455_v53 = vmul.f32 %v8261_v31, %v4164_v62  ;;  %v4736_v21 = vmul.f32 %v8302_v41, %v4164_v62  ;;  %v4938_v0 = vmul.f32 %v8380_v45, %v4164_v62 }
0x1c27   :  { %v4329_v50 = vmul.f32 %v8258_v30, %v4159_v34  ;;  %v4454_v51 = vmul.f32 %v8261_v31, %v4159_v34  ;;  %v4735_v35 = vmul.f32 %v8302_v41, %v4159_v34  ;;  %v4937_v60 = vmul.f32 %v8380_v45, %v4159_v34 }
0x1c29   :  { %7297 = vmatprep.mubr.msk.f32.mxu0 %vm136_vm0, %v4329_v50  ;;  %7304 = vmatprep.mubr.msk.f32.mxu1 %vm136_vm0, %v4454_v51 }
0x1c2a   :  { %7298 = vmatmul.mubr.msk.f32.vlgmr.msra.gmra.mrb[34].mxu0 %vm136_vm0, %v4330_v26  ;;  %7305 = vmatmul.mubr.msk.f32.vlgmr.msra.gmra.mrb[32].mxu1 %vm136_vm0, %v4455_v53 }
0x1c2b   :  { %7746 = vmatpush3.bf16.xpose.msk.msra.mxu1 %vm8265_vm5, %v7721_v16  ;;  %7325 = vmatprep.mubr.msk.f32.mxu1 %vm136_vm0, %v4735_v35  ;;  %v7292_v55 = vpop.f32.mrb[30].mxu1 }
0x1c2c   :  { %7753 = vmatprep.subr.msk.bf16.mxu1 %vm8265_vm5, %v7721_v16  ;;  %v9016_v56 = vadd.f32 %v7292_v55, %v6560_v32  ;;  %v4320_v39 = vpop.f32.mrb[31].mxu1 }
0x1c2d   :  { %v9018_v58 = vadd.f32 %v6560_v32, %v4320_v39 }
0x1c2e   :  { %v4572_v59 = vmul.f32 %v8261_v31, %v9016_v56  ;;  %v4453_v3 = vmul.f32 %v8258_v30, %v9016_v56 }
0x1c2f   :  { %v4571_v52 = vmul.f32 %v8261_v31, %v9018_v58  ;;  %v4452_v31 = vmul.f32 %v8258_v30, %v9018_v58  ;;  %v8027_v30 = vld [vmem:[%s9364_s4 + $0x10] sm:$0xff] }
0x1c31   :  { %v7733_v48 = vpack.c.bf16 %v4572_v59, %v4571_v52  ;;  %v9036_v4 = vpack.c.bf16 %v4453_v3, %v4452_v31 }
0x1c32   :  { %7326 = vmatmul.mubr.msk.f32.vlgmr.msra.gmra.mrb[34].mxu1 %vm136_vm0, %v4736_v21 }
0x1c33   :  { %7756 = vmatpush3.bf16.xpose.msk.msra.mxu1 %vm8265_vm5, %v7721_v16  ;;  %7339 = vmatprep.mubr.msk.f32.mxu1 %vm136_vm0, %v4937_v60  ;;  %v8032_v16 = vld [vmem:[%s9364_s4 + $0x38] sm:$0xff] }
0x1c34   :  { %7734 = vmatprep.subr.bf16.mxu0 %v7733_v48 }
0x1c35   :  { %7736 = vmatpush3.bf16.msra.mxu0 %v7733_v48 }
0x1c36   :  { %7738 = vmatprep.subr.bf16.mxu0 %v9036_v4 }
0x1c3a   :  { %7340 = vmatmul.mubr.msk.f32.vlgmr.msra.gmra.mrb[36].mxu1 %vm136_vm0, %v4938_v0 }
0x1cfd   :  { %v7299_v33 = vpop.f32.mrb[34].mxu0  ;;  %v7306_v1 = vpop.f32.mrb[32].mxu1 }
0x1cfe   :  { %v4419_v5 = vmul.f32 0.35355338, %v7299_v33  ;;  %v4538_v6 = vmul.f32 0.35355338, %v7306_v1  ;;  %v4409_v7 = vpop.f32.mrb[35].mxu0  ;;  %v4528_v8 = vpop.f32.mrb[33].mxu1 }
0x1cff   :  { %v4418_v2 = vmul.f32 0.35355338, %v4409_v7  ;;  %v4537_v10 = vmul.f32 0.35355338, %v4528_v8 }
0x1d00   :  { %v4540_v12 = vadd.f32 %v8026_v11, %v4538_v6  ;;  %v4421_v19 = vadd.f32 %v8028_v15, %v4419_v5 }
0x1d01   :  { %v4539_v13 = vadd.f32 %v8027_v30, %v4537_v10  ;;  %v4420_v22 = vadd.f32 %v8029_v57, %v4418_v2 }
0x1d02   :  { %v4544_v14 = vsel %vm475_vm9, %v4540_v12, -inf  ;;  %v4425_v27 = vsel %vm475_vm9, %v4421_v19, -inf }
0x1d03   :  { %4545 = vmax.xlane.f32.xlu1 %v4544_v14  ;;  %v4541_v20 = vsel %vm475_vm9, %v4539_v13, -inf  ;;  %v4422_v36 = vsel %vm475_vm9, %v4420_v22, -inf }
0x1d04   :  { %4542 = vmax.xlane.f32.xlu0 %v4541_v20 }
0x1d05   :  { %v7327_v23 = vpop.f32.mrb[34].mxu1 }
0x1d06   :  { %v4819_v24 = vmul.f32 0.35355338, %v7327_v23  ;;  %v4809_v25 = vpop.f32.mrb[35].mxu1 }
0x1d07   :  { %v4818_v28 = vmul.f32 0.35355338, %v4809_v25  ;;  %4426 = vmax.xlane.f32.xlu1 %v4425_v27 }
0x1d08   :  { %4423 = vmax.xlane.f32.xlu0 %v4422_v36  ;;  %v4821_v40 = vadd.f32 %v8030_v38, %v4819_v24 }
0x1d09   :  { %v4820_v54 = vadd.f32 %v8031_v43, %v4818_v28 }
0x1d0a   :  { %v4825_v47 = vsel %vm475_vm9, %v4821_v40, -inf }
0x1d0b   :  { %4826 = vmax.xlane.f32.xlu1 %v4825_v47  ;;  %v4822_v49 = vsel %vm475_vm9, %v4820_v54, -inf }
0x1d0c   :  { %4823 = vmax.xlane.f32.xlu0 %v4822_v49 }
0x1d0d   :  { %v7341_v18 = vpop.f32.mrb[36].mxu1 }
0x1d0e   :  { %v5021_v9 = vmul.f32 0.35355338, %v7341_v18  ;;  %v5011_v17 = vpop.f32.mrb[37].mxu1 }
0x1d0f   :  { %v5020_v61 = vmul.f32 0.35355338, %v5011_v17 }
0x1d10   :  { %v5023_v44 = vadd.f32 %v8032_v16, %v5021_v9 }
0x1d11   :  { %v5022_v62 = vadd.f32 %v8033_v37, %v5020_v61 }
0x1d12   :  { %v5027_v42 = vsel %vm475_vm9, %v5023_v44, -inf }
0x1d13   :  { %5028 = vmax.xlane.f32.xlu1 %v5027_v42  ;;  %v5024_v34 = vsel %vm475_vm9, %v5022_v62, -inf }
0x1d14   :  { %5025 = vmax.xlane.f32.xlu0 %v5024_v34 }
0x1d90   :  { %v4546_v50 = vpop.xlane.xlu1 %4545 }
0x1d91   :  { %vm4548_vm5 = vcmp.eq.f32.partialorder %v4546_v50, -inf  ;;  %v4543_v51 = vpop.xlane.xlu0 %4542 }
0x1d92   :  { %v4550_v26 = vsel %vm4548_vm5, 0.0, %v4546_v50  ;;  %vm4547_vm11 = vcmp.eq.f32.partialorder %v4543_v51, -inf }
0x1d93   :  { %v4552_v53 = vsub.f32 %v4540_v12, %v4550_v26  ;;  %v4549_v35 = vsel %vm4547_vm11, 0.0, %v4543_v51  ;;  %v4852_v26 = vmul.f32 %v8302_v41, %v9018_v58 }
0x1d94   :  { %v4551_v32 = vsub.f32 %v4539_v13, %v4549_v35  ;;  %v4427_v55 = vpop.xlane.xlu1 %4426 }
0x1d95   :  { %v4555_v39 = vmul.f32 1.442695, %v4552_v53  ;;  %vm4429_vm12 = vcmp.eq.f32.partialorder %v4427_v55, -inf  ;;  %v4424_v59 = vpop.xlane.xlu0 %4423  ;;  %v4853_v53 = vmul.f32 %v8302_v41, %v9016_v56 }
0x1d96   :  { %v4553_v52 = vmul.f32 1.442695, %v4551_v32  ;;  %v4431_v21 = vsel %vm4429_vm12, 0.0, %v4427_v55  ;;  %vm4428_vm13 = vcmp.eq.f32.partialorder %v4424_v59, -inf }
0x1d97   :  { %7968 = vpow2.f32 %v4555_v39  ;;  %v4433_v60 = vsub.f32 %v4421_v19, %v4431_v21  ;;  %v4430_v48 = vsel %vm4428_vm13, 0.0, %v4424_v59  ;;  %v7747_v21 = vpack.c.bf16 %v4853_v53, %v4852_v26 }
0x1d98   :  { %7970 = vpow2.f32 %v4553_v52  ;;  %v4432_v0 = vsub.f32 %v4420_v22, %v4430_v48  ;;  %v4827_v31 = vpop.xlane.xlu1 %4826  ;;  %vm6229_vm13 = vcmask 195584  }
0x1d99   :  { %v4436_v3 = vmul.f32 1.442695, %v4433_v60  ;;  %vm4829_vm14 = vcmp.eq.f32.partialorder %v4827_v31, -inf  ;;  %v4824_v33 = vpop.xlane.xlu0 %4823 }
0x1d9a   :  { %v4434_v1 = vmul.f32 1.442695, %v4432_v0  ;;  %v4831_v5 = vsel %vm4829_vm14, 0.0, %v4827_v31  ;;  %vm4828_vm15 = vcmp.eq.f32.partialorder %v4824_v33, -inf }
0x1d9b   :  { %7972 = vpow2.f32 %v4436_v3  ;;  %v4833_v6 = vsub.f32 %v4821_v40, %v4831_v5  ;;  %v4830_v7 = vsel %vm4828_vm15, 0.0, %v4824_v33  ;;  %v5054_v3 = vmul.f32 %v8380_v45, %v9018_v58 }
0x1d9c   :  { %7974 = vpow2.f32 %v4434_v1  ;;  %v4832_v8 = vsub.f32 %v4820_v54, %v4830_v7  ;;  %v5055_v33 = vmul.f32 %v8380_v45, %v9016_v56  ;;  %v6549_v45 = vld [vmem:[%s9358_s27 + $0x1e0] sm:$0xff]  ;;  %v6550_v56 = vld [vmem:[%s9358_s27 + $0x1e8] sm:$0xff] }
0x1d9d   :  { %v4836_v2 = vmul.f32 1.442695, %v4833_v6 }
0x1d9e   :  { %v4834_v10 = vmul.f32 1.442695, %v4832_v8  ;;  %v7757_v6 = vpack.c.bf16 %v5055_v33, %v5054_v3  ;;  %v6602_v3 = vld [vmem:[%s9330_s14 + $0x40] sm:$0xff]  ;;  %v6603_v33 = vld [vmem:[%s9330_s14 + $0x48] sm:$0xff] }
0x1d9f   :  { %7976 = vpow2.f32 %v4836_v2 }
0x1da0   :  { %7978 = vpow2.f32 %v4834_v10  ;;  %v5029_v11 = vpop.xlane.xlu1 %5028  ;;  %v7761_v10 = vpack.c.bf16 %v6550_v56, %v6549_v45  ;;  %v6608_v56 = vld [vmem:[%s9330_s14 + $0x70] sm:$0xff] }
0x1da1   :  { %v7969_v12 = vpop.eup %7968  ;;  %vm5031_vm1 = vcmp.eq.f32.partialorder %v5029_v11, -inf  ;;  %v5026_v30 = vpop.xlane.xlu0 %5025 }
0x1da2   :  { %v7971_v13 = vpop.eup %7970  ;;  %v5033_v14 = vsel %vm5031_vm1, 0.0, %v5029_v11  ;;  %vm5030_vm2 = vcmp.eq.f32.partialorder %v5026_v30, -inf  ;;  %v4560_v15 = vsel %vm475_vm9, %v7969_v12, 0.0 }
0x1da3   :  { %v5035_v19 = vsub.f32 %v5023_v44, %v5033_v14  ;;  %v5032_v20 = vsel %vm5030_vm2, 0.0, %v5026_v30  ;;  %4561 = vadd.xlane.f32.xlu1 %v4560_v15  ;;  %v4557_v57 = vsel %vm475_vm9, %v7971_v13, 0.0  ;;  %v6552_v14 = vld [vmem:[%s9358_s27 + $0x1f8] sm:$0xff] }
0x1da4   :  { %v5034_v22 = vsub.f32 %v5022_v62, %v5032_v20  ;;  %4558 = vadd.xlane.f32.xlu0 %v4557_v57 }
0x1da5   :  { %v9073_v23 = vpop.eup %7972  ;;  %v5038_v24 = vmul.f32 1.442695, %v5035_v19 }
0x1da6   :  { %v7975_v25 = vpop.eup %7974  ;;  %v5036_v27 = vmul.f32 1.442695, %v5034_v22  ;;  %v4441_v28 = vsel %vm475_vm9, %v9073_v23, 0.0  ;;  %v6587_v22 = vld [vmem:[%s9325_s9 + $0xf] ss:$0 sm:$0xff] }
0x1da7   :  { %7980 = vpow2.f32 %v5038_v24  ;;  %4442 = vadd.xlane.f32.xlu1 %v4441_v28  ;;  %v4438_v36 = vsel %vm475_vm9, %v7975_v25, 0.0 }
0x1da8   :  { %7982 = vpow2.f32 %v5036_v27  ;;  %4439 = vadd.xlane.f32.xlu0 %v4438_v36 }
0x1da9   :  { %v9078_v38 = vpop.eup %7976 }
0x1daa   :  { %v7979_v40 = vpop.eup %7978  ;;  %v4841_v43 = vsel %vm475_vm9, %v9078_v38, 0.0 }
0x1dab   :  { %4842 = vadd.xlane.f32.xlu1 %v4841_v43  ;;  %v4838_v54 = vsel %vm475_vm9, %v7979_v40, 0.0 }
0x1dac   :  { %4839 = vadd.xlane.f32.xlu0 %v4838_v54 }
0x1db1   :  { %v9083_v47 = vpop.eup %7980 }
0x1db2   :  { %v9085_v49 = vpop.eup %7982  ;;  %v5043_v18 = vsel %vm475_vm9, %v9083_v47, 0.0 }
0x1db3   :  { %5044 = vadd.xlane.f32.xlu1 %v5043_v18  ;;  %v5040_v9 = vsel %vm475_vm9, %v9085_v49, 0.0 }
0x1db4   :  { %5041 = vadd.xlane.f32.xlu0 %v5040_v9 }
0x1e30   :  { %v4562_v17 = vpop.xlane.xlu1 %4561 }
0x1e31   :  { %7984 = vrcp.f32 %v4562_v17  ;;  %v4559_v61 = vpop.xlane.xlu0 %4558  ;;  %vm4564_vm3 = vcmp.gt.f32.partialorder %v4562_v17, 0.0 }
0x1e32   :  { %7986 = vrcp.f32 %v4559_v61  ;;  %vm4563_vm6 = vcmp.gt.f32.partialorder %v4559_v61, 0.0 }
0x1e34   :  { %v4443_v16 = vpop.xlane.xlu1 %4442 }
0x1e35   :  { %v4440_v44 = vpop.xlane.xlu0 %4439  ;;  %vm4445_vm8 = vcmp.gt.f32.partialorder %v4443_v16, 0.0 }
0x1e36   :  { %7988 = vrcp.f32 %v4440_v44  ;;  %vm4444_vm7 = vcmp.gt.f32.partialorder %v4440_v44, 0.0  ;;  %v6595_v44 = vld [vmem:[%s9328_s12 + $0x28] sm:$0xff] }
0x1e37   :  { %7990 = vrcp.f32 %v4443_v16 }
0x1e38   :  { %v4843_v50 = vpop.xlane.xlu1 %4842 }
0x1e39   :  { %v4840_v37 = vpop.xlane.xlu0 %4839  ;;  %vm4845_vm5 = vcmp.gt.f32.partialorder %v4843_v50, 0.0 }
0x1e3a   :  { %7992 = vrcp.f32 %v4840_v37  ;;  %vm4844_vm10 = vcmp.gt.f32.partialorder %v4840_v37, 0.0 }
0x1e3b   :  { %v7985_v62 = vpop.eup %7984  ;;  %7994 = vrcp.f32 %v4843_v50 }
0x1e3c   :  { %v7987_v42 = vpop.eup %7986  ;;  %v4568_v34 = vsel %vm4564_vm3, %v7985_v62, 0.0  ;;  %v6596_v62 = vld [vmem:[%s9328_s12 + $0x30] sm:$0xff] }
0x1e3d   :  { %v4567_v51 = vsel %vm4563_vm6, %v7987_v42, 0.0  ;;  %v4570_v32 = vmul.f32 %v7969_v12, %v4568_v34  ;;  %v6597_v42 = vld [vmem:[%s9328_s12 + $0x38] sm:$0xff] }
0x1e3e   :  { %v4569_v35 = vmul.f32 %v7971_v13, %v4567_v51  ;;  %v6551_v13 = vld [vmem:[%s9358_s27 + $0x1f0] sm:$0xff]  ;;  %v7773_v34 = vpack.c.bf16 %v6597_v42, %v6596_v62 }
0x1e3f   :  { %v7765_v19 = vpack.c.bf16 %v6552_v14, %v6551_v13 }
0x1e40   :  { %v7989_v55 = vpop.eup %7988  ;;  %7311 = vmatprep.mubr.msk.f32.mxu0 %vm475_vm9, %v4569_v35  ;;  %v5045_v0 = vpop.xlane.xlu1 %5044 }
0x1e41   :  { %v7991_v39 = vpop.eup %7990  ;;  %v4448_v59 = vsel %vm4444_vm7, %v7989_v55, 0.0  ;;  %v5042_v52 = vpop.xlane.xlu0 %5041  ;;  %7312 = vmatmul.mubr.msk.f32.vlgmr.msra.gmra.mrb[36].mxu0 %vm475_vm9, %v4570_v32  ;;  %vm5047_vm12 = vcmp.gt.f32.partialorder %v5045_v0, 0.0 }
0x1e42   :  { %v4450_v60 = vmul.f32 %v7975_v25, %v4448_v59  ;;  %7996 = vrcp.f32 %v5042_v52  ;;  %7740 = vmatpush3.bf16.msra.mxu0 %v9036_v4  ;;  %v4449_v48 = vsel %vm4445_vm8, %v7991_v39, 0.0  ;;  %vm5046_vm11 = vcmp.gt.f32.partialorder %v5042_v52, 0.0  ;;  %v6592_v39 = vld [vmem:[%s9326_s10 + $0x4] ss:$0 sm:$0xff] }
0x1e43   :  { %7748 = vmatprep.subr.bf16.mxu0 %v7747_v21  ;;  %v4451_v1 = vmul.f32 %v9073_v23, %v4449_v48  ;;  %7998 = vrcp.f32 %v5045_v0 }
0x1e44   :  { %v7993_v41 = vpop.eup %7992  ;;  %7318 = vmatprep.mubr.msk.f32.mxu0 %vm475_vm9, %v4450_v60  ;;  %v6593_v60 = vld [vmem:[%s9327_s11 + $0x4] ss:$0 sm:$0xff] }
0x1e45   :  { %v4848_v31 = vsel %vm4844_vm10, %v7993_v41, 0.0  ;;  %v7995_v4 = vpop.eup %7994 }
0x1e46   :  { %v4850_v5 = vmul.f32 %v7979_v40, %v4848_v31  ;;  %v4849_v8 = vsel %vm4845_vm5, %v7995_v4, 0.0  ;;  %v6605_v4 = vld [vmem:[%s9330_s14 + $0x58] sm:$0xff] }
0x1e47   :  { %v4851_v2 = vmul.f32 %v9078_v38, %v4849_v8  ;;  %v6607_v8 = vld [vmem:[%s9330_s14 + $0x68] sm:$0xff] }
0x1e49   :  { %7319 = vmatmul.mubr.msk.f32.vlgmr.msra.gmra.mrb[36].mxu0 %vm475_vm9, %v4451_v1  ;;  %v6604_v1 = vld [vmem:[%s9330_s14 + $0x50] sm:$0xff] }
0x1e4a   :  { %7750 = vmatpush3.bf16.msra.mxu0 %v7747_v21  ;;  %7332 = vmatprep.mubr.msk.f32.mxu0 %vm475_vm9, %v4850_v5  ;;  %v7777_v5 = vpack.c.bf16 %v6603_v33, %v6602_v3  ;;  %v6617_v33 = vld [vmem:[%s9327_s11 + $0x5] ss:$0 sm:$0xff] }
0x1e4b   :  { %7758 = vmatprep.subr.bf16.mxu0 %v7757_v6 }
0x1e4c   :  { %v7997_v7 = vpop.eup %7996 }
0x1e4d   :  { %v5050_v58 = vsel %vm5046_vm11, %v7997_v7, 0.0  ;;  %v7999_v12 = vpop.eup %7998  ;;  %v6606_v7 = vld [vmem:[%s9330_s14 + $0x60] sm:$0xff] }
0x1e4e   :  { %v5052_v11 = vmul.f32 %v9085_v49, %v5050_v58  ;;  %v5051_v30 = vsel %vm5047_vm12, %v7999_v12, 0.0  ;;  %v7785_v45 = vpack.c.bf16 %v6607_v8, %v6606_v7  ;;  %v6609_v58 = vld [vmem:[%s9330_s14 + $0x78] sm:$0xff] }
0x1e4f   :  { %v5053_v15 = vmul.f32 %v9083_v47, %v5051_v30 }
0x1e51   :  { %7333 = vmatmul.mubr.msk.f32.vlgmr.msra.gmra.mrb[36].mxu0 %vm475_vm9, %v4851_v2  ;;  %v7789_v2 = vpack.c.bf16 %v6609_v58, %v6608_v56 }
0x1e52   :  { %7760 = vmatpush3.bf16.msra.mxu0 %v7757_v6  ;;  %7346 = vmatprep.mubr.msk.f32.mxu0 %vm475_vm9, %v5052_v11  ;;  %v7781_v6 = vpack.c.bf16 %v6605_v4, %v6604_v1 }
0x1e53   :  { %7762 = vmatprep.subr.bf16.mxu0 %v7761_v10 }
0x1e59   :  { %7347 = vmatmul.mubr.msk.f32.vlgmr.msra.gmra.mrb[36].mxu0 %vm475_vm9, %v5053_v15  ;;  %vm8059_vm9 = vmmov 0  }
0x1e5a   :  { %7764 = vmatpush3.bf16.msra.mxu0 %v7761_v10  ;;  %v6599_v10 = vld [vmem:[%s9329_s13 + $0x1] ss:$0 sm:$0xff] }
0x1e5b   :  { %7766 = vmatprep.subr.bf16.mxu0 %v7765_v19 }
0x1e5e   :  { %7768 = vmatpush3.bf16.msra.mxu0 %v7765_v19 }
0x1e5f   :  { %7778 = vmatprep.subr.bf16.mxu0 %v7777_v5 }
0x1f2c   :  { %v7348_v20 = vpop.f32.mrb[36].mxu0 }
0x1f2d   :  { %v5128_v57 = vpop.f32.mrb[37].mxu0 }
0x1f2e   :  { %7357 = vmatprep.mubr.msk.f32.mxu0 %vm136_vm0, %v5128_v57 }
0x1f2f   :  { %7358 = vmatmul.mubr.msk.f32.vlgmr.msra.gmra.mrb[38].mxu0 %vm136_vm0, %v7348_v20 }
0x1f30   :  { %7780 = vmatpush3.bf16.msra.mxu0 %v7777_v5 }
0x1f31   :  { %7782 = vmatprep.subr.bf16.mxu0 %v7781_v6 }
0x1f34   :  { %7784 = vmatpush3.bf16.msra.mxu0 %v7781_v6 }
0x1f35   :  { %7786 = vmatprep.subr.bf16.mxu0 %v7785_v45 }
0x1f38   :  { %7788 = vmatpush3.bf16.msra.mxu0 %v7785_v45 }
0x1f39   :  { %7790 = vmatprep.subr.bf16.mxu0 %v7789_v2 }
0x1f3c   :  { %7792 = vmatpush3.bf16.msra.mxu0 %v7789_v2 }
0x2002   :  { %v7359_v23 = vpop.f32.mrb[38].mxu0 }
0x2003   :  { %v5223_v24 = vadd.f32 %v7359_v23, %v6587_v22  ;;  %v5217_v25 = vpop.f32.mrb[39].mxu0 }
0x2004   :  { %v5218_v27 = vadd.f32 %v6587_v22, %v5217_v25 }
0x2005   :  { %v5227_v28 = vadd.f32 %v5223_v24, %v8974_v46 }
0x2006   :  { %v5226_v36 = vadd.f32 %v5218_v27, %v8972_v63  ;;  %v6594_v63 = vld [vmem:[%s9328_s12 + $0x20] sm:$0xff]  ;;  %s9367_s12 = sld [smem:[#allocation11_spill]] }
0x2007   :  { %v5235_v38 = vsel %vm136_vm0, %v5227_v28, 0.0  ;;  %v7769_v37 = vpack.c.bf16 %v6595_v44, %v6594_v63 }
0x2008   :  { %5236 = vadd.xlane.f32.xlu1 %v5235_v38  ;;  %v5232_v40 = vsel %vm136_vm0, %v5226_v36, 0.0 }
0x2009   :  { %5233 = vadd.xlane.f32.xlu0 %v5232_v40  ;;  %7770 = vmatprep.subr.bf16.mxu1 %v7769_v37 }
0x200a   :  { %7772 = vmatpush3.bf16.msra.mxu1 %v7769_v37 }
0x200b   :  { %7774 = vmatprep.subr.bf16.mxu1 %v7773_v34 }
0x200e   :  { %7776 = vmatpush3.bf16.msra.mxu1 %v7773_v34 }
0x2095   :  { %v5237_v43 = vpop.xlane.xlu1 %5236 }
0x2096   :  { %v5239_v54 = vmul.f32 0.03125, %v5237_v43  ;;  %v5234_v47 = vpop.xlane.xlu0 %5233 }
0x2097   :  { %v5238_v49 = vmul.f32 0.03125, %v5234_v47 }
0x2098   :  { %v5241_v18 = vsub.f32 %v5227_v28, %v5239_v54 }
0x2099   :  { %v5240_v9 = vsub.f32 %v5226_v36, %v5238_v49 }
0x209a   :  { %v5243_v17 = vmul.f32 %v5241_v18, %v5241_v18 }
0x209b   :  { %v5242_v61 = vmul.f32 %v5240_v9, %v5240_v9 }
0x209c   :  { %v5247_v16 = vsel %vm136_vm0, %v5243_v17, 0.0 }
0x209d   :  { %5248 = vadd.xlane.f32.xlu1 %v5247_v16  ;;  %v5244_v46 = vsel %vm136_vm0, %v5242_v61, 0.0 }
0x209e   :  { %5245 = vadd.xlane.f32.xlu0 %v5244_v46 }
0x212a   :  { %v5249_v50 = vpop.xlane.xlu1 %5248 }
0x212b   :  { %v5251_v51 = vmul.f32 0.03125, %v5249_v50  ;;  %v5246_v26 = vpop.xlane.xlu0 %5245 }
0x212c   :  { %v5250_v53 = vmul.f32 0.03125, %v5246_v26 }
0x212d   :  { %v5253_v35 = vadd.f32 1e-05, %v5251_v51 }
0x212e   :  { %v5252_v32 = vadd.f32 1e-05, %v5250_v53 }
0x212f   :  { %8000 = vrsqrt.f32 %v5253_v35 }
0x2130   :  { %8002 = vrsqrt.f32 %v5252_v32 }
0x2139   :  { %v8001_v55 = vpop.eup %8000 }
0x213a   :  { %v8003_v59 = vpop.eup %8002  ;;  %v5257_v52 = vmul.f32 %v8001_v55, %v5241_v18  ;;  %v6611_v18 = vld [vmem:[%s9331_s15 + $0x1] ss:$0 sm:$0xff] }
0x213b   :  { %v5256_v21 = vmul.f32 %v8003_v59, %v5240_v9 }
0x213c   :  { %v5265_v41 = vmul.f32 %v6592_v39, %v5257_v52 }
0x213d   :  { %v5264_v48 = vmul.f32 %v6592_v39, %v5256_v21 }
0x213e   :  { %v5273_v31 = vadd.f32 %v6593_v60, %v5265_v41 }
0x213f   :  { %v5272_v0 = vadd.f32 %v6593_v60, %v5264_v48 }
0x2141   :  { %7368 = vmatprep.mubr.msk.f32.mxu1 %vm136_vm0, %v5272_v0 }
0x2142   :  { %7369 = vmatmul.mubr.msk.f32.vlgmr.msra.gmra.mrb[38].mxu1 %vm136_vm0, %v5273_v31 }
0x2215   :  { %v7370_v11 = vpop.f32.mrb[38].mxu1 }
0x2216   :  { %v5365_v12 = vadd.f32 %v7370_v11, %v6599_v10  ;;  %v5359_v30 = vpop.f32.mrb[39].mxu1 }
0x2217   :  { %v5360_v13 = vadd.f32 %v6599_v10, %v5359_v30 }
0x2218   :  { %v5371_v14 = vmul.f32 0.044715, %v5365_v12  ;;  %v5369_v54 = vmul.f32 0.5, %v5365_v12 }
0x2219   :  { %v5370_v15 = vmul.f32 0.044715, %v5360_v13  ;;  %v5368_v40 = vmul.f32 0.5, %v5360_v13 }
0x221a   :  { %v5373_v19 = vmul.f32 %v5371_v14, %v5365_v12 }
0x221b   :  { %v5372_v20 = vmul.f32 %v5370_v15, %v5360_v13 }
0x221c   :  { %v5375_v57 = vmul.f32 %v5373_v19, %v5365_v12  ;;  %v5576_v19 = vld [vmem:[%s9334_s18] sm:$0xff] }
0x221d   :  { %v5374_v22 = vmul.f32 %v5372_v20, %v5360_v13  ;;  %v5577_v20 = vld [vmem:[%s9334_s18 + $0x8] sm:$0xff] }
0x221e   :  { %v5377_v23 = vadd.f32 %v5375_v57, %v5365_v12  ;;  %v7793_v57 = vpack.c.bf16 %v5577_v20, %v5576_v19  ;;  %v6146_v19 = vld [vmem:[%s9367_s12 + $0x10] sm:$0xff] }
0x221f   :  { %v5376_v24 = vadd.f32 %v5374_v22, %v5360_v13  ;;  %v5754_v22 = vld [vmem:[%s9338_s22] sm:$0xff] }
0x2220   :  { %v5379_v25 = vmul.f32 0.7978846, %v5377_v23  ;;  %v5755_v23 = vld [vmem:[%s9338_s22 + $0x8] sm:$0xff]  ;;  %7794 = vmatprep.subr.bf16.mxu1 %v7793_v57 }
0x2221   :  { %v5378_v27 = vmul.f32 0.7978846, %v5376_v24  ;;  %v7809_v24 = vpack.c.bf16 %v5755_v23, %v5754_v22  ;;  %7796 = vmatpush3.bf16.msra.mxu1 %v7793_v57  ;;  %v6312_v57 = vld [vmem:[%s9368_s26 + $0x8] sm:$0xff]  ;;  %v6311_v22 = vld [vmem:[%s9368_s26] sm:$0xff] }
0x2222   :  { %8004 = vtanh.f32 %v5379_v25  ;;  %v5578_v25 = vld [vmem:[%s9334_s18 + $0x10] sm:$0xff]  ;;  %vm6314_vm14 = vcmp.gt.f32.partialorder %v6312_v57, 0.0  ;;  %vm6313_vm15 = vcmp.gt.f32.partialorder %v6311_v22, 0.0 }
0x2223   :  { %8006 = vtanh.f32 %v5378_v27  ;;  %v5579_v27 = vld [vmem:[%s9334_s18 + $0x18] sm:$0xff]  ;;  %7810 = vmatprep.subr.bf16.mxu0 %v7809_v24 }
0x222c   :  { %v8005_v28 = vpop.eup %8004 }
0x222d   :  { %v8007_v36 = vpop.eup %8006  ;;  %v5383_v38 = vadd.f32 1.0, %v8005_v28  ;;  %v5756_v28 = vld [vmem:[%s9338_s22 + $0x10] sm:$0xff] }
0x222e   :  { %v5382_v43 = vadd.f32 1.0, %v8007_v36  ;;  %v7797_v36 = vpack.c.bf16 %v5579_v27, %v5578_v25 }
0x222f   :  { %v5385_v49 = vmul.f32 %v5383_v38, %v5369_v54  ;;  %v5757_v38 = vld [vmem:[%s9338_s22 + $0x18] sm:$0xff]  ;;  %v5669_v54 = vld [vmem:[%s9336_s20 + $0x8] sm:$0xff] }
0x2230   :  { %v5384_v47 = vmul.f32 %v5382_v43, %v5368_v40  ;;  %v7813_v40 = vpack.c.bf16 %v5757_v38, %v5756_v28  ;;  %7798 = vmatprep.subr.bf16.mxu1 %v7797_v36  ;;  %v5668_v43 = vld [vmem:[%s9336_s20] sm:$0xff] }
0x2231   :  { %7800 = vmatpush3.bf16.msra.mxu1 %v7797_v36 }
0x2232   :  { %7387 = vmatprep.mubr.msk.f32.mxu0 %vm2700_vm4, %v5384_v47  ;;  %v7801_v47 = vpack.c.bf16 %v5669_v54, %v5668_v43 }
0x2233   :  { %7388 = vmatmul.mubr.msk.f32.vlgmr.msra.gmra.mrb[40].mxu0 %vm2700_vm4, %v5385_v49  ;;  %vm5841_vm4 = vcmask 64512  }
0x2234   :  { %7812 = vmatpush3.bf16.msra.mxu0 %v7809_v24  ;;  %7802 = vmatprep.subr.bf16.mxu1 %v7801_v47 }
0x2235   :  { %7814 = vmatprep.subr.bf16.mxu0 %v7813_v40 }
0x2238   :  { %7816 = vmatpush3.bf16.msra.mxu0 %v7813_v40 }
0x2239   :  { %7433 = vmatprep.subr.mxu0 %v8058_v29 }
0x2306   :  { %v7389_v9 = vpop.f32.mrb[40].mxu0 }
0x2307   :  { %v5481_v17 = vadd.f32 %v7389_v9, %v6611_v18  ;;  %v5475_v61 = vpop.f32.mrb[41].mxu0 }
0x2308   :  { %v5476_v16 = vadd.f32 %v6611_v18, %v5475_v61 }
0x2309   :  { %v5485_v46 = vadd.f32 %v5481_v17, %v5273_v31 }
0x230a   :  { %v5484_v63 = vadd.f32 %v5476_v16, %v5272_v0  ;;  %v6616_v0 = vld [vmem:[%s9326_s10 + $0x5] ss:$0 sm:$0xff]  ;;  %s8060_s10 = smov [#allocation2]  }
0x230b   :  { %v5493_v44 = vsel %vm136_vm0, %v5485_v46, 0.0  ;;  %s6324_s11 = sshll.u32 %s8060_s10, 4  ;;  %s6325_s11 = int_to_ptr.vmem [resolvable:$true] %s6324_s11 }
0x230c   :  { %5494 = vadd.xlane.f32.xlu1 %v5493_v44  ;;  %v5490_v37 = vsel %vm136_vm0, %v5484_v63, 0.0  ;;  %s8034_s28 = scalar_lea.vmem %s6325_s11, 256  ;;  %p8039_p1 = scmp.lt.s32.totalorder %s6325_s11, %s6325_s11 }
0x230d   :  { %5491 = vadd.xlane.f32.xlu0 %v5490_v37  ;;  %p8035_p0 = scmp.ne.s32.totalorder %s6325_s11, %s8034_s28  ;;  %p8040_p2 = scmp.lt.s32.totalorder %s8034_s28, %s8034_s28 }
0x230f   :  { %p8041_p3 = por %p8040_p2, %p8039_p1 }
0x2311   :  { %p8042_p4 = pnand %p8041_p3, %p8035_p0 }
0x2399   :  { %v5495_v62 = vpop.xlane.xlu1 %5494 }
0x239a   :  { %v5497_v42 = vmul.f32 0.03125, %v5495_v62  ;;  %v5492_v34 = vpop.xlane.xlu0 %5491 }
0x239b   :  { %v5496_v50 = vmul.f32 0.03125, %v5492_v34 }
0x239c   :  { %v5499_v51 = vsub.f32 %v5485_v46, %v5497_v42  ;;  %v6619_v42 = vld [vmem:[%s9333_s17] ss:$0 sm:$0xff] }
0x239d   :  { %v5498_v26 = vsub.f32 %v5484_v63, %v5496_v50  ;;  %v6618_v63 = vld [vmem:[%s9332_s16] ss:$0 sm:$0xff] }
0x239e   :  { %v5501_v53 = vmul.f32 %v5499_v51, %v5499_v51 }
0x239f   :  { %v5500_v35 = vmul.f32 %v5498_v26, %v5498_v26 }
0x23a0   :  { %v5505_v32 = vsel %vm136_vm0, %v5501_v53, 0.0 }
0x23a1   :  { %5506 = vadd.xlane.f32.xlu1 %v5505_v32  ;;  %v5502_v55 = vsel %vm136_vm0, %v5500_v35, 0.0 }
0x23a2   :  { %5503 = vadd.xlane.f32.xlu0 %v5502_v55  ;;  %v6626_v55 = vld [vmem:[%s9339_s23] ss:$0 sm:$0xff] }
0x242e   :  { %v5507_v39 = vpop.xlane.xlu1 %5506 }
0x242f   :  { %v5509_v59 = vmul.f32 0.03125, %v5507_v39  ;;  %v5504_v52 = vpop.xlane.xlu0 %5503 }
0x2430   :  { %v5508_v21 = vmul.f32 0.03125, %v5504_v52 }
0x2431   :  { %v5511_v60 = vadd.f32 1e-05, %v5509_v59 }
0x2432   :  { %v5510_v41 = vadd.f32 1e-05, %v5508_v21 }
0x2433   :  { %8008 = vrsqrt.f32 %v5511_v60 }
0x2434   :  { %8010 = vrsqrt.f32 %v5510_v41  ;;  %v6632_v41 = vld [vmem:[%s9365_s6 + $0x8] sm:$0xff] }
0x243d   :  { %v8009_v48 = vpop.eup %8008 }
0x243e   :  { %v8011_v31 = vpop.eup %8010  ;;  %v5515_v3 = vmul.f32 %v8009_v48, %v5499_v51  ;;  %v5670_v51 = vld [vmem:[%s9336_s20 + $0x10] sm:$0xff] }
0x243f   :  { %v5514_v1 = vmul.f32 %v8011_v31, %v5498_v26  ;;  %v5671_v26 = vld [vmem:[%s9336_s20 + $0x18] sm:$0xff] }
0x2440   :  { %v5523_v5 = vmul.f32 %v6616_v0, %v5515_v3  ;;  %v7805_v32 = vpack.c.bf16 %v5671_v26, %v5670_v51 }
0x2441   :  { %v5522_v4 = vmul.f32 %v6616_v0, %v5514_v1  ;;  %v5840_v0 = vld [vmem:[%s9365_s6] sm:$0xff] }
0x2442   :  { %v5531_v6 = vadd.f32 %v6617_v33, %v5523_v5 }
0x2443   :  { %v5530_v7 = vadd.f32 %v6617_v33, %v5522_v4  ;;  %v6623_v33 = vld [vmem:[%s9337_s21] ss:$0 sm:$0xff] }
0x2444   :  { %v5537_v8 = vsel %vm136_vm0, %v5531_v6, 0.0 }
0x2445   :  { %5538 = vadd.xlane.f32.xlu1 %v5537_v8  ;;  %v5534_v45 = vsel %vm136_vm0, %v5530_v7, 0.0 }
0x2446   :  { %5535 = vadd.xlane.f32.xlu0 %v5534_v45  ;;  %v6147_v45 = vld [vmem:[%s9366_s7] sm:$0xff] }
0x24d2   :  { %v5539_v56 = vpop.xlane.xlu1 %5538 }
0x24d3   :  { %v5541_v58 = vmul.f32 0.03125, %v5539_v56  ;;  %v5536_v2 = vpop.xlane.xlu0 %5535  ;;  %v6144_v56 = vld [vmem:[%s9367_s12] sm:$0xff] }
0x24d4   :  { %v5540_v10 = vmul.f32 0.03125, %v5536_v2 }
0x24d5   :  { %v5543_v11 = vsub.f32 %v5531_v6, %v5541_v58  ;;  %v6145_v58 = vld [vmem:[%s9367_s12 + $0x8] sm:$0xff] }
0x24d6   :  { %v5542_v12 = vsub.f32 %v5530_v7, %v5540_v10  ;;  %v7817_v2 = vpack.c.bf16 %v6145_v58, %v6144_v56 }
0x24d7   :  { %v5545_v30 = vmul.f32 %v5543_v11, %v5543_v11 }
0x24d8   :  { %v5544_v13 = vmul.f32 %v5542_v12, %v5542_v12 }
0x24d9   :  { %v5549_v14 = vsel %vm136_vm0, %v5545_v30, 0.0 }
0x24da   :  { %5550 = vadd.xlane.f32.xlu1 %v5549_v14  ;;  %v5546_v15 = vsel %vm136_vm0, %v5544_v13, 0.0 }
0x24db   :  { %5547 = vadd.xlane.f32.xlu0 %v5546_v15 }
0x2567   :  { %v5551_v49 = vpop.xlane.xlu1 %5550 }
0x2568   :  { %v5553_v18 = vmul.f32 0.03125, %v5551_v49  ;;  %v5548_v9 = vpop.xlane.xlu0 %5547 }
0x2569   :  { %v5552_v17 = vmul.f32 0.03125, %v5548_v9 }
0x256a   :  { %v5555_v61 = vadd.f32 1e-05, %v5553_v18 }
0x256b   :  { %v5554_v16 = vadd.f32 1e-05, %v5552_v17 }
0x256c   :  { %8012 = vrsqrt.f32 %v5555_v61 }
0x256d   :  { %8014 = vrsqrt.f32 %v5554_v16 }
0x2576   :  { %v8013_v46 = vpop.eup %8012 }
0x2577   :  { %v8015_v44 = vpop.eup %8014  ;;  %v5559_v37 = vmul.f32 %v8013_v46, %v5543_v11 }
0x2578   :  { %v5558_v62 = vmul.f32 %v8015_v44, %v5542_v12  ;;  %v6620_v12 = vld [vmem:[%s9335_s19] ss:$0 sm:$0xff] }
0x2579   :  { %v5567_v34 = vmul.f32 %v6618_v63, %v5559_v37 }
0x257a   :  { %v5566_v50 = vmul.f32 %v6618_v63, %v5558_v62 }
0x257b   :  { %v5575_v35 = vadd.f32 %v6619_v42, %v5567_v34 }
0x257c   :  { %v5574_v53 = vadd.f32 %v6619_v42, %v5566_v50 }
0x257e   :  { %7398 = vmatprep.mubr.msk.f32.mxu1 %vm136_vm0, %v5574_v53  ;;  %7420 = vmatprep.mubr.msk.f32.mxu0 %vm136_vm0, %v5574_v53 }
0x257f   :  { %7399 = vmatmul.mubr.msk.f32.vlgmr.msra.gmra.mrb[40].mxu1 %vm136_vm0, %v5575_v35  ;;  %7421 = vmatmul.mubr.msk.f32.vlgmr.msra.gmra.mrb[42].mxu0 %vm136_vm0, %v5575_v35 }
0x2580   :  { %7804 = vmatpush3.bf16.msra.mxu1 %v7801_v47  ;;  %7409 = vmatprep.mubr.msk.f32.mxu1 %vm136_vm0, %v5574_v53 }
0x2581   :  { %7806 = vmatprep.subr.bf16.mxu1 %v7805_v32  ;;  %7435 = vmatprep.mubr.msk.f32.mxu0 %vm8059_vm9, %v8058_v29 }
0x2584   :  { %7808 = vmatpush3.bf16.msra.mxu1 %v7805_v32 }
0x2585   :  { %7423 = vmatprep.subr.mxu1 %v8058_v29 }
0x2587   :  { %7410 = vmatmul.mubr.msk.f32.vlgmr.msra.gmra.mrb[42].mxu1 %vm136_vm0, %v5575_v35 }
0x2588   :  { %7425 = vmatprep.mubr.msk.f32.mxu1 %vm8059_vm9, %v8058_v29 }
0x2652   :  { %v7400_v39 = vpop.f32.mrb[40].mxu1  ;;  %v7422_v59 = vpop.f32.mrb[42].mxu0 }
0x2653   :  { %v5837_v52 = vadd.f32 %v7422_v59, %v6626_v55  ;;  %v5659_v21 = vpop.f32.mrb[41].mxu1  ;;  %v5831_v60 = vpop.f32.mrb[43].mxu0  ;;  %v5665_v20 = vadd.f32 %v7400_v39, %v6620_v12 }
0x2654   :  { %v5832_v48 = vadd.f32 %v6626_v55, %v5831_v60  ;;  %v5660_v15 = vadd.f32 %v6620_v12, %v5659_v21 }
0x2655   :  { %7434 = vmatpush3.msra.mxu0 %v5837_v52 }
0x2656   :  { %7424 = vmatpush3.msra.mxu1 %v5832_v48  ;;  %7436 = vmatmul.mubr.msk.f32.vlgmr.msra.gmra.mrb[44].mxu0 %vm5841_vm4, %v6632_v41 }
0x2657   :  { %7426 = vmatmul.mubr.msk.f32.vlgmr.msra.gmra.mrb[44].mxu1 %vm5841_vm4, %v5840_v0  ;;  %7428 = vmatprep.subr.mxu1 %v8058_v29 }
0x2658   :  { %7430 = vmatprep.mubr.msk.f32.mxu1 %vm8059_vm9, %v8058_v29  ;;  %7443 = vmatprep.subr.mxu0 %v6147_v45 }
0x2659   :  { %7444 = vmatpush3.msra.mxu0 %v6147_v45 }
0x265a   :  { %v7411_v31 = vpop.f32.mrb[42].mxu1  ;;  %7818 = vmatprep.subr.bf16.mxu0 %v7817_v2 }
0x265b   :  { %v5745_v3 = vpop.f32.mrb[43].mxu1  ;;  %v5751_v8 = vadd.f32 %v7411_v31, %v6623_v33 }
0x265c   :  { %v5746_v7 = vadd.f32 %v6623_v33, %v5745_v3 }
0x2729   :  { %v6063_v1 = vpop.f32.mrb[44].mxu0 }
0x272a   :  { %v5911_v5 = vpop.f32.mrb[44].mxu1  ;;  %v7437_v4 = vpop.f32.mrb[45].mxu0 }
0x272b   :  { %7429 = vmatpush3.xpose.msk.msra.mxu1 %vm136_vm0, %v5911_v5  ;;  %v7427_v6 = vpop.f32.mrb[45].mxu1 }
0x272c   :  { %7438 = vmatprep.subr.mxu1 %v8058_v29 }
0x272e   :  { %7431 = vmatmul.mubr.msk.f32.vlgmr.msra.gmra.mrb[46].mxu1 %vm136_vm0, %v5746_v7 }
0x272f   :  { %7439 = vmatpush3.xpose.msk.msra.mxu1 %vm136_vm0, %v6063_v1  ;;  %7440 = vmatprep.mubr.msk.f32.mxu1 %vm8059_vm9, %v8058_v29 }
0x2732   :  { %7441 = vmatmul.mubr.msk.f32.vlgmr.msra.gmra.mrb[48].mxu1 %vm136_vm0, %v5751_v8 }
0x2801   :  { %v5987_v29 = vpop.f32.mrb[46].mxu1 }
0x2802   :  { %v5991_v10 = vmul.f32 0.17677669, %v5987_v29  ;;  %v7432_v11 = vpop.f32.mrb[47].mxu1 }
0x2804   :  { %7445 = vmatprep.mubr.msk.f32.mxu0 %vm5841_vm4, %v5991_v10 }
0x2805   :  { %v6139_v30 = vpop.f32.mrb[48].mxu1 }
0x2806   :  { %v6143_v13 = vmul.f32 0.17677669, %v6139_v30  ;;  %v7442_v14 = vpop.f32.mrb[49].mxu1 }
0x2808   :  { %7446 = vmatmul.mubr.msk.f32.vlgmr.msra.gmra.mrb[46].mxu0 %vm5841_vm4, %v6143_v13 }
0x2809   :  { %7454 = vmatprep.mubr.msk.f32.mxu0 %vm6229_vm13, %v5660_v15  ;;  %7820 = vmatpush3.bf16.msra.mxu0 %v7817_v2 }
0x280a   :  { %7452 = vmatprep.subr.mxu0 %v6146_v19 }
0x280d   :  { %7453 = vmatpush3.msra.mxu0 %v6146_v19 }
0x2810   :  { %7455 = vmatmul.mubr.msk.f32.vlgmr.msra.gmra.mrb[46].mxu0 %vm6229_vm13, %v5665_v20 }
0x28e3   :  { %v7456_v23 = vpop.f32.mrb[46].mxu0 }
0x28e4   :  { %v6316_v24 = vsel %vm6314_vm14, -inf, %v7456_v23  ;;  %v6302_v25 = vpop.f32.mrb[47].mxu0 }
0x28e5   :  { %6318 = vst.msk [vmem:[#allocation2 + $0x8] sm:$0xff] %vm136_vm0, %v6316_v24  ;;  %v6315_v27 = vsel %vm6313_vm15, -inf, %v6302_v25 }
0x28e6   :  { %6317 = vst.msk [vmem:[#allocation2] sm:$0xff] %vm136_vm0, %v6315_v27 }
0x28e7   :  { %8045 = shalt.err (!%p8042_p4)
}
0x28e8   :  { %s8046_s17 = scalar_lea.hbm %s9340_s24, 256 }
0x28e9   :  { %p8047_p5 = scmp.ne.s32.totalorder %s9340_s24, %s8046_s17  ;;  %p8050_p6 = scmp.lt.u32.totalorder %s8046_s17, %s9340_s24 }
0x28eb   :  { %p8052_p7 = pnand %p8050_p6, %p8047_p5 }
0x28ed   :  { %8055 = shalt.err (!%p8052_p7)
}
0x28ee   :  { %s8061_s0 = smov 128   ;;  %s8062_s23 = smov 8  }
0x28ef   :  { %6330 = dma.vmem_to_hbm [thread:$0]  %s6325_s11, 256, %s9340_s24, [#allocation3], %s8061_s0, %s8061_s0, %s8062_s23  }
0x28f0   :  { %8056 = dma.done.wait [#allocation3], 256  }
0x28f1   :  { %8057 = vsyncadd [#allocation3], 4294967040 }
0x28f2   :  { %6334 = vsyncpa [#allocation3], 1 }

</bundles_post_ra>
